<compile_context>
chip_gen: v6e
topology: v6e:2x2x1
jax: 0.10.0
libtpu: 0.0.40
codegen_flags: <defaults>
</compile_context>

<pallas_src>
import functools

import jax
import jax.numpy as jnp
from jax.experimental import pallas as pl
from jax.experimental.pallas import tpu as pltpu

EPS = 1e-5

ATTN_KEYS = ("gq", "bq", "gkv", "bkv",
             "wq", "bwq", "wk", "bwk", "wv", "bwv", "wo", "bwo")   # 12 arrays
MLP_KEYS = ("g", "b", "w1", "b1", "w2", "b2")                       # 6 arrays


def _layernorm(x, gamma, beta):
    mu = jnp.mean(x, axis=-1, keepdims=True)
    var = jnp.mean((x - mu) ** 2, axis=-1, keepdims=True)
    return (x - mu) * jax.lax.rsqrt(var + EPS) * gamma + beta


# ----------------------------------------------------------------------------
# In-kernel building blocks (operate on values, read params from refs).
# ----------------------------------------------------------------------------
def _attn_residual(x, ctx, prm, layer=None):
    """LN(x), LN(ctx), single-head cross-attn, out-proj, residual. Batched."""
    gq, bq, gkv, bkv, wq, bwq, wk, bwk, wv, bwv, wo, bwo = (
        (r[layer] if layer is not None else r[...]) for r in prm)
    B, Nq, Dq = x.shape
    _, Nk, Dkv = ctx.shape

    xn = _layernorm(x, gq, bq)
    cn = _layernorm(ctx, gkv, bkv)

    # Flatten (B, N, D) -> (B*N, D): one MXU matmul with M = B*N per projection.
    xn2 = xn.reshape(B * Nq, Dq)
    cn2 = cn.reshape(B * Nk, Dkv)
    q = (jnp.dot(xn2, wq, preferred_element_type=jnp.float32) + bwq).reshape(B, Nq, Dq)
    k = (jnp.dot(cn2, wk, preferred_element_type=jnp.float32) + bwk).reshape(B, Nk, Dq)
    v = (jnp.dot(cn2, wv, preferred_element_type=jnp.float32) + bwv).reshape(B, Nk, Dq)

    scale = 1.0 / jnp.sqrt(jnp.float32(Dq))
    # Contract last dims of both operands -> no explicit k.T / XLU transpose.
    s = jnp.einsum("bqd,bkd->bqk", q, k, preferred_element_type=jnp.float32) * scale
    s = s - jnp.max(s, axis=-1, keepdims=True)
    p = jnp.exp(s)
    denom = jnp.sum(p, axis=-1, keepdims=True)
    p = p * pl.reciprocal(denom, approx=True)     # EUP slot; frees VALU

    o = jnp.einsum("bqk,bkd->bqd", p, v, preferred_element_type=jnp.float32)
    o2 = jnp.dot(o.reshape(B * Nq, Dq), wo, preferred_element_type=jnp.float32) + bwo
    return x + o2.reshape(B, Nq, Dq)


def _mlp_residual(x, prm, layer=None):
    """LN, MLP (D -> 4D -> D, GELU), residual. Batched via (B*N, D) flatten."""
    g, b, w1, b1, w2, b2 = (
        (r[layer] if layer is not None else r[...]) for r in prm)
    B, N, D = x.shape
    xn = _layernorm(x, g, b).reshape(B * N, D)
    h = jnp.dot(xn, w1, preferred_element_type=jnp.float32) + b1
    h = jax.nn.gelu(h, approximate=True)  # TODO(synk): PyTorch nn.GELU default is erf-exact
    y = jnp.dot(h, w2, preferred_element_type=jnp.float32) + b2
    return x + y.reshape(B, N, D)


# ----------------------------------------------------------------------------
# Single fused kernel: whole RIN block with activations resident in VMEM.
# Ref order: emb, lat, read_attn(12), read_mlp(6), comp_attn(12, stacked),
#            comp_mlp(6, stacked), write_attn(12), write_mlp(6), emb_out, lat_out
# ----------------------------------------------------------------------------
def rin_block_kernel(*refs, num_layers):
    emb_ref, lat_ref = refs[0], refs[1]
    idx = 2

    def take(n):
        nonlocal idx
        grp = refs[idx:idx + n]
        idx += n
        return grp

    read_attn = take(12)
    read_mlp = take(6)
    comp_attn = take(12)   # leading layer axis
    comp_mlp = take(6)     # leading layer axis
    write_attn = take(12)
    write_mlp = take(6)
    emb_out_ref, lat_out_ref = refs[idx], refs[idx + 1]

    emb = emb_ref[...].astype(jnp.float32)
    lat = lat_ref[...].astype(jnp.float32)

    # read: latents attend to embeddings
    lat = _attn_residual(lat, emb, read_attn)
    lat = _mlp_residual(lat, read_mlp)
    # computation: num_layers x (self-attn + MLP) on latents, statically unrolled
    for l in range(num_layers):
        lat = _attn_residual(lat, lat, comp_attn, layer=l)
        lat = _mlp_residual(lat, comp_mlp, layer=l)
    # write: embeddings attend to latents
    emb = _attn_residual(emb, lat, write_attn)
    emb = _mlp_residual(emb, write_mlp)

    emb_out_ref[...] = emb.astype(emb_out_ref.dtype)
    lat_out_ref[...] = lat.astype(lat_out_ref.dtype)


# ----------------------------------------------------------------------------
# Wrapper
# ----------------------------------------------------------------------------
def _flatten_params(params):
    flat = [params["read_attn"][k] for k in ATTN_KEYS]
    flat += [params["read_mlp"][k] for k in MLP_KEYS]
    comp = params["comp"]
    flat += [jnp.stack([lp["attn"][k] for lp in comp], axis=0) for k in ATTN_KEYS]
    flat += [jnp.stack([lp["mlp"][k] for lp in comp], axis=0) for k in MLP_KEYS]
    flat += [params["write_attn"][k] for k in ATTN_KEYS]
    flat += [params["write_mlp"][k] for k in MLP_KEYS]
    return flat


@jax.jit
def rin_block_forward(embeddings, latents, params):
    num_layers = len(params["comp"])
    flat = _flatten_params(params)
    vmem = pl.BlockSpec(memory_space=pltpu.MemorySpace.VMEM)
    return pl.pallas_call(
        functools.partial(rin_block_kernel, num_layers=num_layers),
        out_shape=(jax.ShapeDtypeStruct(embeddings.shape, embeddings.dtype),
                   jax.ShapeDtypeStruct(latents.shape, latents.dtype)),
        in_specs=[vmem] * (2 + len(flat)),
        out_specs=(vmem, vmem),
    )(embeddings, latents, *flat)


# ----------------------------------------------------------------------------
# Pure-JAX reference (same math; exact division instead of approx reciprocal)
# ----------------------------------------------------------------------------
def _ref_attn(x, ctx, p):
    xn = _layernorm(x, p["gq"], p["bq"])
    cn = _layernorm(ctx, p["gkv"], p["bkv"])
    q = jnp.einsum("bnd,de->bne", xn, p["wq"]) + p["bwq"]
    k = jnp.einsum("bnd,de->bne", cn, p["wk"]) + p["bwk"]
    v = jnp.einsum("bnd,de->bne", cn, p["wv"]) + p["bwv"]
    s = jnp.einsum("bqd,bkd->bqk", q, k) / jnp.sqrt(jnp.float32(q.shape[-1]))
    a = jax.nn.softmax(s, axis=-1)
    o = jnp.einsum("bqk,bkd->bqd", a, v)
    o = jnp.einsum("bnd,de->bne", o, p["wo"]) + p["bwo"]
    return x + o


def _ref_mlp(x, p):
    xn = _layernorm(x, p["g"], p["b"])
    h = jax.nn.gelu(jnp.einsum("bnd,dh->bnh", xn, p["w1"]) + p["b1"], approximate=True)
    y = jnp.einsum("bnh,hd->bnd", h, p["w2"]) + p["b2"]
    return x + y


def rin_block_reference(embeddings, latents, params):
    latents = _ref_attn(latents, embeddings, params["read_attn"])
    latents = _ref_mlp(latents, params["read_mlp"])
    for lp in params["comp"]:
        latents = _ref_attn(latents, latents, lp["attn"])
        latents = _ref_mlp(latents, lp["mlp"])
    embeddings = _ref_attn(embeddings, latents, params["write_attn"])
    embeddings = _ref_mlp(embeddings, params["write_mlp"])
    return embeddings, latents


# ----------------------------------------------------------------------------
# Deterministic parameter init (synthetic — no checkpoint loading)
# ----------------------------------------------------------------------------
def _init_attn_params(key, d_q, d_kv):
    ks = jax.random.split(key, 4)
    s = 0.02
    f32 = jnp.float32
    return dict(
        gq=jnp.ones((1, d_q), f32), bq=jnp.zeros((1, d_q), f32),
        gkv=jnp.ones((1, d_kv), f32), bkv=jnp.zeros((1, d_kv), f32),
        wq=s * jax.random.normal(ks[0], (d_q, d_q), f32),
        bwq=jnp.zeros((1, d_q), f32),
        wk=s * jax.random.normal(ks[1], (d_kv, d_q), f32),
        bwk=jnp.zeros((1, d_q), f32),
        wv=s * jax.random.normal(ks[2], (d_kv, d_q), f32),
        bwv=jnp.zeros((1, d_q), f32),
        wo=s * jax.random.normal(ks[3], (d_q, d_q), f32),
        bwo=jnp.zeros((1, d_q), f32),
    )


def _init_mlp_params(key, d):
    ks = jax.random.split(key, 2)
    s = 0.02
    f32 = jnp.float32
    return dict(
        g=jnp.ones((1, d), f32), b=jnp.zeros((1, d), f32),
        w1=s * jax.random.normal(ks[0], (d, 4 * d), f32),
        b1=jnp.zeros((1, 4 * d), f32),
        w2=s * jax.random.normal(ks[1], (4 * d, d), f32),
        b2=jnp.zeros((1, d), f32),
    )


def init_rin_block_params(key, embedding_width, latent_width, num_layers):
    keys = jax.random.split(key, 4 + 2 * num_layers)
    params = dict(
        read_attn=_init_attn_params(keys[0], latent_width, embedding_width),
        read_mlp=_init_mlp_params(keys[1], latent_width),
        write_attn=_init_attn_params(keys[2], embedding_width, latent_width),
        write_mlp=_init_mlp_params(keys[3], embedding_width),
        comp=[],
    )
    for i in range(num_layers):
        params["comp"].append(dict(
            attn=_init_attn_params(keys[4 + 2 * i], latent_width, latent_width),
            mlp=_init_mlp_params(keys[5 + 2 * i], latent_width),
        ))
    return params


if __name__ == "__main__":
    B = 2
    N_EMB, EMBEDDING_WIDTH = 16, 32
    N_LAT, LATENT_WIDTH = 8, 64
    NUM_LAYERS = 2

    key = jax.random.PRNGKey(0)
    k_emb, k_lat, k_par = jax.random.split(key, 3)
    embeddings = jax.random.normal(k_emb, (B, N_EMB, EMBEDDING_WIDTH), jnp.float32)
    latents = jax.random.normal(k_lat, (B, N_LAT, LATENT_WIDTH), jnp.float32)

    params = init_rin_block_params(k_par, EMBEDDING_WIDTH, LATENT_WIDTH, NUM_LAYERS)

    out_emb, out_lat = rin_block_forward(embeddings, latents, params)
    jax.block_until_ready(out_emb)
    jax.block_until_ready(out_lat)

    assert out_emb.shape == embeddings.shape and out_lat.shape == latents.shape
    assert jnp.all(jnp.isfinite(out_emb)) and jnp.all(jnp.isfinite(out_lat))

    ref_emb, ref_lat = rin_block_reference(embeddings, latents, params)
    assert jnp.allclose(out_emb, ref_emb, rtol=1e-2, atol=1e-2)
    assert jnp.allclose(out_lat, ref_lat, rtol=1e-2, atol=1e-2)

    print("KERNEL_OK")
</pallas_src>

<mosaic_0001>
module attributes {stable_mosaic.version = 11 : i64} {
  func.func @rin_block_kernel(%arg0: memref<2x16x32xf32, #tpu.memory_space<vmem>>, %arg1: memref<2x8x64xf32, #tpu.memory_space<vmem>>, %arg2: memref<1x64xf32, #tpu.memory_space<vmem>>, %arg3: memref<1x64xf32, #tpu.memory_space<vmem>>, %arg4: memref<1x32xf32, #tpu.memory_space<vmem>>, %arg5: memref<1x32xf32, #tpu.memory_space<vmem>>, %arg6: memref<64x64xf32, #tpu.memory_space<vmem>>, %arg7: memref<1x64xf32, #tpu.memory_space<vmem>>, %arg8: memref<32x64xf32, #tpu.memory_space<vmem>>, %arg9: memref<1x64xf32, #tpu.memory_space<vmem>>, %arg10: memref<32x64xf32, #tpu.memory_space<vmem>>, %arg11: memref<1x64xf32, #tpu.memory_space<vmem>>, %arg12: memref<64x64xf32, #tpu.memory_space<vmem>>, %arg13: memref<1x64xf32, #tpu.memory_space<vmem>>, %arg14: memref<1x64xf32, #tpu.memory_space<vmem>>, %arg15: memref<1x64xf32, #tpu.memory_space<vmem>>, %arg16: memref<64x256xf32, #tpu.memory_space<vmem>>, %arg17: memref<1x256xf32, #tpu.memory_space<vmem>>, %arg18: memref<256x64xf32, #tpu.memory_space<vmem>>, %arg19: memref<1x64xf32, #tpu.memory_space<vmem>>, %arg20: memref<2x1x64xf32, #tpu.memory_space<vmem>>, %arg21: memref<2x1x64xf32, #tpu.memory_space<vmem>>, %arg22: memref<2x1x64xf32, #tpu.memory_space<vmem>>, %arg23: memref<2x1x64xf32, #tpu.memory_space<vmem>>, %arg24: memref<2x64x64xf32, #tpu.memory_space<vmem>>, %arg25: memref<2x1x64xf32, #tpu.memory_space<vmem>>, %arg26: memref<2x64x64xf32, #tpu.memory_space<vmem>>, %arg27: memref<2x1x64xf32, #tpu.memory_space<vmem>>, %arg28: memref<2x64x64xf32, #tpu.memory_space<vmem>>, %arg29: memref<2x1x64xf32, #tpu.memory_space<vmem>>, %arg30: memref<2x64x64xf32, #tpu.memory_space<vmem>>, %arg31: memref<2x1x64xf32, #tpu.memory_space<vmem>>, %arg32: memref<2x1x64xf32, #tpu.memory_space<vmem>>, %arg33: memref<2x1x64xf32, #tpu.memory_space<vmem>>, %arg34: memref<2x64x256xf32, #tpu.memory_space<vmem>>, %arg35: memref<2x1x256xf32, #tpu.memory_space<vmem>>, %arg36: memref<2x256x64xf32, #tpu.memory_space<vmem>>, %arg37: memref<2x1x64xf32, #tpu.memory_space<vmem>>, %arg38: memref<1x32xf32, #tpu.memory_space<vmem>>, %arg39: memref<1x32xf32, #tpu.memory_space<vmem>>, %arg40: memref<1x64xf32, #tpu.memory_space<vmem>>, %arg41: memref<1x64xf32, #tpu.memory_space<vmem>>, %arg42: memref<32x32xf32, #tpu.memory_space<vmem>>, %arg43: memref<1x32xf32, #tpu.memory_space<vmem>>, %arg44: memref<64x32xf32, #tpu.memory_space<vmem>>, %arg45: memref<1x32xf32, #tpu.memory_space<vmem>>, %arg46: memref<64x32xf32, #tpu.memory_space<vmem>>, %arg47: memref<1x32xf32, #tpu.memory_space<vmem>>, %arg48: memref<32x32xf32, #tpu.memory_space<vmem>>, %arg49: memref<1x32xf32, #tpu.memory_space<vmem>>, %arg50: memref<1x32xf32, #tpu.memory_space<vmem>>, %arg51: memref<1x32xf32, #tpu.memory_space<vmem>>, %arg52: memref<32x128xf32, #tpu.memory_space<vmem>>, %arg53: memref<1x128xf32, #tpu.memory_space<vmem>>, %arg54: memref<128x32xf32, #tpu.memory_space<vmem>>, %arg55: memref<1x32xf32, #tpu.memory_space<vmem>>, %arg56: memref<2x16x32xf32, #tpu.memory_space<vmem>>, %arg57: memref<2x8x64xf32, #tpu.memory_space<vmem>>) attributes {dimension_semantics = [], scalar_prefetch = 0 : i64, scratch_operands = 0 : i64, tpu.core_type = #tpu.core_type<tc>} {
    %c0 = arith.constant 0 : index
    %c0_0 = arith.constant 0 : index
    %c0_1 = arith.constant 0 : index
    %0 = vector.load %arg0[%c0, %c0_0, %c0_1] : memref<2x16x32xf32, #tpu.memory_space<vmem>>, vector<2x16x32xf32>
    %c0_2 = arith.constant 0 : index
    %c0_3 = arith.constant 0 : index
    %c0_4 = arith.constant 0 : index
    %1 = vector.load %arg1[%c0_2, %c0_3, %c0_4] : memref<2x8x64xf32, #tpu.memory_space<vmem>>, vector<2x8x64xf32>
    %c0_5 = arith.constant 0 : index
    %c0_6 = arith.constant 0 : index
    %2 = vector.load %arg2[%c0_5, %c0_6] : memref<1x64xf32, #tpu.memory_space<vmem>>, vector<1x64xf32>
    %c0_7 = arith.constant 0 : index
    %c0_8 = arith.constant 0 : index
    %3 = vector.load %arg3[%c0_7, %c0_8] : memref<1x64xf32, #tpu.memory_space<vmem>>, vector<1x64xf32>
    %c0_9 = arith.constant 0 : index
    %c0_10 = arith.constant 0 : index
    %4 = vector.load %arg4[%c0_9, %c0_10] : memref<1x32xf32, #tpu.memory_space<vmem>>, vector<1x32xf32>
    %c0_11 = arith.constant 0 : index
    %c0_12 = arith.constant 0 : index
    %5 = vector.load %arg5[%c0_11, %c0_12] : memref<1x32xf32, #tpu.memory_space<vmem>>, vector<1x32xf32>
    %c0_13 = arith.constant 0 : index
    %c0_14 = arith.constant 0 : index
    %6 = vector.load %arg6[%c0_13, %c0_14] : memref<64x64xf32, #tpu.memory_space<vmem>>, vector<64x64xf32>
    %c0_15 = arith.constant 0 : index
    %c0_16 = arith.constant 0 : index
    %7 = vector.load %arg7[%c0_15, %c0_16] : memref<1x64xf32, #tpu.memory_space<vmem>>, vector<1x64xf32>
    %c0_17 = arith.constant 0 : index
    %c0_18 = arith.constant 0 : index
    %8 = vector.load %arg8[%c0_17, %c0_18] : memref<32x64xf32, #tpu.memory_space<vmem>>, vector<32x64xf32>
    %c0_19 = arith.constant 0 : index
    %c0_20 = arith.constant 0 : index
    %9 = vector.load %arg9[%c0_19, %c0_20] : memref<1x64xf32, #tpu.memory_space<vmem>>, vector<1x64xf32>
    %c0_21 = arith.constant 0 : index
    %c0_22 = arith.constant 0 : index
    %10 = vector.load %arg10[%c0_21, %c0_22] : memref<32x64xf32, #tpu.memory_space<vmem>>, vector<32x64xf32>
    %c0_23 = arith.constant 0 : index
    %c0_24 = arith.constant 0 : index
    %11 = vector.load %arg11[%c0_23, %c0_24] : memref<1x64xf32, #tpu.memory_space<vmem>>, vector<1x64xf32>
    %c0_25 = arith.constant 0 : index
    %c0_26 = arith.constant 0 : index
    %12 = vector.load %arg12[%c0_25, %c0_26] : memref<64x64xf32, #tpu.memory_space<vmem>>, vector<64x64xf32>
    %c0_27 = arith.constant 0 : index
    %c0_28 = arith.constant 0 : index
    %13 = vector.load %arg13[%c0_27, %c0_28] : memref<1x64xf32, #tpu.memory_space<vmem>>, vector<1x64xf32>
    %cst = arith.constant dense<0.000000e+00> : vector<2x8xf32>
    %14 = vector.multi_reduction <add>, %1, %cst [2] : vector<2x8x64xf32> to vector<2x8xf32>
    %15 = vector.shape_cast %14 : vector<2x8xf32> to vector<2x8x1xf32>
    %cst_29 = arith.constant 6.400000e+01 : f32
    %16 = vector.broadcast %cst_29 : f32 to vector<2x8x1xf32>
    %17 = arith.divf %15, %16 : vector<2x8x1xf32>
    %18 = vector.broadcast %17 : vector<2x8x1xf32> to vector<2x8x64xf32>
    %19 = arith.subf %1, %18 : vector<2x8x64xf32>
    %20 = arith.mulf %19, %19 : vector<2x8x64xf32>
    %cst_30 = arith.constant dense<0.000000e+00> : vector<2x8xf32>
    %21 = vector.multi_reduction <add>, %20, %cst_30 [2] : vector<2x8x64xf32> to vector<2x8xf32>
    %22 = vector.shape_cast %21 : vector<2x8xf32> to vector<2x8x1xf32>
    %cst_31 = arith.constant 6.400000e+01 : f32
    %23 = vector.broadcast %cst_31 : f32 to vector<2x8x1xf32>
    %24 = arith.divf %22, %23 : vector<2x8x1xf32>
    %25 = vector.broadcast %17 : vector<2x8x1xf32> to vector<2x8x64xf32>
    %26 = arith.subf %1, %25 : vector<2x8x64xf32>
    %cst_32 = arith.constant 9.99999974E-6 : f32
    %27 = vector.broadcast %cst_32 : f32 to vector<2x8x1xf32>
    %28 = arith.addf %24, %27 : vector<2x8x1xf32>
    %29 = math.rsqrt %28 : vector<2x8x1xf32>
    %30 = vector.broadcast %29 : vector<2x8x1xf32> to vector<2x8x64xf32>
    %31 = arith.mulf %26, %30 : vector<2x8x64xf32>
    %32 = vector.shape_cast %2 : vector<1x64xf32> to vector<1x1x64xf32>
    %33 = vector.broadcast %32 : vector<1x1x64xf32> to vector<2x8x64xf32>
    %34 = arith.mulf %31, %33 : vector<2x8x64xf32>
    %35 = vector.shape_cast %3 : vector<1x64xf32> to vector<1x1x64xf32>
    %36 = vector.broadcast %35 : vector<1x1x64xf32> to vector<2x8x64xf32>
    %37 = arith.addf %34, %36 : vector<2x8x64xf32>
    %cst_33 = arith.constant dense<0.000000e+00> : vector<2x16xf32>
    %38 = vector.multi_reduction <add>, %0, %cst_33 [2] : vector<2x16x32xf32> to vector<2x16xf32>
    %39 = vector.shape_cast %38 : vector<2x16xf32> to vector<2x16x1xf32>
    %cst_34 = arith.constant 3.200000e+01 : f32
    %40 = vector.broadcast %cst_34 : f32 to vector<2x16x1xf32>
    %41 = arith.divf %39, %40 : vector<2x16x1xf32>
    %42 = vector.broadcast %41 : vector<2x16x1xf32> to vector<2x16x32xf32>
    %43 = arith.subf %0, %42 : vector<2x16x32xf32>
    %44 = arith.mulf %43, %43 : vector<2x16x32xf32>
    %cst_35 = arith.constant dense<0.000000e+00> : vector<2x16xf32>
    %45 = vector.multi_reduction <add>, %44, %cst_35 [2] : vector<2x16x32xf32> to vector<2x16xf32>
    %46 = vector.shape_cast %45 : vector<2x16xf32> to vector<2x16x1xf32>
    %cst_36 = arith.constant 3.200000e+01 : f32
    %47 = vector.broadcast %cst_36 : f32 to vector<2x16x1xf32>
    %48 = arith.divf %46, %47 : vector<2x16x1xf32>
    %49 = vector.broadcast %41 : vector<2x16x1xf32> to vector<2x16x32xf32>
    %50 = arith.subf %0, %49 : vector<2x16x32xf32>
    %cst_37 = arith.constant 9.99999974E-6 : f32
    %51 = vector.broadcast %cst_37 : f32 to vector<2x16x1xf32>
    %52 = arith.addf %48, %51 : vector<2x16x1xf32>
    %53 = math.rsqrt %52 : vector<2x16x1xf32>
    %54 = vector.broadcast %53 : vector<2x16x1xf32> to vector<2x16x32xf32>
    %55 = arith.mulf %50, %54 : vector<2x16x32xf32>
    %56 = vector.shape_cast %4 : vector<1x32xf32> to vector<1x1x32xf32>
    %57 = vector.broadcast %56 : vector<1x1x32xf32> to vector<2x16x32xf32>
    %58 = arith.mulf %55, %57 : vector<2x16x32xf32>
    %59 = vector.shape_cast %5 : vector<1x32xf32> to vector<1x1x32xf32>
    %60 = vector.broadcast %59 : vector<1x1x32xf32> to vector<2x16x32xf32>
    %61 = arith.addf %58, %60 : vector<2x16x32xf32>
    %62 = vector.shape_cast %37 : vector<2x8x64xf32> to vector<16x64xf32>
    %63 = vector.shape_cast %61 : vector<2x16x32xf32> to vector<32x32xf32>
    %cst_38 = arith.constant dense<0.000000e+00> : vector<16x64xf32>
    %64 = tpu.matmul %62, %6, %cst_38 {dimension_numbers = #tpu.dot_dimension_numbers<[1], [0], [0], [1], [0, 0, 1, 1], [], []>} : vector<16x64xf32>, vector<64x64xf32>, vector<16x64xf32> -> vector<16x64xf32>
    %65 = vector.broadcast %7 : vector<1x64xf32> to vector<16x64xf32>
    %66 = arith.addf %64, %65 : vector<16x64xf32>
    %67 = vector.shape_cast %66 : vector<16x64xf32> to vector<2x8x64xf32>
    %cst_39 = arith.constant dense<0.000000e+00> : vector<32x64xf32>
    %68 = tpu.matmul %63, %8, %cst_39 {dimension_numbers = #tpu.dot_dimension_numbers<[1], [0], [0], [1], [0, 0, 1, 1], [], []>} : vector<32x32xf32>, vector<32x64xf32>, vector<32x64xf32> -> vector<32x64xf32>
    %69 = vector.broadcast %9 : vector<1x64xf32> to vector<32x64xf32>
    %70 = arith.addf %68, %69 : vector<32x64xf32>
    %71 = vector.shape_cast %70 : vector<32x64xf32> to vector<2x16x64xf32>
    %cst_40 = arith.constant dense<0.000000e+00> : vector<32x64xf32>
    %72 = tpu.matmul %63, %10, %cst_40 {dimension_numbers = #tpu.dot_dimension_numbers<[1], [0], [0], [1], [0, 0, 1, 1], [], []>} : vector<32x32xf32>, vector<32x64xf32>, vector<32x64xf32> -> vector<32x64xf32>
    %73 = vector.broadcast %11 : vector<1x64xf32> to vector<32x64xf32>
    %74 = arith.addf %72, %73 : vector<32x64xf32>
    %75 = vector.shape_cast %74 : vector<32x64xf32> to vector<2x16x64xf32>
    %cst_41 = arith.constant 6.400000e+01 : f32
    %76 = math.sqrt %cst_41 : f32
    %cst_42 = arith.constant 1.000000e+00 : f32
    %77 = arith.divf %cst_42, %76 : f32
    "tpu.trace_start"() <{level = 10 : i32, message = "bqd,bkd->bqk"}> : () -> ()
    %cst_43 = arith.constant dense<0.000000e+00> : vector<2x8x16xf32>
    %78 = tpu.matmul %67, %71, %cst_43 {dimension_numbers = #tpu.dot_dimension_numbers<[2], [2], [1], [1], [0, 0, 0, 1, 1, 1], [0], [0]>} : vector<2x8x64xf32>, vector<2x16x64xf32>, vector<2x8x16xf32> -> vector<2x8x16xf32>
    "tpu.trace_stop"() : () -> ()
    %79 = vector.broadcast %77 : f32 to vector<2x8x16xf32>
    %80 = arith.mulf %78, %79 : vector<2x8x16xf32>
    %cst_44 = arith.constant dense<0xFF800000> : vector<2x8xf32>
    %81 = vector.multi_reduction <maximumf>, %80, %cst_44 [2] : vector<2x8x16xf32> to vector<2x8xf32>
    %82 = vector.shape_cast %81 : vector<2x8xf32> to vector<2x8x1xf32>
    %83 = vector.broadcast %82 : vector<2x8x1xf32> to vector<2x8x16xf32>
    %84 = arith.subf %80, %83 : vector<2x8x16xf32>
    %85 = math.exp %84 : vector<2x8x16xf32>
    %cst_45 = arith.constant dense<0.000000e+00> : vector<2x8xf32>
    %86 = vector.multi_reduction <add>, %85, %cst_45 [2] : vector<2x8x16xf32> to vector<2x8xf32>
    %87 = vector.shape_cast %86 : vector<2x8xf32> to vector<2x8x1xf32>
    %88 = tpu.reciprocal %87 {approx = true} : vector<2x8x1xf32> -> vector<2x8x1xf32>
    %89 = vector.broadcast %88 : vector<2x8x1xf32> to vector<2x8x16xf32>
    %90 = arith.mulf %85, %89 : vector<2x8x16xf32>
    "tpu.trace_start"() <{level = 10 : i32, message = "bqk,bkd->bqd"}> : () -> ()
    %cst_46 = arith.constant dense<0.000000e+00> : vector<2x8x64xf32>
    %91 = tpu.matmul %90, %75, %cst_46 {dimension_numbers = #tpu.dot_dimension_numbers<[2], [1], [1], [2], [0, 0, 0, 1, 1, 2], [0], [0]>} : vector<2x8x16xf32>, vector<2x16x64xf32>, vector<2x8x64xf32> -> vector<2x8x64xf32>
    "tpu.trace_stop"() : () -> ()
    %92 = vector.shape_cast %91 : vector<2x8x64xf32> to vector<16x64xf32>
    %cst_47 = arith.constant dense<0.000000e+00> : vector<16x64xf32>
    %93 = tpu.matmul %92, %12, %cst_47 {dimension_numbers = #tpu.dot_dimension_numbers<[1], [0], [0], [1], [0, 0, 1, 1], [], []>} : vector<16x64xf32>, vector<64x64xf32>, vector<16x64xf32> -> vector<16x64xf32>
    %94 = vector.broadcast %13 : vector<1x64xf32> to vector<16x64xf32>
    %95 = arith.addf %93, %94 : vector<16x64xf32>
    %96 = vector.shape_cast %95 : vector<16x64xf32> to vector<2x8x64xf32>
    %97 = arith.addf %1, %96 : vector<2x8x64xf32>
    %c0_48 = arith.constant 0 : index
    %c0_49 = arith.constant 0 : index
    %98 = vector.load %arg14[%c0_48, %c0_49] : memref<1x64xf32, #tpu.memory_space<vmem>>, vector<1x64xf32>
    %c0_50 = arith.constant 0 : index
    %c0_51 = arith.constant 0 : index
    %99 = vector.load %arg15[%c0_50, %c0_51] : memref<1x64xf32, #tpu.memory_space<vmem>>, vector<1x64xf32>
    %c0_52 = arith.constant 0 : index
    %c0_53 = arith.constant 0 : index
    %100 = vector.load %arg16[%c0_52, %c0_53] : memref<64x256xf32, #tpu.memory_space<vmem>>, vector<64x256xf32>
    %c0_54 = arith.constant 0 : index
    %c0_55 = arith.constant 0 : index
    %101 = vector.load %arg17[%c0_54, %c0_55] : memref<1x256xf32, #tpu.memory_space<vmem>>, vector<1x256xf32>
    %c0_56 = arith.constant 0 : index
    %c0_57 = arith.constant 0 : index
    %102 = vector.load %arg18[%c0_56, %c0_57] : memref<256x64xf32, #tpu.memory_space<vmem>>, vector<256x64xf32>
    %c0_58 = arith.constant 0 : index
    %c0_59 = arith.constant 0 : index
    %103 = vector.load %arg19[%c0_58, %c0_59] : memref<1x64xf32, #tpu.memory_space<vmem>>, vector<1x64xf32>
    %cst_60 = arith.constant dense<0.000000e+00> : vector<2x8xf32>
    %104 = vector.multi_reduction <add>, %97, %cst_60 [2] : vector<2x8x64xf32> to vector<2x8xf32>
    %105 = vector.shape_cast %104 : vector<2x8xf32> to vector<2x8x1xf32>
    %cst_61 = arith.constant 6.400000e+01 : f32
    %106 = vector.broadcast %cst_61 : f32 to vector<2x8x1xf32>
    %107 = arith.divf %105, %106 : vector<2x8x1xf32>
    %108 = vector.broadcast %107 : vector<2x8x1xf32> to vector<2x8x64xf32>
    %109 = arith.subf %97, %108 : vector<2x8x64xf32>
    %110 = arith.mulf %109, %109 : vector<2x8x64xf32>
    %cst_62 = arith.constant dense<0.000000e+00> : vector<2x8xf32>
    %111 = vector.multi_reduction <add>, %110, %cst_62 [2] : vector<2x8x64xf32> to vector<2x8xf32>
    %112 = vector.shape_cast %111 : vector<2x8xf32> to vector<2x8x1xf32>
    %cst_63 = arith.constant 6.400000e+01 : f32
    %113 = vector.broadcast %cst_63 : f32 to vector<2x8x1xf32>
    %114 = arith.divf %112, %113 : vector<2x8x1xf32>
    %115 = vector.broadcast %107 : vector<2x8x1xf32> to vector<2x8x64xf32>
    %116 = arith.subf %97, %115 : vector<2x8x64xf32>
    %cst_64 = arith.constant 9.99999974E-6 : f32
    %117 = vector.broadcast %cst_64 : f32 to vector<2x8x1xf32>
    %118 = arith.addf %114, %117 : vector<2x8x1xf32>
    %119 = math.rsqrt %118 : vector<2x8x1xf32>
    %120 = vector.broadcast %119 : vector<2x8x1xf32> to vector<2x8x64xf32>
    %121 = arith.mulf %116, %120 : vector<2x8x64xf32>
    %122 = vector.shape_cast %98 : vector<1x64xf32> to vector<1x1x64xf32>
    %123 = vector.broadcast %122 : vector<1x1x64xf32> to vector<2x8x64xf32>
    %124 = arith.mulf %121, %123 : vector<2x8x64xf32>
    %125 = vector.shape_cast %99 : vector<1x64xf32> to vector<1x1x64xf32>
    %126 = vector.broadcast %125 : vector<1x1x64xf32> to vector<2x8x64xf32>
    %127 = arith.addf %124, %126 : vector<2x8x64xf32>
    %128 = vector.shape_cast %127 : vector<2x8x64xf32> to vector<16x64xf32>
    %cst_65 = arith.constant dense<0.000000e+00> : vector<16x256xf32>
    %129 = tpu.matmul %128, %100, %cst_65 {dimension_numbers = #tpu.dot_dimension_numbers<[1], [0], [0], [1], [0, 0, 1, 1], [], []>} : vector<16x64xf32>, vector<64x256xf32>, vector<16x256xf32> -> vector<16x256xf32>
    %130 = vector.broadcast %101 : vector<1x256xf32> to vector<16x256xf32>
    %131 = arith.addf %129, %130 : vector<16x256xf32>
    %132 = arith.mulf %131, %131 : vector<16x256xf32>
    %133 = arith.mulf %131, %132 : vector<16x256xf32>
    %cst_66 = arith.constant 4.471500e-02 : f32
    %134 = vector.broadcast %cst_66 : f32 to vector<16x256xf32>
    %135 = arith.mulf %134, %133 : vector<16x256xf32>
    %136 = arith.addf %131, %135 : vector<16x256xf32>
    %cst_67 = arith.constant 0.797884583 : f32
    %137 = vector.broadcast %cst_67 : f32 to vector<16x256xf32>
    %138 = arith.mulf %137, %136 : vector<16x256xf32>
    %139 = math.tanh %138 : vector<16x256xf32>
    %cst_68 = arith.constant 1.000000e+00 : f32
    %140 = vector.broadcast %cst_68 : f32 to vector<16x256xf32>
    %141 = arith.addf %140, %139 : vector<16x256xf32>
    %cst_69 = arith.constant 5.000000e-01 : f32
    %142 = vector.broadcast %cst_69 : f32 to vector<16x256xf32>
    %143 = arith.mulf %142, %141 : vector<16x256xf32>
    %144 = arith.mulf %131, %143 : vector<16x256xf32>
    %cst_70 = arith.constant dense<0.000000e+00> : vector<16x64xf32>
    %145 = tpu.matmul %144, %102, %cst_70 {dimension_numbers = #tpu.dot_dimension_numbers<[1], [0], [0], [1], [0, 0, 1, 1], [], []>} : vector<16x256xf32>, vector<256x64xf32>, vector<16x64xf32> -> vector<16x64xf32>
    %146 = vector.broadcast %103 : vector<1x64xf32> to vector<16x64xf32>
    %147 = arith.addf %145, %146 : vector<16x64xf32>
    %148 = vector.shape_cast %147 : vector<16x64xf32> to vector<2x8x64xf32>
    %149 = arith.addf %97, %148 : vector<2x8x64xf32>
    %c0_71 = arith.constant 0 : index
    %c0_72 = arith.constant 0 : index
    %c0_73 = arith.constant 0 : index
    %150 = vector.load %arg20[%c0_71, %c0_72, %c0_73] : memref<2x1x64xf32, #tpu.memory_space<vmem>>, vector<1x1x64xf32>
    %151 = vector.shape_cast %150 : vector<1x1x64xf32> to vector<1x64xf32>
    %c0_74 = arith.constant 0 : index
    %c0_75 = arith.constant 0 : index
    %c0_76 = arith.constant 0 : index
    %152 = vector.load %arg21[%c0_74, %c0_75, %c0_76] : memref<2x1x64xf32, #tpu.memory_space<vmem>>, vector<1x1x64xf32>
    %153 = vector.shape_cast %152 : vector<1x1x64xf32> to vector<1x64xf32>
    %c0_77 = arith.constant 0 : index
    %c0_78 = arith.constant 0 : index
    %c0_79 = arith.constant 0 : index
    %154 = vector.load %arg22[%c0_77, %c0_78, %c0_79] : memref<2x1x64xf32, #tpu.memory_space<vmem>>, vector<1x1x64xf32>
    %155 = vector.shape_cast %154 : vector<1x1x64xf32> to vector<1x64xf32>
    %c0_80 = arith.constant 0 : index
    %c0_81 = arith.constant 0 : index
    %c0_82 = arith.constant 0 : index
    %156 = vector.load %arg23[%c0_80, %c0_81, %c0_82] : memref<2x1x64xf32, #tpu.memory_space<vmem>>, vector<1x1x64xf32>
    %157 = vector.shape_cast %156 : vector<1x1x64xf32> to vector<1x64xf32>
    %c0_83 = arith.constant 0 : index
    %c0_84 = arith.constant 0 : index
    %c0_85 = arith.constant 0 : index
    %158 = vector.load %arg24[%c0_83, %c0_84, %c0_85] : memref<2x64x64xf32, #tpu.memory_space<vmem>>, vector<1x64x64xf32>
    %159 = vector.shape_cast %158 : vector<1x64x64xf32> to vector<64x64xf32>
    %c0_86 = arith.constant 0 : index
    %c0_87 = arith.constant 0 : index
    %c0_88 = arith.constant 0 : index
    %160 = vector.load %arg25[%c0_86, %c0_87, %c0_88] : memref<2x1x64xf32, #tpu.memory_space<vmem>>, vector<1x1x64xf32>
    %161 = vector.shape_cast %160 : vector<1x1x64xf32> to vector<1x64xf32>
    %c0_89 = arith.constant 0 : index
    %c0_90 = arith.constant 0 : index
    %c0_91 = arith.constant 0 : index
    %162 = vector.load %arg26[%c0_89, %c0_90, %c0_91] : memref<2x64x64xf32, #tpu.memory_space<vmem>>, vector<1x64x64xf32>
    %163 = vector.shape_cast %162 : vector<1x64x64xf32> to vector<64x64xf32>
    %c0_92 = arith.constant 0 : index
    %c0_93 = arith.constant 0 : index
    %c0_94 = arith.constant 0 : index
    %164 = vector.load %arg27[%c0_92, %c0_93, %c0_94] : memref<2x1x64xf32, #tpu.memory_space<vmem>>, vector<1x1x64xf32>
    %165 = vector.shape_cast %164 : vector<1x1x64xf32> to vector<1x64xf32>
    %c0_95 = arith.constant 0 : index
    %c0_96 = arith.constant 0 : index
    %c0_97 = arith.constant 0 : index
    %166 = vector.load %arg28[%c0_95, %c0_96, %c0_97] : memref<2x64x64xf32, #tpu.memory_space<vmem>>, vector<1x64x64xf32>
    %167 = vector.shape_cast %166 : vector<1x64x64xf32> to vector<64x64xf32>
    %c0_98 = arith.constant 0 : index
    %c0_99 = arith.constant 0 : index
    %c0_100 = arith.constant 0 : index
    %168 = vector.load %arg29[%c0_98, %c0_99, %c0_100] : memref<2x1x64xf32, #tpu.memory_space<vmem>>, vector<1x1x64xf32>
    %169 = vector.shape_cast %168 : vector<1x1x64xf32> to vector<1x64xf32>
    %c0_101 = arith.constant 0 : index
    %c0_102 = arith.constant 0 : index
    %c0_103 = arith.constant 0 : index
    %170 = vector.load %arg30[%c0_101, %c0_102, %c0_103] : memref<2x64x64xf32, #tpu.memory_space<vmem>>, vector<1x64x64xf32>
    %171 = vector.shape_cast %170 : vector<1x64x64xf32> to vector<64x64xf32>
    %c0_104 = arith.constant 0 : index
    %c0_105 = arith.constant 0 : index
    %c0_106 = arith.constant 0 : index
    %172 = vector.load %arg31[%c0_104, %c0_105, %c0_106] : memref<2x1x64xf32, #tpu.memory_space<vmem>>, vector<1x1x64xf32>
    %173 = vector.shape_cast %172 : vector<1x1x64xf32> to vector<1x64xf32>
    %cst_107 = arith.constant dense<0.000000e+00> : vector<2x8xf32>
    %174 = vector.multi_reduction <add>, %149, %cst_107 [2] : vector<2x8x64xf32> to vector<2x8xf32>
    %175 = vector.shape_cast %174 : vector<2x8xf32> to vector<2x8x1xf32>
    %cst_108 = arith.constant 6.400000e+01 : f32
    %176 = vector.broadcast %cst_108 : f32 to vector<2x8x1xf32>
    %177 = arith.divf %175, %176 : vector<2x8x1xf32>
    %178 = vector.broadcast %177 : vector<2x8x1xf32> to vector<2x8x64xf32>
    %179 = arith.subf %149, %178 : vector<2x8x64xf32>
    %180 = arith.mulf %179, %179 : vector<2x8x64xf32>
    %cst_109 = arith.constant dense<0.000000e+00> : vector<2x8xf32>
    %181 = vector.multi_reduction <add>, %180, %cst_109 [2] : vector<2x8x64xf32> to vector<2x8xf32>
    %182 = vector.shape_cast %181 : vector<2x8xf32> to vector<2x8x1xf32>
    %cst_110 = arith.constant 6.400000e+01 : f32
    %183 = vector.broadcast %cst_110 : f32 to vector<2x8x1xf32>
    %184 = arith.divf %182, %183 : vector<2x8x1xf32>
    %185 = vector.broadcast %177 : vector<2x8x1xf32> to vector<2x8x64xf32>
    %186 = arith.subf %149, %185 : vector<2x8x64xf32>
    %cst_111 = arith.constant 9.99999974E-6 : f32
    %187 = vector.broadcast %cst_111 : f32 to vector<2x8x1xf32>
    %188 = arith.addf %184, %187 : vector<2x8x1xf32>
    %189 = math.rsqrt %188 : vector<2x8x1xf32>
    %190 = vector.broadcast %189 : vector<2x8x1xf32> to vector<2x8x64xf32>
    %191 = arith.mulf %186, %190 : vector<2x8x64xf32>
    %192 = vector.shape_cast %151 : vector<1x64xf32> to vector<1x1x64xf32>
    %193 = vector.broadcast %192 : vector<1x1x64xf32> to vector<2x8x64xf32>
    %194 = arith.mulf %191, %193 : vector<2x8x64xf32>
    %195 = vector.shape_cast %153 : vector<1x64xf32> to vector<1x1x64xf32>
    %196 = vector.broadcast %195 : vector<1x1x64xf32> to vector<2x8x64xf32>
    %197 = arith.addf %194, %196 : vector<2x8x64xf32>
    %cst_112 = arith.constant dense<0.000000e+00> : vector<2x8xf32>
    %198 = vector.multi_reduction <add>, %149, %cst_112 [2] : vector<2x8x64xf32> to vector<2x8xf32>
    %199 = vector.shape_cast %198 : vector<2x8xf32> to vector<2x8x1xf32>
    %cst_113 = arith.constant 6.400000e+01 : f32
    %200 = vector.broadcast %cst_113 : f32 to vector<2x8x1xf32>
    %201 = arith.divf %199, %200 : vector<2x8x1xf32>
    %202 = vector.broadcast %201 : vector<2x8x1xf32> to vector<2x8x64xf32>
    %203 = arith.subf %149, %202 : vector<2x8x64xf32>
    %204 = arith.mulf %203, %203 : vector<2x8x64xf32>
    %cst_114 = arith.constant dense<0.000000e+00> : vector<2x8xf32>
    %205 = vector.multi_reduction <add>, %204, %cst_114 [2] : vector<2x8x64xf32> to vector<2x8xf32>
    %206 = vector.shape_cast %205 : vector<2x8xf32> to vector<2x8x1xf32>
    %cst_115 = arith.constant 6.400000e+01 : f32
    %207 = vector.broadcast %cst_115 : f32 to vector<2x8x1xf32>
    %208 = arith.divf %206, %207 : vector<2x8x1xf32>
    %209 = vector.broadcast %201 : vector<2x8x1xf32> to vector<2x8x64xf32>
    %210 = arith.subf %149, %209 : vector<2x8x64xf32>
    %cst_116 = arith.constant 9.99999974E-6 : f32
    %211 = vector.broadcast %cst_116 : f32 to vector<2x8x1xf32>
    %212 = arith.addf %208, %211 : vector<2x8x1xf32>
    %213 = math.rsqrt %212 : vector<2x8x1xf32>
    %214 = vector.broadcast %213 : vector<2x8x1xf32> to vector<2x8x64xf32>
    %215 = arith.mulf %210, %214 : vector<2x8x64xf32>
    %216 = vector.shape_cast %155 : vector<1x64xf32> to vector<1x1x64xf32>
    %217 = vector.broadcast %216 : vector<1x1x64xf32> to vector<2x8x64xf32>
    %218 = arith.mulf %215, %217 : vector<2x8x64xf32>
    %219 = vector.shape_cast %157 : vector<1x64xf32> to vector<1x1x64xf32>
    %220 = vector.broadcast %219 : vector<1x1x64xf32> to vector<2x8x64xf32>
    %221 = arith.addf %218, %220 : vector<2x8x64xf32>
    %222 = vector.shape_cast %197 : vector<2x8x64xf32> to vector<16x64xf32>
    %223 = vector.shape_cast %221 : vector<2x8x64xf32> to vector<16x64xf32>
    %cst_117 = arith.constant dense<0.000000e+00> : vector<16x64xf32>
    %224 = tpu.matmul %222, %159, %cst_117 {dimension_numbers = #tpu.dot_dimension_numbers<[1], [0], [0], [1], [0, 0, 1, 1], [], []>} : vector<16x64xf32>, vector<64x64xf32>, vector<16x64xf32> -> vector<16x64xf32>
    %225 = vector.broadcast %161 : vector<1x64xf32> to vector<16x64xf32>
    %226 = arith.addf %224, %225 : vector<16x64xf32>
    %227 = vector.shape_cast %226 : vector<16x64xf32> to vector<2x8x64xf32>
    %cst_118 = arith.constant dense<0.000000e+00> : vector<16x64xf32>
    %228 = tpu.matmul %223, %163, %cst_118 {dimension_numbers = #tpu.dot_dimension_numbers<[1], [0], [0], [1], [0, 0, 1, 1], [], []>} : vector<16x64xf32>, vector<64x64xf32>, vector<16x64xf32> -> vector<16x64xf32>
    %229 = vector.broadcast %165 : vector<1x64xf32> to vector<16x64xf32>
    %230 = arith.addf %228, %229 : vector<16x64xf32>
    %231 = vector.shape_cast %230 : vector<16x64xf32> to vector<2x8x64xf32>
    %cst_119 = arith.constant dense<0.000000e+00> : vector<16x64xf32>
    %232 = tpu.matmul %223, %167, %cst_119 {dimension_numbers = #tpu.dot_dimension_numbers<[1], [0], [0], [1], [0, 0, 1, 1], [], []>} : vector<16x64xf32>, vector<64x64xf32>, vector<16x64xf32> -> vector<16x64xf32>
    %233 = vector.broadcast %169 : vector<1x64xf32> to vector<16x64xf32>
    %234 = arith.addf %232, %233 : vector<16x64xf32>
    %235 = vector.shape_cast %234 : vector<16x64xf32> to vector<2x8x64xf32>
    %cst_120 = arith.constant 6.400000e+01 : f32
    %236 = math.sqrt %cst_120 : f32
    %cst_121 = arith.constant 1.000000e+00 : f32
    %237 = arith.divf %cst_121, %236 : f32
    "tpu.trace_start"() <{level = 10 : i32, message = "bqd,bkd->bqk"}> : () -> ()
    %cst_122 = arith.constant dense<0.000000e+00> : vector<2x8x8xf32>
    %238 = tpu.matmul %227, %231, %cst_122 {dimension_numbers = #tpu.dot_dimension_numbers<[2], [2], [1], [1], [0, 0, 0, 1, 1, 1], [0], [0]>} : vector<2x8x64xf32>, vector<2x8x64xf32>, vector<2x8x8xf32> -> vector<2x8x8xf32>
    "tpu.trace_stop"() : () -> ()
    %239 = vector.broadcast %237 : f32 to vector<2x8x8xf32>
    %240 = arith.mulf %238, %239 : vector<2x8x8xf32>
    %cst_123 = arith.constant dense<0xFF800000> : vector<2x8xf32>
    %241 = vector.multi_reduction <maximumf>, %240, %cst_123 [2] : vector<2x8x8xf32> to vector<2x8xf32>
    %242 = vector.shape_cast %241 : vector<2x8xf32> to vector<2x8x1xf32>
    %243 = vector.broadcast %242 : vector<2x8x1xf32> to vector<2x8x8xf32>
    %244 = arith.subf %240, %243 : vector<2x8x8xf32>
    %245 = math.exp %244 : vector<2x8x8xf32>
    %cst_124 = arith.constant dense<0.000000e+00> : vector<2x8xf32>
    %246 = vector.multi_reduction <add>, %245, %cst_124 [2] : vector<2x8x8xf32> to vector<2x8xf32>
    %247 = vector.shape_cast %246 : vector<2x8xf32> to vector<2x8x1xf32>
    %248 = tpu.reciprocal %247 {approx = true} : vector<2x8x1xf32> -> vector<2x8x1xf32>
    %249 = vector.broadcast %248 : vector<2x8x1xf32> to vector<2x8x8xf32>
    %250 = arith.mulf %245, %249 : vector<2x8x8xf32>
    "tpu.trace_start"() <{level = 10 : i32, message = "bqk,bkd->bqd"}> : () -> ()
    %cst_125 = arith.constant dense<0.000000e+00> : vector<2x8x64xf32>
    %251 = tpu.matmul %250, %235, %cst_125 {dimension_numbers = #tpu.dot_dimension_numbers<[2], [1], [1], [2], [0, 0, 0, 1, 1, 2], [0], [0]>} : vector<2x8x8xf32>, vector<2x8x64xf32>, vector<2x8x64xf32> -> vector<2x8x64xf32>
    "tpu.trace_stop"() : () -> ()
    %252 = vector.shape_cast %251 : vector<2x8x64xf32> to vector<16x64xf32>
    %cst_126 = arith.constant dense<0.000000e+00> : vector<16x64xf32>
    %253 = tpu.matmul %252, %171, %cst_126 {dimension_numbers = #tpu.dot_dimension_numbers<[1], [0], [0], [1], [0, 0, 1, 1], [], []>} : vector<16x64xf32>, vector<64x64xf32>, vector<16x64xf32> -> vector<16x64xf32>
    %254 = vector.broadcast %173 : vector<1x64xf32> to vector<16x64xf32>
    %255 = arith.addf %253, %254 : vector<16x64xf32>
    %256 = vector.shape_cast %255 : vector<16x64xf32> to vector<2x8x64xf32>
    %257 = arith.addf %149, %256 : vector<2x8x64xf32>
    %c0_127 = arith.constant 0 : index
    %c0_128 = arith.constant 0 : index
    %c0_129 = arith.constant 0 : index
    %258 = vector.load %arg32[%c0_127, %c0_128, %c0_129] : memref<2x1x64xf32, #tpu.memory_space<vmem>>, vector<1x1x64xf32>
    %259 = vector.shape_cast %258 : vector<1x1x64xf32> to vector<1x64xf32>
    %c0_130 = arith.constant 0 : index
    %c0_131 = arith.constant 0 : index
    %c0_132 = arith.constant 0 : index
    %260 = vector.load %arg33[%c0_130, %c0_131, %c0_132] : memref<2x1x64xf32, #tpu.memory_space<vmem>>, vector<1x1x64xf32>
    %261 = vector.shape_cast %260 : vector<1x1x64xf32> to vector<1x64xf32>
    %c0_133 = arith.constant 0 : index
    %c0_134 = arith.constant 0 : index
    %c0_135 = arith.constant 0 : index
    %262 = vector.load %arg34[%c0_133, %c0_134, %c0_135] : memref<2x64x256xf32, #tpu.memory_space<vmem>>, vector<1x64x256xf32>
    %263 = vector.shape_cast %262 : vector<1x64x256xf32> to vector<64x256xf32>
    %c0_136 = arith.constant 0 : index
    %c0_137 = arith.constant 0 : index
    %c0_138 = arith.constant 0 : index
    %264 = vector.load %arg35[%c0_136, %c0_137, %c0_138] : memref<2x1x256xf32, #tpu.memory_space<vmem>>, vector<1x1x256xf32>
    %265 = vector.shape_cast %264 : vector<1x1x256xf32> to vector<1x256xf32>
    %c0_139 = arith.constant 0 : index
    %c0_140 = arith.constant 0 : index
    %c0_141 = arith.constant 0 : index
    %266 = vector.load %arg36[%c0_139, %c0_140, %c0_141] : memref<2x256x64xf32, #tpu.memory_space<vmem>>, vector<1x256x64xf32>
    %267 = vector.shape_cast %266 : vector<1x256x64xf32> to vector<256x64xf32>
    %c0_142 = arith.constant 0 : index
    %c0_143 = arith.constant 0 : index
    %c0_144 = arith.constant 0 : index
    %268 = vector.load %arg37[%c0_142, %c0_143, %c0_144] : memref<2x1x64xf32, #tpu.memory_space<vmem>>, vector<1x1x64xf32>
    %269 = vector.shape_cast %268 : vector<1x1x64xf32> to vector<1x64xf32>
    %cst_145 = arith.constant dense<0.000000e+00> : vector<2x8xf32>
    %270 = vector.multi_reduction <add>, %257, %cst_145 [2] : vector<2x8x64xf32> to vector<2x8xf32>
    %271 = vector.shape_cast %270 : vector<2x8xf32> to vector<2x8x1xf32>
    %cst_146 = arith.constant 6.400000e+01 : f32
    %272 = vector.broadcast %cst_146 : f32 to vector<2x8x1xf32>
    %273 = arith.divf %271, %272 : vector<2x8x1xf32>
    %274 = vector.broadcast %273 : vector<2x8x1xf32> to vector<2x8x64xf32>
    %275 = arith.subf %257, %274 : vector<2x8x64xf32>
    %276 = arith.mulf %275, %275 : vector<2x8x64xf32>
    %cst_147 = arith.constant dense<0.000000e+00> : vector<2x8xf32>
    %277 = vector.multi_reduction <add>, %276, %cst_147 [2] : vector<2x8x64xf32> to vector<2x8xf32>
    %278 = vector.shape_cast %277 : vector<2x8xf32> to vector<2x8x1xf32>
    %cst_148 = arith.constant 6.400000e+01 : f32
    %279 = vector.broadcast %cst_148 : f32 to vector<2x8x1xf32>
    %280 = arith.divf %278, %279 : vector<2x8x1xf32>
    %281 = vector.broadcast %273 : vector<2x8x1xf32> to vector<2x8x64xf32>
    %282 = arith.subf %257, %281 : vector<2x8x64xf32>
    %cst_149 = arith.constant 9.99999974E-6 : f32
    %283 = vector.broadcast %cst_149 : f32 to vector<2x8x1xf32>
    %284 = arith.addf %280, %283 : vector<2x8x1xf32>
    %285 = math.rsqrt %284 : vector<2x8x1xf32>
    %286 = vector.broadcast %285 : vector<2x8x1xf32> to vector<2x8x64xf32>
    %287 = arith.mulf %282, %286 : vector<2x8x64xf32>
    %288 = vector.shape_cast %259 : vector<1x64xf32> to vector<1x1x64xf32>
    %289 = vector.broadcast %288 : vector<1x1x64xf32> to vector<2x8x64xf32>
    %290 = arith.mulf %287, %289 : vector<2x8x64xf32>
    %291 = vector.shape_cast %261 : vector<1x64xf32> to vector<1x1x64xf32>
    %292 = vector.broadcast %291 : vector<1x1x64xf32> to vector<2x8x64xf32>
    %293 = arith.addf %290, %292 : vector<2x8x64xf32>
    %294 = vector.shape_cast %293 : vector<2x8x64xf32> to vector<16x64xf32>
    %cst_150 = arith.constant dense<0.000000e+00> : vector<16x256xf32>
    %295 = tpu.matmul %294, %263, %cst_150 {dimension_numbers = #tpu.dot_dimension_numbers<[1], [0], [0], [1], [0, 0, 1, 1], [], []>} : vector<16x64xf32>, vector<64x256xf32>, vector<16x256xf32> -> vector<16x256xf32>
    %296 = vector.broadcast %265 : vector<1x256xf32> to vector<16x256xf32>
    %297 = arith.addf %295, %296 : vector<16x256xf32>
    %298 = arith.mulf %297, %297 : vector<16x256xf32>
    %299 = arith.mulf %297, %298 : vector<16x256xf32>
    %cst_151 = arith.constant 4.471500e-02 : f32
    %300 = vector.broadcast %cst_151 : f32 to vector<16x256xf32>
    %301 = arith.mulf %300, %299 : vector<16x256xf32>
    %302 = arith.addf %297, %301 : vector<16x256xf32>
    %cst_152 = arith.constant 0.797884583 : f32
    %303 = vector.broadcast %cst_152 : f32 to vector<16x256xf32>
    %304 = arith.mulf %303, %302 : vector<16x256xf32>
    %305 = math.tanh %304 : vector<16x256xf32>
    %cst_153 = arith.constant 1.000000e+00 : f32
    %306 = vector.broadcast %cst_153 : f32 to vector<16x256xf32>
    %307 = arith.addf %306, %305 : vector<16x256xf32>
    %cst_154 = arith.constant 5.000000e-01 : f32
    %308 = vector.broadcast %cst_154 : f32 to vector<16x256xf32>
    %309 = arith.mulf %308, %307 : vector<16x256xf32>
    %310 = arith.mulf %297, %309 : vector<16x256xf32>
    %cst_155 = arith.constant dense<0.000000e+00> : vector<16x64xf32>
    %311 = tpu.matmul %310, %267, %cst_155 {dimension_numbers = #tpu.dot_dimension_numbers<[1], [0], [0], [1], [0, 0, 1, 1], [], []>} : vector<16x256xf32>, vector<256x64xf32>, vector<16x64xf32> -> vector<16x64xf32>
    %312 = vector.broadcast %269 : vector<1x64xf32> to vector<16x64xf32>
    %313 = arith.addf %311, %312 : vector<16x64xf32>
    %314 = vector.shape_cast %313 : vector<16x64xf32> to vector<2x8x64xf32>
    %315 = arith.addf %257, %314 : vector<2x8x64xf32>
    %c1 = arith.constant 1 : index
    %c0_156 = arith.constant 0 : index
    %c0_157 = arith.constant 0 : index
    %316 = vector.load %arg20[%c1, %c0_156, %c0_157] : memref<2x1x64xf32, #tpu.memory_space<vmem>>, vector<1x1x64xf32>
    %317 = vector.shape_cast %316 : vector<1x1x64xf32> to vector<1x64xf32>
    %c1_158 = arith.constant 1 : index
    %c0_159 = arith.constant 0 : index
    %c0_160 = arith.constant 0 : index
    %318 = vector.load %arg21[%c1_158, %c0_159, %c0_160] : memref<2x1x64xf32, #tpu.memory_space<vmem>>, vector<1x1x64xf32>
    %319 = vector.shape_cast %318 : vector<1x1x64xf32> to vector<1x64xf32>
    %c1_161 = arith.constant 1 : index
    %c0_162 = arith.constant 0 : index
    %c0_163 = arith.constant 0 : index
    %320 = vector.load %arg22[%c1_161, %c0_162, %c0_163] : memref<2x1x64xf32, #tpu.memory_space<vmem>>, vector<1x1x64xf32>
    %321 = vector.shape_cast %320 : vector<1x1x64xf32> to vector<1x64xf32>
    %c1_164 = arith.constant 1 : index
    %c0_165 = arith.constant 0 : index
    %c0_166 = arith.constant 0 : index
    %322 = vector.load %arg23[%c1_164, %c0_165, %c0_166] : memref<2x1x64xf32, #tpu.memory_space<vmem>>, vector<1x1x64xf32>
    %323 = vector.shape_cast %322 : vector<1x1x64xf32> to vector<1x64xf32>
    %c1_167 = arith.constant 1 : index
    %c0_168 = arith.constant 0 : index
    %c0_169 = arith.constant 0 : index
    %324 = vector.load %arg24[%c1_167, %c0_168, %c0_169] : memref<2x64x64xf32, #tpu.memory_space<vmem>>, vector<1x64x64xf32>
    %325 = vector.shape_cast %324 : vector<1x64x64xf32> to vector<64x64xf32>
    %c1_170 = arith.constant 1 : index
    %c0_171 = arith.constant 0 : index
    %c0_172 = arith.constant 0 : index
    %326 = vector.load %arg25[%c1_170, %c0_171, %c0_172] : memref<2x1x64xf32, #tpu.memory_space<vmem>>, vector<1x1x64xf32>
    %327 = vector.shape_cast %326 : vector<1x1x64xf32> to vector<1x64xf32>
    %c1_173 = arith.constant 1 : index
    %c0_174 = arith.constant 0 : index
    %c0_175 = arith.constant 0 : index
    %328 = vector.load %arg26[%c1_173, %c0_174, %c0_175] : memref<2x64x64xf32, #tpu.memory_space<vmem>>, vector<1x64x64xf32>
    %329 = vector.shape_cast %328 : vector<1x64x64xf32> to vector<64x64xf32>
    %c1_176 = arith.constant 1 : index
    %c0_177 = arith.constant 0 : index
    %c0_178 = arith.constant 0 : index
    %330 = vector.load %arg27[%c1_176, %c0_177, %c0_178] : memref<2x1x64xf32, #tpu.memory_space<vmem>>, vector<1x1x64xf32>
    %331 = vector.shape_cast %330 : vector<1x1x64xf32> to vector<1x64xf32>
    %c1_179 = arith.constant 1 : index
    %c0_180 = arith.constant 0 : index
    %c0_181 = arith.constant 0 : index
    %332 = vector.load %arg28[%c1_179, %c0_180, %c0_181] : memref<2x64x64xf32, #tpu.memory_space<vmem>>, vector<1x64x64xf32>
    %333 = vector.shape_cast %332 : vector<1x64x64xf32> to vector<64x64xf32>
    %c1_182 = arith.constant 1 : index
    %c0_183 = arith.constant 0 : index
    %c0_184 = arith.constant 0 : index
    %334 = vector.load %arg29[%c1_182, %c0_183, %c0_184] : memref<2x1x64xf32, #tpu.memory_space<vmem>>, vector<1x1x64xf32>
    %335 = vector.shape_cast %334 : vector<1x1x64xf32> to vector<1x64xf32>
    %c1_185 = arith.constant 1 : index
    %c0_186 = arith.constant 0 : index
    %c0_187 = arith.constant 0 : index
    %336 = vector.load %arg30[%c1_185, %c0_186, %c0_187] : memref<2x64x64xf32, #tpu.memory_space<vmem>>, vector<1x64x64xf32>
    %337 = vector.shape_cast %336 : vector<1x64x64xf32> to vector<64x64xf32>
    %c1_188 = arith.constant 1 : index
    %c0_189 = arith.constant 0 : index
    %c0_190 = arith.constant 0 : index
    %338 = vector.load %arg31[%c1_188, %c0_189, %c0_190] : memref<2x1x64xf32, #tpu.memory_space<vmem>>, vector<1x1x64xf32>
    %339 = vector.shape_cast %338 : vector<1x1x64xf32> to vector<1x64xf32>
    %cst_191 = arith.constant dense<0.000000e+00> : vector<2x8xf32>
    %340 = vector.multi_reduction <add>, %315, %cst_191 [2] : vector<2x8x64xf32> to vector<2x8xf32>
    %341 = vector.shape_cast %340 : vector<2x8xf32> to vector<2x8x1xf32>
    %cst_192 = arith.constant 6.400000e+01 : f32
    %342 = vector.broadcast %cst_192 : f32 to vector<2x8x1xf32>
    %343 = arith.divf %341, %342 : vector<2x8x1xf32>
    %344 = vector.broadcast %343 : vector<2x8x1xf32> to vector<2x8x64xf32>
    %345 = arith.subf %315, %344 : vector<2x8x64xf32>
    %346 = arith.mulf %345, %345 : vector<2x8x64xf32>
    %cst_193 = arith.constant dense<0.000000e+00> : vector<2x8xf32>
    %347 = vector.multi_reduction <add>, %346, %cst_193 [2] : vector<2x8x64xf32> to vector<2x8xf32>
    %348 = vector.shape_cast %347 : vector<2x8xf32> to vector<2x8x1xf32>
    %cst_194 = arith.constant 6.400000e+01 : f32
    %349 = vector.broadcast %cst_194 : f32 to vector<2x8x1xf32>
    %350 = arith.divf %348, %349 : vector<2x8x1xf32>
    %351 = vector.broadcast %343 : vector<2x8x1xf32> to vector<2x8x64xf32>
    %352 = arith.subf %315, %351 : vector<2x8x64xf32>
    %cst_195 = arith.constant 9.99999974E-6 : f32
    %353 = vector.broadcast %cst_195 : f32 to vector<2x8x1xf32>
    %354 = arith.addf %350, %353 : vector<2x8x1xf32>
    %355 = math.rsqrt %354 : vector<2x8x1xf32>
    %356 = vector.broadcast %355 : vector<2x8x1xf32> to vector<2x8x64xf32>
    %357 = arith.mulf %352, %356 : vector<2x8x64xf32>
    %358 = vector.shape_cast %317 : vector<1x64xf32> to vector<1x1x64xf32>
    %359 = vector.broadcast %358 : vector<1x1x64xf32> to vector<2x8x64xf32>
    %360 = arith.mulf %357, %359 : vector<2x8x64xf32>
    %361 = vector.shape_cast %319 : vector<1x64xf32> to vector<1x1x64xf32>
    %362 = vector.broadcast %361 : vector<1x1x64xf32> to vector<2x8x64xf32>
    %363 = arith.addf %360, %362 : vector<2x8x64xf32>
    %cst_196 = arith.constant dense<0.000000e+00> : vector<2x8xf32>
    %364 = vector.multi_reduction <add>, %315, %cst_196 [2] : vector<2x8x64xf32> to vector<2x8xf32>
    %365 = vector.shape_cast %364 : vector<2x8xf32> to vector<2x8x1xf32>
    %cst_197 = arith.constant 6.400000e+01 : f32
    %366 = vector.broadcast %cst_197 : f32 to vector<2x8x1xf32>
    %367 = arith.divf %365, %366 : vector<2x8x1xf32>
    %368 = vector.broadcast %367 : vector<2x8x1xf32> to vector<2x8x64xf32>
    %369 = arith.subf %315, %368 : vector<2x8x64xf32>
    %370 = arith.mulf %369, %369 : vector<2x8x64xf32>
    %cst_198 = arith.constant dense<0.000000e+00> : vector<2x8xf32>
    %371 = vector.multi_reduction <add>, %370, %cst_198 [2] : vector<2x8x64xf32> to vector<2x8xf32>
    %372 = vector.shape_cast %371 : vector<2x8xf32> to vector<2x8x1xf32>
    %cst_199 = arith.constant 6.400000e+01 : f32
    %373 = vector.broadcast %cst_199 : f32 to vector<2x8x1xf32>
    %374 = arith.divf %372, %373 : vector<2x8x1xf32>
    %375 = vector.broadcast %367 : vector<2x8x1xf32> to vector<2x8x64xf32>
    %376 = arith.subf %315, %375 : vector<2x8x64xf32>
    %cst_200 = arith.constant 9.99999974E-6 : f32
    %377 = vector.broadcast %cst_200 : f32 to vector<2x8x1xf32>
    %378 = arith.addf %374, %377 : vector<2x8x1xf32>
    %379 = math.rsqrt %378 : vector<2x8x1xf32>
    %380 = vector.broadcast %379 : vector<2x8x1xf32> to vector<2x8x64xf32>
    %381 = arith.mulf %376, %380 : vector<2x8x64xf32>
    %382 = vector.shape_cast %321 : vector<1x64xf32> to vector<1x1x64xf32>
    %383 = vector.broadcast %382 : vector<1x1x64xf32> to vector<2x8x64xf32>
    %384 = arith.mulf %381, %383 : vector<2x8x64xf32>
    %385 = vector.shape_cast %323 : vector<1x64xf32> to vector<1x1x64xf32>
    %386 = vector.broadcast %385 : vector<1x1x64xf32> to vector<2x8x64xf32>
    %387 = arith.addf %384, %386 : vector<2x8x64xf32>
    %388 = vector.shape_cast %363 : vector<2x8x64xf32> to vector<16x64xf32>
    %389 = vector.shape_cast %387 : vector<2x8x64xf32> to vector<16x64xf32>
    %cst_201 = arith.constant dense<0.000000e+00> : vector<16x64xf32>
    %390 = tpu.matmul %388, %325, %cst_201 {dimension_numbers = #tpu.dot_dimension_numbers<[1], [0], [0], [1], [0, 0, 1, 1], [], []>} : vector<16x64xf32>, vector<64x64xf32>, vector<16x64xf32> -> vector<16x64xf32>
    %391 = vector.broadcast %327 : vector<1x64xf32> to vector<16x64xf32>
    %392 = arith.addf %390, %391 : vector<16x64xf32>
    %393 = vector.shape_cast %392 : vector<16x64xf32> to vector<2x8x64xf32>
    %cst_202 = arith.constant dense<0.000000e+00> : vector<16x64xf32>
    %394 = tpu.matmul %389, %329, %cst_202 {dimension_numbers = #tpu.dot_dimension_numbers<[1], [0], [0], [1], [0, 0, 1, 1], [], []>} : vector<16x64xf32>, vector<64x64xf32>, vector<16x64xf32> -> vector<16x64xf32>
    %395 = vector.broadcast %331 : vector<1x64xf32> to vector<16x64xf32>
    %396 = arith.addf %394, %395 : vector<16x64xf32>
    %397 = vector.shape_cast %396 : vector<16x64xf32> to vector<2x8x64xf32>
    %cst_203 = arith.constant dense<0.000000e+00> : vector<16x64xf32>
    %398 = tpu.matmul %389, %333, %cst_203 {dimension_numbers = #tpu.dot_dimension_numbers<[1], [0], [0], [1], [0, 0, 1, 1], [], []>} : vector<16x64xf32>, vector<64x64xf32>, vector<16x64xf32> -> vector<16x64xf32>
    %399 = vector.broadcast %335 : vector<1x64xf32> to vector<16x64xf32>
    %400 = arith.addf %398, %399 : vector<16x64xf32>
    %401 = vector.shape_cast %400 : vector<16x64xf32> to vector<2x8x64xf32>
    %cst_204 = arith.constant 6.400000e+01 : f32
    %402 = math.sqrt %cst_204 : f32
    %cst_205 = arith.constant 1.000000e+00 : f32
    %403 = arith.divf %cst_205, %402 : f32
    "tpu.trace_start"() <{level = 10 : i32, message = "bqd,bkd->bqk"}> : () -> ()
    %cst_206 = arith.constant dense<0.000000e+00> : vector<2x8x8xf32>
    %404 = tpu.matmul %393, %397, %cst_206 {dimension_numbers = #tpu.dot_dimension_numbers<[2], [2], [1], [1], [0, 0, 0, 1, 1, 1], [0], [0]>} : vector<2x8x64xf32>, vector<2x8x64xf32>, vector<2x8x8xf32> -> vector<2x8x8xf32>
    "tpu.trace_stop"() : () -> ()
    %405 = vector.broadcast %403 : f32 to vector<2x8x8xf32>
    %406 = arith.mulf %404, %405 : vector<2x8x8xf32>
    %cst_207 = arith.constant dense<0xFF800000> : vector<2x8xf32>
    %407 = vector.multi_reduction <maximumf>, %406, %cst_207 [2] : vector<2x8x8xf32> to vector<2x8xf32>
    %408 = vector.shape_cast %407 : vector<2x8xf32> to vector<2x8x1xf32>
    %409 = vector.broadcast %408 : vector<2x8x1xf32> to vector<2x8x8xf32>
    %410 = arith.subf %406, %409 : vector<2x8x8xf32>
    %411 = math.exp %410 : vector<2x8x8xf32>
    %cst_208 = arith.constant dense<0.000000e+00> : vector<2x8xf32>
    %412 = vector.multi_reduction <add>, %411, %cst_208 [2] : vector<2x8x8xf32> to vector<2x8xf32>
    %413 = vector.shape_cast %412 : vector<2x8xf32> to vector<2x8x1xf32>
    %414 = tpu.reciprocal %413 {approx = true} : vector<2x8x1xf32> -> vector<2x8x1xf32>
    %415 = vector.broadcast %414 : vector<2x8x1xf32> to vector<2x8x8xf32>
    %416 = arith.mulf %411, %415 : vector<2x8x8xf32>
    "tpu.trace_start"() <{level = 10 : i32, message = "bqk,bkd->bqd"}> : () -> ()
    %cst_209 = arith.constant dense<0.000000e+00> : vector<2x8x64xf32>
    %417 = tpu.matmul %416, %401, %cst_209 {dimension_numbers = #tpu.dot_dimension_numbers<[2], [1], [1], [2], [0, 0, 0, 1, 1, 2], [0], [0]>} : vector<2x8x8xf32>, vector<2x8x64xf32>, vector<2x8x64xf32> -> vector<2x8x64xf32>
    "tpu.trace_stop"() : () -> ()
    %418 = vector.shape_cast %417 : vector<2x8x64xf32> to vector<16x64xf32>
    %cst_210 = arith.constant dense<0.000000e+00> : vector<16x64xf32>
    %419 = tpu.matmul %418, %337, %cst_210 {dimension_numbers = #tpu.dot_dimension_numbers<[1], [0], [0], [1], [0, 0, 1, 1], [], []>} : vector<16x64xf32>, vector<64x64xf32>, vector<16x64xf32> -> vector<16x64xf32>
    %420 = vector.broadcast %339 : vector<1x64xf32> to vector<16x64xf32>
    %421 = arith.addf %419, %420 : vector<16x64xf32>
    %422 = vector.shape_cast %421 : vector<16x64xf32> to vector<2x8x64xf32>
    %423 = arith.addf %315, %422 : vector<2x8x64xf32>
    %c1_211 = arith.constant 1 : index
    %c0_212 = arith.constant 0 : index
    %c0_213 = arith.constant 0 : index
    %424 = vector.load %arg32[%c1_211, %c0_212, %c0_213] : memref<2x1x64xf32, #tpu.memory_space<vmem>>, vector<1x1x64xf32>
    %425 = vector.shape_cast %424 : vector<1x1x64xf32> to vector<1x64xf32>
    %c1_214 = arith.constant 1 : index
    %c0_215 = arith.constant 0 : index
    %c0_216 = arith.constant 0 : index
    %426 = vector.load %arg33[%c1_214, %c0_215, %c0_216] : memref<2x1x64xf32, #tpu.memory_space<vmem>>, vector<1x1x64xf32>
    %427 = vector.shape_cast %426 : vector<1x1x64xf32> to vector<1x64xf32>
    %c1_217 = arith.constant 1 : index
    %c0_218 = arith.constant 0 : index
    %c0_219 = arith.constant 0 : index
    %428 = vector.load %arg34[%c1_217, %c0_218, %c0_219] : memref<2x64x256xf32, #tpu.memory_space<vmem>>, vector<1x64x256xf32>
    %429 = vector.shape_cast %428 : vector<1x64x256xf32> to vector<64x256xf32>
    %c1_220 = arith.constant 1 : index
    %c0_221 = arith.constant 0 : index
    %c0_222 = arith.constant 0 : index
    %430 = vector.load %arg35[%c1_220, %c0_221, %c0_222] : memref<2x1x256xf32, #tpu.memory_space<vmem>>, vector<1x1x256xf32>
    %431 = vector.shape_cast %430 : vector<1x1x256xf32> to vector<1x256xf32>
    %c1_223 = arith.constant 1 : index
    %c0_224 = arith.constant 0 : index
    %c0_225 = arith.constant 0 : index
    %432 = vector.load %arg36[%c1_223, %c0_224, %c0_225] : memref<2x256x64xf32, #tpu.memory_space<vmem>>, vector<1x256x64xf32>
    %433 = vector.shape_cast %432 : vector<1x256x64xf32> to vector<256x64xf32>
    %c1_226 = arith.constant 1 : index
    %c0_227 = arith.constant 0 : index
    %c0_228 = arith.constant 0 : index
    %434 = vector.load %arg37[%c1_226, %c0_227, %c0_228] : memref<2x1x64xf32, #tpu.memory_space<vmem>>, vector<1x1x64xf32>
    %435 = vector.shape_cast %434 : vector<1x1x64xf32> to vector<1x64xf32>
    %cst_229 = arith.constant dense<0.000000e+00> : vector<2x8xf32>
    %436 = vector.multi_reduction <add>, %423, %cst_229 [2] : vector<2x8x64xf32> to vector<2x8xf32>
    %437 = vector.shape_cast %436 : vector<2x8xf32> to vector<2x8x1xf32>
    %cst_230 = arith.constant 6.400000e+01 : f32
    %438 = vector.broadcast %cst_230 : f32 to vector<2x8x1xf32>
    %439 = arith.divf %437, %438 : vector<2x8x1xf32>
    %440 = vector.broadcast %439 : vector<2x8x1xf32> to vector<2x8x64xf32>
    %441 = arith.subf %423, %440 : vector<2x8x64xf32>
    %442 = arith.mulf %441, %441 : vector<2x8x64xf32>
    %cst_231 = arith.constant dense<0.000000e+00> : vector<2x8xf32>
    %443 = vector.multi_reduction <add>, %442, %cst_231 [2] : vector<2x8x64xf32> to vector<2x8xf32>
    %444 = vector.shape_cast %443 : vector<2x8xf32> to vector<2x8x1xf32>
    %cst_232 = arith.constant 6.400000e+01 : f32
    %445 = vector.broadcast %cst_232 : f32 to vector<2x8x1xf32>
    %446 = arith.divf %444, %445 : vector<2x8x1xf32>
    %447 = vector.broadcast %439 : vector<2x8x1xf32> to vector<2x8x64xf32>
    %448 = arith.subf %423, %447 : vector<2x8x64xf32>
    %cst_233 = arith.constant 9.99999974E-6 : f32
    %449 = vector.broadcast %cst_233 : f32 to vector<2x8x1xf32>
    %450 = arith.addf %446, %449 : vector<2x8x1xf32>
    %451 = math.rsqrt %450 : vector<2x8x1xf32>
    %452 = vector.broadcast %451 : vector<2x8x1xf32> to vector<2x8x64xf32>
    %453 = arith.mulf %448, %452 : vector<2x8x64xf32>
    %454 = vector.shape_cast %425 : vector<1x64xf32> to vector<1x1x64xf32>
    %455 = vector.broadcast %454 : vector<1x1x64xf32> to vector<2x8x64xf32>
    %456 = arith.mulf %453, %455 : vector<2x8x64xf32>
    %457 = vector.shape_cast %427 : vector<1x64xf32> to vector<1x1x64xf32>
    %458 = vector.broadcast %457 : vector<1x1x64xf32> to vector<2x8x64xf32>
    %459 = arith.addf %456, %458 : vector<2x8x64xf32>
    %460 = vector.shape_cast %459 : vector<2x8x64xf32> to vector<16x64xf32>
    %cst_234 = arith.constant dense<0.000000e+00> : vector<16x256xf32>
    %461 = tpu.matmul %460, %429, %cst_234 {dimension_numbers = #tpu.dot_dimension_numbers<[1], [0], [0], [1], [0, 0, 1, 1], [], []>} : vector<16x64xf32>, vector<64x256xf32>, vector<16x256xf32> -> vector<16x256xf32>
    %462 = vector.broadcast %431 : vector<1x256xf32> to vector<16x256xf32>
    %463 = arith.addf %461, %462 : vector<16x256xf32>
    %464 = arith.mulf %463, %463 : vector<16x256xf32>
    %465 = arith.mulf %463, %464 : vector<16x256xf32>
    %cst_235 = arith.constant 4.471500e-02 : f32
    %466 = vector.broadcast %cst_235 : f32 to vector<16x256xf32>
    %467 = arith.mulf %466, %465 : vector<16x256xf32>
    %468 = arith.addf %463, %467 : vector<16x256xf32>
    %cst_236 = arith.constant 0.797884583 : f32
    %469 = vector.broadcast %cst_236 : f32 to vector<16x256xf32>
    %470 = arith.mulf %469, %468 : vector<16x256xf32>
    %471 = math.tanh %470 : vector<16x256xf32>
    %cst_237 = arith.constant 1.000000e+00 : f32
    %472 = vector.broadcast %cst_237 : f32 to vector<16x256xf32>
    %473 = arith.addf %472, %471 : vector<16x256xf32>
    %cst_238 = arith.constant 5.000000e-01 : f32
    %474 = vector.broadcast %cst_238 : f32 to vector<16x256xf32>
    %475 = arith.mulf %474, %473 : vector<16x256xf32>
    %476 = arith.mulf %463, %475 : vector<16x256xf32>
    %cst_239 = arith.constant dense<0.000000e+00> : vector<16x64xf32>
    %477 = tpu.matmul %476, %433, %cst_239 {dimension_numbers = #tpu.dot_dimension_numbers<[1], [0], [0], [1], [0, 0, 1, 1], [], []>} : vector<16x256xf32>, vector<256x64xf32>, vector<16x64xf32> -> vector<16x64xf32>
    %478 = vector.broadcast %435 : vector<1x64xf32> to vector<16x64xf32>
    %479 = arith.addf %477, %478 : vector<16x64xf32>
    %480 = vector.shape_cast %479 : vector<16x64xf32> to vector<2x8x64xf32>
    %481 = arith.addf %423, %480 : vector<2x8x64xf32>
    %c0_240 = arith.constant 0 : index
    %c0_241 = arith.constant 0 : index
    %482 = vector.load %arg38[%c0_240, %c0_241] : memref<1x32xf32, #tpu.memory_space<vmem>>, vector<1x32xf32>
    %c0_242 = arith.constant 0 : index
    %c0_243 = arith.constant 0 : index
    %483 = vector.load %arg39[%c0_242, %c0_243] : memref<1x32xf32, #tpu.memory_space<vmem>>, vector<1x32xf32>
    %c0_244 = arith.constant 0 : index
    %c0_245 = arith.constant 0 : index
    %484 = vector.load %arg40[%c0_244, %c0_245] : memref<1x64xf32, #tpu.memory_space<vmem>>, vector<1x64xf32>
    %c0_246 = arith.constant 0 : index
    %c0_247 = arith.constant 0 : index
    %485 = vector.load %arg41[%c0_246, %c0_247] : memref<1x64xf32, #tpu.memory_space<vmem>>, vector<1x64xf32>
    %c0_248 = arith.constant 0 : index
    %c0_249 = arith.constant 0 : index
    %486 = vector.load %arg42[%c0_248, %c0_249] : memref<32x32xf32, #tpu.memory_space<vmem>>, vector<32x32xf32>
    %c0_250 = arith.constant 0 : index
    %c0_251 = arith.constant 0 : index
    %487 = vector.load %arg43[%c0_250, %c0_251] : memref<1x32xf32, #tpu.memory_space<vmem>>, vector<1x32xf32>
    %c0_252 = arith.constant 0 : index
    %c0_253 = arith.constant 0 : index
    %488 = vector.load %arg44[%c0_252, %c0_253] : memref<64x32xf32, #tpu.memory_space<vmem>>, vector<64x32xf32>
    %c0_254 = arith.constant 0 : index
    %c0_255 = arith.constant 0 : index
    %489 = vector.load %arg45[%c0_254, %c0_255] : memref<1x32xf32, #tpu.memory_space<vmem>>, vector<1x32xf32>
    %c0_256 = arith.constant 0 : index
    %c0_257 = arith.constant 0 : index
    %490 = vector.load %arg46[%c0_256, %c0_257] : memref<64x32xf32, #tpu.memory_space<vmem>>, vector<64x32xf32>
    %c0_258 = arith.constant 0 : index
    %c0_259 = arith.constant 0 : index
    %491 = vector.load %arg47[%c0_258, %c0_259] : memref<1x32xf32, #tpu.memory_space<vmem>>, vector<1x32xf32>
    %c0_260 = arith.constant 0 : index
    %c0_261 = arith.constant 0 : index
    %492 = vector.load %arg48[%c0_260, %c0_261] : memref<32x32xf32, #tpu.memory_space<vmem>>, vector<32x32xf32>
    %c0_262 = arith.constant 0 : index
    %c0_263 = arith.constant 0 : index
    %493 = vector.load %arg49[%c0_262, %c0_263] : memref<1x32xf32, #tpu.memory_space<vmem>>, vector<1x32xf32>
    %cst_264 = arith.constant dense<0.000000e+00> : vector<2x16xf32>
    %494 = vector.multi_reduction <add>, %0, %cst_264 [2] : vector<2x16x32xf32> to vector<2x16xf32>
    %495 = vector.shape_cast %494 : vector<2x16xf32> to vector<2x16x1xf32>
    %cst_265 = arith.constant 3.200000e+01 : f32
    %496 = vector.broadcast %cst_265 : f32 to vector<2x16x1xf32>
    %497 = arith.divf %495, %496 : vector<2x16x1xf32>
    %498 = vector.broadcast %497 : vector<2x16x1xf32> to vector<2x16x32xf32>
    %499 = arith.subf %0, %498 : vector<2x16x32xf32>
    %500 = arith.mulf %499, %499 : vector<2x16x32xf32>
    %cst_266 = arith.constant dense<0.000000e+00> : vector<2x16xf32>
    %501 = vector.multi_reduction <add>, %500, %cst_266 [2] : vector<2x16x32xf32> to vector<2x16xf32>
    %502 = vector.shape_cast %501 : vector<2x16xf32> to vector<2x16x1xf32>
    %cst_267 = arith.constant 3.200000e+01 : f32
    %503 = vector.broadcast %cst_267 : f32 to vector<2x16x1xf32>
    %504 = arith.divf %502, %503 : vector<2x16x1xf32>
    %505 = vector.broadcast %497 : vector<2x16x1xf32> to vector<2x16x32xf32>
    %506 = arith.subf %0, %505 : vector<2x16x32xf32>
    %cst_268 = arith.constant 9.99999974E-6 : f32
    %507 = vector.broadcast %cst_268 : f32 to vector<2x16x1xf32>
    %508 = arith.addf %504, %507 : vector<2x16x1xf32>
    %509 = math.rsqrt %508 : vector<2x16x1xf32>
    %510 = vector.broadcast %509 : vector<2x16x1xf32> to vector<2x16x32xf32>
    %511 = arith.mulf %506, %510 : vector<2x16x32xf32>
    %512 = vector.shape_cast %482 : vector<1x32xf32> to vector<1x1x32xf32>
    %513 = vector.broadcast %512 : vector<1x1x32xf32> to vector<2x16x32xf32>
    %514 = arith.mulf %511, %513 : vector<2x16x32xf32>
    %515 = vector.shape_cast %483 : vector<1x32xf32> to vector<1x1x32xf32>
    %516 = vector.broadcast %515 : vector<1x1x32xf32> to vector<2x16x32xf32>
    %517 = arith.addf %514, %516 : vector<2x16x32xf32>
    %cst_269 = arith.constant dense<0.000000e+00> : vector<2x8xf32>
    %518 = vector.multi_reduction <add>, %481, %cst_269 [2] : vector<2x8x64xf32> to vector<2x8xf32>
    %519 = vector.shape_cast %518 : vector<2x8xf32> to vector<2x8x1xf32>
    %cst_270 = arith.constant 6.400000e+01 : f32
    %520 = vector.broadcast %cst_270 : f32 to vector<2x8x1xf32>
    %521 = arith.divf %519, %520 : vector<2x8x1xf32>
    %522 = vector.broadcast %521 : vector<2x8x1xf32> to vector<2x8x64xf32>
    %523 = arith.subf %481, %522 : vector<2x8x64xf32>
    %524 = arith.mulf %523, %523 : vector<2x8x64xf32>
    %cst_271 = arith.constant dense<0.000000e+00> : vector<2x8xf32>
    %525 = vector.multi_reduction <add>, %524, %cst_271 [2] : vector<2x8x64xf32> to vector<2x8xf32>
    %526 = vector.shape_cast %525 : vector<2x8xf32> to vector<2x8x1xf32>
    %cst_272 = arith.constant 6.400000e+01 : f32
    %527 = vector.broadcast %cst_272 : f32 to vector<2x8x1xf32>
    %528 = arith.divf %526, %527 : vector<2x8x1xf32>
    %529 = vector.broadcast %521 : vector<2x8x1xf32> to vector<2x8x64xf32>
    %530 = arith.subf %481, %529 : vector<2x8x64xf32>
    %cst_273 = arith.constant 9.99999974E-6 : f32
    %531 = vector.broadcast %cst_273 : f32 to vector<2x8x1xf32>
    %532 = arith.addf %528, %531 : vector<2x8x1xf32>
    %533 = math.rsqrt %532 : vector<2x8x1xf32>
    %534 = vector.broadcast %533 : vector<2x8x1xf32> to vector<2x8x64xf32>
    %535 = arith.mulf %530, %534 : vector<2x8x64xf32>
    %536 = vector.shape_cast %484 : vector<1x64xf32> to vector<1x1x64xf32>
    %537 = vector.broadcast %536 : vector<1x1x64xf32> to vector<2x8x64xf32>
    %538 = arith.mulf %535, %537 : vector<2x8x64xf32>
    %539 = vector.shape_cast %485 : vector<1x64xf32> to vector<1x1x64xf32>
    %540 = vector.broadcast %539 : vector<1x1x64xf32> to vector<2x8x64xf32>
    %541 = arith.addf %538, %540 : vector<2x8x64xf32>
    %542 = vector.shape_cast %517 : vector<2x16x32xf32> to vector<32x32xf32>
    %543 = vector.shape_cast %541 : vector<2x8x64xf32> to vector<16x64xf32>
    %cst_274 = arith.constant dense<0.000000e+00> : vector<32x32xf32>
    %544 = tpu.matmul %542, %486, %cst_274 {dimension_numbers = #tpu.dot_dimension_numbers<[1], [0], [0], [1], [0, 0, 1, 1], [], []>} : vector<32x32xf32>, vector<32x32xf32>, vector<32x32xf32> -> vector<32x32xf32>
    %545 = vector.broadcast %487 : vector<1x32xf32> to vector<32x32xf32>
    %546 = arith.addf %544, %545 : vector<32x32xf32>
    %547 = vector.shape_cast %546 : vector<32x32xf32> to vector<2x16x32xf32>
    %cst_275 = arith.constant dense<0.000000e+00> : vector<16x32xf32>
    %548 = tpu.matmul %543, %488, %cst_275 {dimension_numbers = #tpu.dot_dimension_numbers<[1], [0], [0], [1], [0, 0, 1, 1], [], []>} : vector<16x64xf32>, vector<64x32xf32>, vector<16x32xf32> -> vector<16x32xf32>
    %549 = vector.broadcast %489 : vector<1x32xf32> to vector<16x32xf32>
    %550 = arith.addf %548, %549 : vector<16x32xf32>
    %551 = vector.shape_cast %550 : vector<16x32xf32> to vector<2x8x32xf32>
    %cst_276 = arith.constant dense<0.000000e+00> : vector<16x32xf32>
    %552 = tpu.matmul %543, %490, %cst_276 {dimension_numbers = #tpu.dot_dimension_numbers<[1], [0], [0], [1], [0, 0, 1, 1], [], []>} : vector<16x64xf32>, vector<64x32xf32>, vector<16x32xf32> -> vector<16x32xf32>
    %553 = vector.broadcast %491 : vector<1x32xf32> to vector<16x32xf32>
    %554 = arith.addf %552, %553 : vector<16x32xf32>
    %555 = vector.shape_cast %554 : vector<16x32xf32> to vector<2x8x32xf32>
    %cst_277 = arith.constant 3.200000e+01 : f32
    %556 = math.sqrt %cst_277 : f32
    %cst_278 = arith.constant 1.000000e+00 : f32
    %557 = arith.divf %cst_278, %556 : f32
    "tpu.trace_start"() <{level = 10 : i32, message = "bqd,bkd->bqk"}> : () -> ()
    %cst_279 = arith.constant dense<0.000000e+00> : vector<2x16x8xf32>
    %558 = tpu.matmul %547, %551, %cst_279 {dimension_numbers = #tpu.dot_dimension_numbers<[2], [2], [1], [1], [0, 0, 0, 1, 1, 1], [0], [0]>} : vector<2x16x32xf32>, vector<2x8x32xf32>, vector<2x16x8xf32> -> vector<2x16x8xf32>
    "tpu.trace_stop"() : () -> ()
    %559 = vector.broadcast %557 : f32 to vector<2x16x8xf32>
    %560 = arith.mulf %558, %559 : vector<2x16x8xf32>
    %cst_280 = arith.constant dense<0xFF800000> : vector<2x16xf32>
    %561 = vector.multi_reduction <maximumf>, %560, %cst_280 [2] : vector<2x16x8xf32> to vector<2x16xf32>
    %562 = vector.shape_cast %561 : vector<2x16xf32> to vector<2x16x1xf32>
    %563 = vector.broadcast %562 : vector<2x16x1xf32> to vector<2x16x8xf32>
    %564 = arith.subf %560, %563 : vector<2x16x8xf32>
    %565 = math.exp %564 : vector<2x16x8xf32>
    %cst_281 = arith.constant dense<0.000000e+00> : vector<2x16xf32>
    %566 = vector.multi_reduction <add>, %565, %cst_281 [2] : vector<2x16x8xf32> to vector<2x16xf32>
    %567 = vector.shape_cast %566 : vector<2x16xf32> to vector<2x16x1xf32>
    %568 = tpu.reciprocal %567 {approx = true} : vector<2x16x1xf32> -> vector<2x16x1xf32>
    %569 = vector.broadcast %568 : vector<2x16x1xf32> to vector<2x16x8xf32>
    %570 = arith.mulf %565, %569 : vector<2x16x8xf32>
    "tpu.trace_start"() <{level = 10 : i32, message = "bqk,bkd->bqd"}> : () -> ()
    %cst_282 = arith.constant dense<0.000000e+00> : vector<2x16x32xf32>
    %571 = tpu.matmul %570, %555, %cst_282 {dimension_numbers = #tpu.dot_dimension_numbers<[2], [1], [1], [2], [0, 0, 0, 1, 1, 2], [0], [0]>} : vector<2x16x8xf32>, vector<2x8x32xf32>, vector<2x16x32xf32> -> vector<2x16x32xf32>
    "tpu.trace_stop"() : () -> ()
    %572 = vector.shape_cast %571 : vector<2x16x32xf32> to vector<32x32xf32>
    %cst_283 = arith.constant dense<0.000000e+00> : vector<32x32xf32>
    %573 = tpu.matmul %572, %492, %cst_283 {dimension_numbers = #tpu.dot_dimension_numbers<[1], [0], [0], [1], [0, 0, 1, 1], [], []>} : vector<32x32xf32>, vector<32x32xf32>, vector<32x32xf32> -> vector<32x32xf32>
    %574 = vector.broadcast %493 : vector<1x32xf32> to vector<32x32xf32>
    %575 = arith.addf %573, %574 : vector<32x32xf32>
    %576 = vector.shape_cast %575 : vector<32x32xf32> to vector<2x16x32xf32>
    %577 = arith.addf %0, %576 : vector<2x16x32xf32>
    %c0_284 = arith.constant 0 : index
    %c0_285 = arith.constant 0 : index
    %578 = vector.load %arg50[%c0_284, %c0_285] : memref<1x32xf32, #tpu.memory_space<vmem>>, vector<1x32xf32>
    %c0_286 = arith.constant 0 : index
    %c0_287 = arith.constant 0 : index
    %579 = vector.load %arg51[%c0_286, %c0_287] : memref<1x32xf32, #tpu.memory_space<vmem>>, vector<1x32xf32>
    %c0_288 = arith.constant 0 : index
    %c0_289 = arith.constant 0 : index
    %580 = vector.load %arg52[%c0_288, %c0_289] : memref<32x128xf32, #tpu.memory_space<vmem>>, vector<32x128xf32>
    %c0_290 = arith.constant 0 : index
    %c0_291 = arith.constant 0 : index
    %581 = vector.load %arg53[%c0_290, %c0_291] : memref<1x128xf32, #tpu.memory_space<vmem>>, vector<1x128xf32>
    %c0_292 = arith.constant 0 : index
    %c0_293 = arith.constant 0 : index
    %582 = vector.load %arg54[%c0_292, %c0_293] : memref<128x32xf32, #tpu.memory_space<vmem>>, vector<128x32xf32>
    %c0_294 = arith.constant 0 : index
    %c0_295 = arith.constant 0 : index
    %583 = vector.load %arg55[%c0_294, %c0_295] : memref<1x32xf32, #tpu.memory_space<vmem>>, vector<1x32xf32>
    %cst_296 = arith.constant dense<0.000000e+00> : vector<2x16xf32>
    %584 = vector.multi_reduction <add>, %577, %cst_296 [2] : vector<2x16x32xf32> to vector<2x16xf32>
    %585 = vector.shape_cast %584 : vector<2x16xf32> to vector<2x16x1xf32>
    %cst_297 = arith.constant 3.200000e+01 : f32
    %586 = vector.broadcast %cst_297 : f32 to vector<2x16x1xf32>
    %587 = arith.divf %585, %586 : vector<2x16x1xf32>
    %588 = vector.broadcast %587 : vector<2x16x1xf32> to vector<2x16x32xf32>
    %589 = arith.subf %577, %588 : vector<2x16x32xf32>
    %590 = arith.mulf %589, %589 : vector<2x16x32xf32>
    %cst_298 = arith.constant dense<0.000000e+00> : vector<2x16xf32>
    %591 = vector.multi_reduction <add>, %590, %cst_298 [2] : vector<2x16x32xf32> to vector<2x16xf32>
    %592 = vector.shape_cast %591 : vector<2x16xf32> to vector<2x16x1xf32>
    %cst_299 = arith.constant 3.200000e+01 : f32
    %593 = vector.broadcast %cst_299 : f32 to vector<2x16x1xf32>
    %594 = arith.divf %592, %593 : vector<2x16x1xf32>
    %595 = vector.broadcast %587 : vector<2x16x1xf32> to vector<2x16x32xf32>
    %596 = arith.subf %577, %595 : vector<2x16x32xf32>
    %cst_300 = arith.constant 9.99999974E-6 : f32
    %597 = vector.broadcast %cst_300 : f32 to vector<2x16x1xf32>
    %598 = arith.addf %594, %597 : vector<2x16x1xf32>
    %599 = math.rsqrt %598 : vector<2x16x1xf32>
    %600 = vector.broadcast %599 : vector<2x16x1xf32> to vector<2x16x32xf32>
    %601 = arith.mulf %596, %600 : vector<2x16x32xf32>
    %602 = vector.shape_cast %578 : vector<1x32xf32> to vector<1x1x32xf32>
    %603 = vector.broadcast %602 : vector<1x1x32xf32> to vector<2x16x32xf32>
    %604 = arith.mulf %601, %603 : vector<2x16x32xf32>
    %605 = vector.shape_cast %579 : vector<1x32xf32> to vector<1x1x32xf32>
    %606 = vector.broadcast %605 : vector<1x1x32xf32> to vector<2x16x32xf32>
    %607 = arith.addf %604, %606 : vector<2x16x32xf32>
    %608 = vector.shape_cast %607 : vector<2x16x32xf32> to vector<32x32xf32>
    %cst_301 = arith.constant dense<0.000000e+00> : vector<32x128xf32>
    %609 = tpu.matmul %608, %580, %cst_301 {dimension_numbers = #tpu.dot_dimension_numbers<[1], [0], [0], [1], [0, 0, 1, 1], [], []>} : vector<32x32xf32>, vector<32x128xf32>, vector<32x128xf32> -> vector<32x128xf32>
    %610 = vector.broadcast %581 : vector<1x128xf32> to vector<32x128xf32>
    %611 = arith.addf %609, %610 : vector<32x128xf32>
    %612 = arith.mulf %611, %611 : vector<32x128xf32>
    %613 = arith.mulf %611, %612 : vector<32x128xf32>
    %cst_302 = arith.constant 4.471500e-02 : f32
    %614 = vector.broadcast %cst_302 : f32 to vector<32x128xf32>
    %615 = arith.mulf %614, %613 : vector<32x128xf32>
    %616 = arith.addf %611, %615 : vector<32x128xf32>
    %cst_303 = arith.constant 0.797884583 : f32
    %617 = vector.broadcast %cst_303 : f32 to vector<32x128xf32>
    %618 = arith.mulf %617, %616 : vector<32x128xf32>
    %619 = math.tanh %618 : vector<32x128xf32>
    %cst_304 = arith.constant 1.000000e+00 : f32
    %620 = vector.broadcast %cst_304 : f32 to vector<32x128xf32>
    %621 = arith.addf %620, %619 : vector<32x128xf32>
    %cst_305 = arith.constant 5.000000e-01 : f32
    %622 = vector.broadcast %cst_305 : f32 to vector<32x128xf32>
    %623 = arith.mulf %622, %621 : vector<32x128xf32>
    %624 = arith.mulf %611, %623 : vector<32x128xf32>
    %cst_306 = arith.constant dense<0.000000e+00> : vector<32x32xf32>
    %625 = tpu.matmul %624, %582, %cst_306 {dimension_numbers = #tpu.dot_dimension_numbers<[1], [0], [0], [1], [0, 0, 1, 1], [], []>} : vector<32x128xf32>, vector<128x32xf32>, vector<32x32xf32> -> vector<32x32xf32>
    %626 = vector.broadcast %583 : vector<1x32xf32> to vector<32x32xf32>
    %627 = arith.addf %625, %626 : vector<32x32xf32>
    %628 = vector.shape_cast %627 : vector<32x32xf32> to vector<2x16x32xf32>
    %629 = arith.addf %577, %628 : vector<2x16x32xf32>
    %c0_307 = arith.constant 0 : index
    %c0_308 = arith.constant 0 : index
    %c0_309 = arith.constant 0 : index
    %630 = vector.load %arg56[%c0_307, %c0_308, %c0_309] : memref<2x16x32xf32, #tpu.memory_space<vmem>>, vector<2x16x32xf32>
    tpu.vector_store %arg56[%c0_307, %c0_308, %c0_309], %629 {strides = array<i32>} : memref<2x16x32xf32, #tpu.memory_space<vmem>>, vector<2x16x32xf32>,
    %c0_310 = arith.constant 0 : index
    %c0_311 = arith.constant 0 : index
    %c0_312 = arith.constant 0 : index
    %631 = vector.load %arg57[%c0_310, %c0_311, %c0_312] : memref<2x8x64xf32, #tpu.memory_space<vmem>>, vector<2x8x64xf32>
    tpu.vector_store %arg57[%c0_310, %c0_311, %c0_312], %481 {strides = array<i32>} : memref<2x8x64xf32, #tpu.memory_space<vmem>>, vector<2x8x64xf32>,
    return
  }
}

</mosaic_0001>

<bundles_post_ra>
// kernel: rin_block_forward.1
= control target key start
LH: loop header
LB: loop body
LE: loop exit
PB: predicated region body
PF: predicated region fallthrough
CT: control target
= control target key end

     0   :  { %s6035_s6 = smov 1   ;;  %s6036_s10 = smov 2   ;;  %s7114_s0 = inlined_call_operand.smem [shape: u32[58], index: -1, kind: input, shape index: {}] }
   0x1   :  { %s6106_s5 = sld [smem:[%s7114_s0]]   ;;  %s6037_s14 = smov 3  }
   0x2   :  { %s6111_s9 = sld [smem:[%s7114_s0 + %s6035_s6]]   ;;  %s6038_s18 = smov 4  }
   0x3   :  { %s6116_s13 = sld [smem:[%s7114_s0 + %s6036_s10]]   ;;  %s6039_s22 = smov 5  }
   0x4   :  { %s6121_s17 = sld [smem:[%s7114_s0 + %s6037_s14]]   ;;  %s6040_s26 = smov 6  }
   0x5   :  { %s6126_s21 = sld [smem:[%s7114_s0 + %s6038_s18]]   ;;  %s6041_s30 = smov 7  }
   0x6   :  { %s6131_s25 = sld [smem:[%s7114_s0 + %s6039_s22]]   ;;  %s6042_s4 = smov 8  }
   0x7   :  { %s6136_s29 = sld [smem:[%s7114_s0 + %s6040_s26]]   ;;  %s6043_s10 = smov 9  }
   0x8   :  { %s6141_s3 = sld [smem:[%s7114_s0 + %s6041_s30]]   ;;  %s6044_s15 = smov 10  }
   0x9   :  { %s6146_s8 = sld [smem:[%s7114_s0 + %s6042_s4]]   ;;  %s6045_s20 = smov 11  }
   0xa   :  { %s6151_s14 = sld [smem:[%s7114_s0 + %s6043_s10]]   ;;  %s6046_s26 = smov 12  }
   0xb   :  { %s6156_s19 = sld [smem:[%s7114_s0 + %s6044_s15]]   ;;  %s6047_s1 = smov 13  }
   0xc   :  { %s6161_s24 = sld [smem:[%s7114_s0 + %s6045_s20]]   ;;  %s6048_s7 = smov 14  }
   0xd   :  { %s6166_s30 = sld [smem:[%s7114_s0 + %s6046_s26]]   ;;  %s6049_s15 = smov 15  }
   0xe   :  { %s6171_s6 = sld [smem:[%s7114_s0 + %s6047_s1]]   ;;  %s6050_s22 = smov 16  }
   0xf   :  { %s6176_s12 = sld [smem:[%s7114_s0 + %s6048_s7]]   ;;  %s6051_s28 = smov 17  }
  0x10   :  { %s6181_s20 = sld [smem:[%s7114_s0 + %s6049_s15]]   ;;  %s6052_s7 = smov 18  }
  0x11   :  { %s6186_s27 = sld [smem:[%s7114_s0 + %s6050_s22]]   ;;  %s6053_s15 = smov 19  }
  0x12   :  { %s6191_s4 = sld [smem:[%s7114_s0 + %s6051_s28]]   ;;  %s6054_s22 = smov 20  }
  0x13   :  { %s6055_s28 = smov 21  }
  0x15   :  { %7140 = sst [smem:[#allocation8_spill]] %s6176_s12 }
  0x16   :  { %7141 = sst [smem:[#allocation9_spill]] %s6181_s20 }
  0x17   :  { %7142 = sst [smem:[#allocation10_spill]] %s6186_s27 }
  0x18   :  { %7143 = sst [smem:[#allocation11_spill]] %s6191_s4 }
  0x19   :  { %s6196_s12 = sld [smem:[%s7114_s0 + %s6052_s7]]   ;;  %s6056_s7 = smov 22  }
  0x1a   :  { %s6201_s20 = sld [smem:[%s7114_s0 + %s6053_s15]]   ;;  %s6057_s15 = smov 23  }
  0x1b   :  { %s6206_s27 = sld [smem:[%s7114_s0 + %s6054_s22]]   ;;  %s6058_s22 = smov 24  }
  0x1c   :  { %s6211_s4 = sld [smem:[%s7114_s0 + %s6055_s28]]   ;;  %s6059_s28 = smov 25  }
  0x1f   :  { %7144 = sst [smem:[#allocation12_spill]] %s6196_s12 }
  0x20   :  { %7145 = sst [smem:[#allocation13_spill]] %s6201_s20 }
  0x21   :  { %7146 = sst [smem:[#allocation14_spill]] %s6206_s27 }
  0x22   :  { %7147 = sst [smem:[#allocation15_spill]] %s6211_s4 }
  0x23   :  { %s6216_s12 = sld [smem:[%s7114_s0 + %s6056_s7]]   ;;  %s6060_s7 = smov 26  }
  0x24   :  { %s6221_s20 = sld [smem:[%s7114_s0 + %s6057_s15]]   ;;  %s6061_s15 = smov 27  }
  0x25   :  { %s6226_s27 = sld [smem:[%s7114_s0 + %s6058_s22]]   ;;  %s6062_s22 = smov 28  }
  0x26   :  { %s6231_s4 = sld [smem:[%s7114_s0 + %s6059_s28]]   ;;  %s6063_s28 = smov 29  }
  0x29   :  { %7148 = sst [smem:[#allocation16_spill]] %s6216_s12 }
  0x2a   :  { %7149 = sst [smem:[#allocation17_spill]] %s6221_s20 }
  0x2b   :  { %7150 = sst [smem:[#allocation18_spill]] %s6226_s27 }
  0x2c   :  { %7151 = sst [smem:[#allocation19_spill]] %s6231_s4 }
  0x2d   :  { %s6236_s12 = sld [smem:[%s7114_s0 + %s6060_s7]]   ;;  %s6064_s7 = smov 30  }
  0x2e   :  { %s6241_s20 = sld [smem:[%s7114_s0 + %s6061_s15]]   ;;  %s6065_s15 = smov 31  }
  0x2f   :  { %s6246_s27 = sld [smem:[%s7114_s0 + %s6062_s22]]   ;;  %s6066_s22 = smov 32  }
  0x30   :  { %s6251_s4 = sld [smem:[%s7114_s0 + %s6063_s28]]   ;;  %s6067_s28 = smov 33  }
  0x33   :  { %7152 = sst [smem:[#allocation20_spill]] %s6236_s12 }
  0x34   :  { %7153 = sst [smem:[#allocation21_spill]] %s6241_s20 }
  0x35   :  { %7154 = sst [smem:[#allocation22_spill]] %s6246_s27 }
  0x36   :  { %7155 = sst [smem:[#allocation23_spill]] %s6251_s4 }
  0x37   :  { %s6256_s12 = sld [smem:[%s7114_s0 + %s6064_s7]]   ;;  %s6068_s7 = smov 34  }
  0x38   :  { %s6261_s20 = sld [smem:[%s7114_s0 + %s6065_s15]]   ;;  %s6069_s15 = smov 35  }
  0x39   :  { %s6266_s27 = sld [smem:[%s7114_s0 + %s6066_s22]]   ;;  %s6070_s22 = smov 36  }
  0x3a   :  { %s6271_s4 = sld [smem:[%s7114_s0 + %s6067_s28]]   ;;  %s6071_s28 = smov 37  }
  0x3d   :  { %7156 = sst [smem:[#allocation24_spill]] %s6256_s12 }
  0x3e   :  { %7157 = sst [smem:[#allocation25_spill]] %s6261_s20 }
  0x3f   :  { %7158 = sst [smem:[#allocation26_spill]] %s6266_s27 }
  0x40   :  { %7159 = sst [smem:[#allocation27_spill]] %s6271_s4 }
  0x41   :  { %s6276_s12 = sld [smem:[%s7114_s0 + %s6068_s7]]   ;;  %s6072_s7 = smov 38  }
  0x42   :  { %s6281_s20 = sld [smem:[%s7114_s0 + %s6069_s15]]   ;;  %s6073_s15 = smov 39  }
  0x43   :  { %s6286_s27 = sld [smem:[%s7114_s0 + %s6070_s22]]   ;;  %s6074_s22 = smov 40  }
  0x44   :  { %s6291_s4 = sld [smem:[%s7114_s0 + %s6071_s28]]   ;;  %s6075_s28 = smov 41  }
  0x47   :  { %7160 = sst [smem:[#allocation28_spill]] %s6276_s12 }
  0x48   :  { %7161 = sst [smem:[#allocation29_spill]] %s6281_s20 }
  0x49   :  { %7162 = sst [smem:[#allocation30_spill]] %s6286_s27 }
  0x4a   :  { %7163 = sst [smem:[#allocation31_spill]] %s6291_s4 }
  0x4b   :  { %s6296_s12 = sld [smem:[%s7114_s0 + %s6072_s7]]   ;;  %s6076_s7 = smov 42  }
  0x4c   :  { %s6301_s20 = sld [smem:[%s7114_s0 + %s6073_s15]]   ;;  %s6077_s15 = smov 43  }
  0x4d   :  { %s6306_s27 = sld [smem:[%s7114_s0 + %s6074_s22]]   ;;  %s6078_s22 = smov 44  }
  0x4e   :  { %s6311_s4 = sld [smem:[%s7114_s0 + %s6075_s28]]   ;;  %s6079_s28 = smov 45  }
  0x51   :  { %7164 = sst [smem:[#allocation32_spill]] %s6296_s12 }
  0x52   :  { %7165 = sst [smem:[#allocation33_spill]] %s6301_s20 }
  0x53   :  { %7166 = sst [smem:[#allocation34_spill]] %s6306_s27 }
  0x54   :  { %7167 = sst [smem:[#allocation35_spill]] %s6311_s4 }
  0x55   :  { %s6316_s12 = sld [smem:[%s7114_s0 + %s6076_s7]]   ;;  %s6080_s7 = smov 46  }
  0x56   :  { %s6321_s20 = sld [smem:[%s7114_s0 + %s6077_s15]]   ;;  %s6081_s15 = smov 47  }
  0x57   :  { %s6326_s27 = sld [smem:[%s7114_s0 + %s6078_s22]]   ;;  %s6082_s22 = smov 48  }
  0x58   :  { %s6331_s4 = sld [smem:[%s7114_s0 + %s6079_s28]]   ;;  %s6083_s28 = smov 49  }
  0x5b   :  { %7168 = sst [smem:[#allocation36_spill]] %s6316_s12 }
  0x5c   :  { %7169 = sst [smem:[#allocation37_spill]] %s6321_s20 }
  0x5d   :  { %7170 = sst [smem:[#allocation38_spill]] %s6326_s27 }
  0x5e   :  { %7171 = sst [smem:[#allocation39_spill]] %s6331_s4 }
  0x5f   :  { %s6336_s12 = sld [smem:[%s7114_s0 + %s6080_s7]]   ;;  %s6084_s7 = smov 50  }
  0x60   :  { %s6341_s20 = sld [smem:[%s7114_s0 + %s6081_s15]]   ;;  %s6085_s15 = smov 51  }
  0x61   :  { %s6346_s27 = sld [smem:[%s7114_s0 + %s6082_s22]]   ;;  %s6086_s22 = smov 52  }
  0x62   :  { %s6351_s4 = sld [smem:[%s7114_s0 + %s6083_s28]]   ;;  %s6087_s28 = smov 53  }
  0x65   :  { %7172 = sst [smem:[#allocation40_spill]] %s6336_s12 }
  0x66   :  { %7173 = sst [smem:[#allocation41_spill]] %s6341_s20 }
  0x67   :  { %7174 = sst [smem:[#allocation42_spill]] %s6346_s27 }
  0x68   :  { %7175 = sst [smem:[#allocation43_spill]] %s6351_s4 }
  0x69   :  { %s6356_s12 = sld [smem:[%s7114_s0 + %s6084_s7]]   ;;  %s6088_s7 = smov 54  }
  0x6a   :  { %s6361_s20 = sld [smem:[%s7114_s0 + %s6085_s15]]   ;;  %s6089_s15 = smov 55  }
  0x6b   :  { %s6366_s27 = sld [smem:[%s7114_s0 + %s6086_s22]]   ;;  %s6090_s22 = smov 56  }
  0x6c   :  { %s6371_s4 = sld [smem:[%s7114_s0 + %s6087_s28]]   ;;  %s6091_s28 = smov 57  }
  0x6f   :  { %7176 = sst [smem:[#allocation44_spill]] %s6356_s12 }
  0x70   :  { %7177 = sst [smem:[#allocation45_spill]] %s6361_s20 }
  0x71   :  { %7178 = sst [smem:[#allocation46_spill]] %s6366_s27 }
  0x72   :  { %7179 = sst [smem:[#allocation47_spill]] %s6371_s4 }
  0x73   :  { %s6376_s12 = sld [smem:[%s7114_s0 + %s6088_s7]]  }
  0x74   :  { %s6381_s20 = sld [smem:[%s7114_s0 + %s6089_s15]]  }
  0x75   :  { %s6386_s27 = sld [smem:[%s7114_s0 + %s6090_s22]]  }
  0x76   :  { %s6391_s4 = sld [smem:[%s7114_s0 + %s6091_s28]]  }
  0x77   :  { %121 = vsyncpa [#allocation3], 0  ;;  %v235_v0 = vld [vmem:[%s6106_s5] sm:$0xff]  ;;  %vm317_vm0 = vcmask 261120   ;;  %v237_v1 = vld [vmem:[%s6106_s5 + $0x10] sm:$0xff] }
  0x78   :  { %v236_v2 = vld [vmem:[%s6106_s5 + $0x8] sm:$0xff]  ;;  %v318_v3 = vsel %vm317_vm0, %v235_v0, 0.0  ;;  %v324_v4 = vsel %vm317_vm0, %v237_v1, 0.0  ;;  %v238_v5 = vld [vmem:[%s6106_s5 + $0x18] sm:$0xff] }
  0x79   :  { %319 = vadd.xlane.f32.xlu0 %v318_v3  ;;  %325 = vadd.xlane.f32.xlu1 %v324_v4 }
  0x7a   :  { %122 = vsyncpa [#allocation5], 0  ;;  %v321_v6 = vsel %vm317_vm0, %v236_v2, 0.0  ;;  %v327_v7 = vsel %vm317_vm0, %v238_v5, 0.0  ;;  %v6402_v8 = vld [vmem:[%s6111_s9] sm:$0xff]  ;;  %vm273_vm1 = vcmask 523264  }
  0x7b   :  { %v6405_v9 = vld [vmem:[%s6111_s9 + $0x8] sm:$0xff]  ;;  %v274_v10 = vsel %vm273_vm1, %v6402_v8, 0.0  ;;  %v252_v42 = vld [vmem:[%s6136_s29 + $0x38] sm:$0xff]  ;;  %v251_v44 = vld [vmem:[%s6136_s29 + $0x30] sm:$0xff]  ;;  %vm6093_vm2 = vmmov 0   ;;  %vm832_vm3 = vcmask 130048  }
  0x7c   :  { %v277_v11 = vsel %vm273_vm1, %v6405_v9, 0.0  ;;  %v257_v43 = vld [vmem:[%s6146_s8 + $0x18] sm:$0xff]  ;;  %5384 = vmatprep.subr.mxu0 %v252_v42  ;;  %v256_v45 = vld [vmem:[%s6146_s8 + $0x10] sm:$0xff]  ;;  %v250_v46 = vld [vmem:[%s6136_s29 + $0x28] sm:$0xff]  ;;  %s7180_s0 = sld [smem:[#allocation10_spill]]  ;;  %vm1904_vm4 = vcmask 64512  }
  0x7d   :  { %322 = vadd.xlane.f32.xlu0 %v321_v6  ;;  %328 = vadd.xlane.f32.xlu1 %v327_v7  ;;  %v255_v47 = vld [vmem:[%s6146_s8 + $0x8] sm:$0xff]  ;;  %v249_v48 = vld [vmem:[%s6136_s29 + $0x20] sm:$0xff]  ;;  %v248_v50 = vld [vmem:[%s6136_s29 + $0x18] sm:$0xff]  ;;  %s7181_s9 = sld [smem:[#allocation8_spill]] }
  0x7e   :  { %5403 = vmatprep.subr.mxu1 %v257_v43  ;;  %5385 = vmatpush3.msra.mxu0 %v252_v42  ;;  %v254_v49 = vld [vmem:[%s6146_s8] sm:$0xff]  ;;  %v262_v51 = vld [vmem:[%s6156_s19 + $0x18] sm:$0xff]  ;;  %v247_v52 = vld [vmem:[%s6136_s29 + $0x10] sm:$0xff]  ;;  %s7188_s8 = sld [smem:[#allocation20_spill]] }
  0x7f   :  { %5404 = vmatpush3.msra.mxu1 %v257_v43  ;;  %5386 = vmatprep.subr.mxu0 %v251_v44  ;;  %v246_v53 = vld [vmem:[%s6136_s29 + $0x8] sm:$0xff]  ;;  %v245_v54 = vld [vmem:[%s6136_s29] sm:$0xff]  ;;  %s7186_s29 = sld [smem:[#allocation18_spill]] }
  0x80   :  { %5405 = vmatprep.subr.mxu1 %v256_v45  ;;  %5387 = vmatpush3.msra.mxu0 %v251_v44  ;;  %v4840_v43 = vld [vmem:[%s6151_s14] ss:$0 sm:$0xff]  ;;  %s7189_s14 = sld [smem:[#allocation14_spill]] }
  0x81   :  { %275 = vadd.xlane.f32.xlu0 %v274_v10  ;;  %278 = vadd.xlane.f32.xlu1 %v277_v11  ;;  %s7194_s7 = sld [smem:[#allocation21_spill]] }
  0x82   :  { %5406 = vmatpush3.msra.mxu1 %v256_v45  ;;  %5388 = vmatprep.subr.mxu0 %v250_v46  ;;  %s7195_s10 = sld [smem:[#allocation19_spill]] }
  0x83   :  { %5407 = vmatprep.subr.mxu1 %v255_v47  ;;  %5389 = vmatpush3.msra.mxu0 %v250_v46  ;;  %s7196_s11 = sld [smem:[#allocation24_spill]] }
  0x84   :  { %5408 = vmatpush3.msra.mxu1 %v255_v47  ;;  %5390 = vmatprep.subr.mxu0 %v249_v48  ;;  %s7197_s15 = sld [smem:[#allocation25_spill]] }
  0x85   :  { %5409 = vmatprep.subr.mxu1 %v254_v49  ;;  %5391 = vmatpush3.msra.mxu0 %v249_v48  ;;  %s7198_s16 = sld [smem:[#allocation28_spill]] }
  0x86   :  { %5410 = vmatpush3.msra.mxu1 %v254_v49  ;;  %5392 = vmatprep.subr.mxu0 %v248_v50  ;;  %s7199_s18 = sld [smem:[#allocation26_spill]] }
  0x87   :  { %5393 = vmatpush3.msra.mxu0 %v248_v50  ;;  %5417 = vmatprep.subr.mxu1 %v262_v51  ;;  %s7200_s22 = sld [smem:[#allocation27_spill]] }
  0x88   :  { %5394 = vmatprep.subr.mxu0 %v247_v52  ;;  %s7201_s23 = sld [smem:[#allocation30_spill]] }
  0x89   :  { %5395 = vmatpush3.msra.mxu0 %v247_v52  ;;  %s7202_s26 = sld [smem:[#allocation29_spill]] }
  0x8a   :  { %5396 = vmatprep.subr.mxu0 %v246_v53  ;;  %s7203_s28 = sld [smem:[#allocation31_spill]] }
  0x8b   :  { %5397 = vmatpush3.msra.mxu0 %v246_v53  ;;  %s7204_s1 = sld [smem:[#allocation36_spill]] }
  0x8c   :  { %5398 = vmatprep.subr.mxu0 %v245_v54  ;;  %s7205_s2 = sld [smem:[#allocation32_spill]] }
  0x8d   :  { %5399 = vmatpush3.msra.mxu0 %v245_v54  ;;  %v4837_v54 = vld [vmem:[%s6141_s3] ss:$0 sm:$0xff]  ;;  %s7187_s3 = sld [smem:[#allocation22_spill]] }
 0x102   :  { %v320_v12 = vpop.xlane.xlu0 %319  ;;  %v326_v13 = vpop.xlane.xlu1 %325 }
 0x103   :  { %v331_v14 = vmul.f32 0.03125, %v320_v12  ;;  %v333_v15 = vmul.f32 0.03125, %v326_v13  ;;  %v4835_v12 = vld [vmem:[%s6126_s21] ss:$0 sm:$0xff]  ;;  %s7184_s21 = sld [smem:[#allocation11_spill]] }
 0x105   :  { %v6411_v16 = vsub.f32 %v235_v0, %v331_v14  ;;  %v6413_v17 = vsub.f32 %v237_v1, %v333_v15  ;;  %v4836_v14 = vld [vmem:[%s6131_s25] ss:$0 sm:$0xff]  ;;  %s7185_s25 = sld [smem:[#allocation13_spill]] }
 0x106   :  { %v323_v18 = vpop.xlane.xlu0 %322  ;;  %v329_v19 = vpop.xlane.xlu1 %328 }
 0x107   :  { %v332_v20 = vmul.f32 0.03125, %v323_v18  ;;  %v334_v21 = vmul.f32 0.03125, %v329_v19  ;;  %v339_v22 = vmul.f32 %v6411_v16, %v6411_v16  ;;  %v341_v23 = vmul.f32 %v6413_v17, %v6413_v17 }
 0x109   :  { %v6419_v24 = vsub.f32 %v236_v2, %v332_v20  ;;  %v6421_v25 = vsub.f32 %v238_v5, %v334_v21  ;;  %v343_v26 = vsel %vm317_vm0, %v339_v22, 0.0  ;;  %v349_v29 = vsel %vm317_vm0, %v341_v23, 0.0 }
 0x10a   :  { %344 = vadd.xlane.f32.xlu0 %v343_v26  ;;  %v276_v27 = vpop.xlane.xlu0 %275  ;;  %v279_v28 = vpop.xlane.xlu1 %278 }
 0x10b   :  { %v281_v30 = vmul.f32 0.015625, %v276_v27  ;;  %v282_v31 = vmul.f32 0.015625, %v279_v28  ;;  %v340_v32 = vmul.f32 %v6419_v24, %v6419_v24  ;;  %v342_v33 = vmul.f32 %v6421_v25, %v6421_v25 }
 0x10d   :  { %v6430_v34 = vsub.f32 %v6402_v8, %v281_v30  ;;  %v6433_v35 = vsub.f32 %v6405_v9, %v282_v31  ;;  %v346_v36 = vsel %vm317_vm0, %v340_v32, 0.0  ;;  %v352_v37 = vsel %vm317_vm0, %v342_v33, 0.0  ;;  %v4834_v32 = vld [vmem:[%s6121_s17] ss:$0 sm:$0xff]  ;;  %s7183_s17 = sld [smem:[#allocation12_spill]] }
 0x10e   :  { %350 = vadd.xlane.f32.xlu0 %v349_v29  ;;  %347 = vadd.xlane.f32.xlu1 %v346_v36  ;;  %v4833_v29 = vld [vmem:[%s6116_s13] ss:$0 sm:$0xff]  ;;  %s7182_s13 = sld [smem:[#allocation9_spill]] }
 0x10f   :  { %v285_v38 = vmul.f32 %v6430_v34, %v6430_v34  ;;  %v286_v39 = vmul.f32 %v6433_v35, %v6433_v35 }
 0x111   :  { %v287_v40 = vsel %vm273_vm1, %v285_v38, 0.0  ;;  %v290_v41 = vsel %vm273_vm1, %v286_v39, 0.0  ;;  %v260_v38 = vld [vmem:[%s6156_s19 + $0x8] sm:$0xff] }
 0x112   :  { %353 = vadd.xlane.f32.xlu1 %v352_v37  ;;  %288 = vadd.xlane.f32.xlu0 %v287_v40 }
 0x116   :  { %291 = vadd.xlane.f32.xlu1 %v290_v41  ;;  %v259_v41 = vld [vmem:[%s6156_s19] sm:$0xff] }
 0x193   :  { %v345_v55 = vpop.xlane.xlu0 %344 }
 0x194   :  { %v355_v56 = vmul.f32 0.03125, %v345_v55  ;;  %v4845_v55 = vld [vmem:[%s6161_s24] ss:$0 sm:$0xff]  ;;  %s7191_s24 = sld [smem:[#allocation15_spill]] }
 0x196   :  { %v359_v57 = vadd.f32 1e-05, %v355_v56 }
 0x197   :  { %v348_v58 = vpop.xlane.xlu1 %347  ;;  %v351_v59 = vpop.xlane.xlu0 %350 }
 0x198   :  { %5871 = vrsqrt.f32 %v359_v57  ;;  %v356_v60 = vmul.f32 0.03125, %v348_v58  ;;  %v357_v61 = vmul.f32 0.03125, %v351_v59 }
 0x19a   :  { %v360_v62 = vadd.f32 1e-05, %v356_v60  ;;  %v361_v63 = vadd.f32 1e-05, %v357_v61 }
 0x19b   :  { %v354_v0 = vpop.xlane.xlu1 %353  ;;  %v289_v1 = vpop.xlane.xlu0 %288 }
 0x19c   :  { %5873 = vrsqrt.f32 %v360_v62  ;;  %v358_v2 = vmul.f32 0.03125, %v354_v0  ;;  %v293_v3 = vmul.f32 0.015625, %v289_v1 }
 0x19d   :  { %5875 = vrsqrt.f32 %v361_v63 }
 0x19e   :  { %v362_v4 = vadd.f32 1e-05, %v358_v2  ;;  %v295_v5 = vadd.f32 1e-05, %v293_v3 }
 0x19f   :  { %v292_v6 = vpop.xlane.xlu1 %291 }
 0x1a0   :  { %5877 = vrsqrt.f32 %v362_v4  ;;  %v294_v7 = vmul.f32 0.015625, %v292_v6 }
 0x1a1   :  { %5879 = vrsqrt.f32 %v295_v5 }
 0x1a2   :  { %v296_v10 = vadd.f32 1e-05, %v294_v7 }
 0x1a4   :  { %5881 = vrsqrt.f32 %v296_v10 }
 0x1a5   :  { %v5872_v11 = vpop.eup %5871 }
 0x1a6   :  { %v6458_v13 = vmul.f32 %v5872_v11, %v6411_v16 }
 0x1a8   :  { %v377_v15 = vmul.f32 %v4835_v12, %v6458_v13 }
 0x1a9   :  { %v5874_v18 = vpop.eup %5873 }
 0x1aa   :  { %v5876_v19 = vpop.eup %5875  ;;  %v387_v20 = vadd.f32 %v4836_v14, %v377_v15  ;;  %v6463_v21 = vmul.f32 %v5874_v18, %v6419_v24  ;;  %v261_v24 = vld [vmem:[%s6156_s19 + $0x10] sm:$0xff]  ;;  %s7190_s19 = sld [smem:[#allocation16_spill]] }
 0x1ab   :  { %v6466_v22 = vmul.f32 %v5876_v19, %v6413_v17 }
 0x1ac   :  { %5411 = vmatprep.mubr.msk.f32.mxu1 %vm317_vm0, %v387_v20  ;;  %v378_v23 = vmul.f32 %v4835_v12, %v6463_v21 }
 0x1ad   :  { %v5878_v16 = vpop.eup %5877  ;;  %v379_v26 = vmul.f32 %v4835_v12, %v6466_v22 }
 0x1ae   :  { %v5880_v27 = vpop.eup %5879  ;;  %v388_v28 = vadd.f32 %v4836_v14, %v378_v23  ;;  %v6473_v30 = vmul.f32 %v5878_v16, %v6421_v25 }
 0x1af   :  { %v389_v31 = vadd.f32 %v4836_v14, %v379_v26  ;;  %v299_v17 = vmul.f32 %v5880_v27, %v6430_v34 }
 0x1b0   :  { %5412 = vmatmul.mubr.msk.f32.vlgmr.msra.gmra.mxu1 %vm317_vm0, %v388_v28  ;;  %v380_v33 = vmul.f32 %v4835_v12, %v6473_v30 }
 0x1b1   :  { %v5882_v36 = vpop.eup %5881  ;;  %5414 = vmatprep.mubr.msk.f32.mxu1 %vm317_vm0, %v389_v31  ;;  %5418 = vmatpush3.msra.mxu1 %v262_v51  ;;  %v307_v37 = vmul.f32 %v4833_v29, %v299_v17 }
 0x1b2   :  { %5419 = vmatprep.subr.mxu1 %v261_v24  ;;  %v300_v25 = vmul.f32 %v5882_v36, %v6433_v35  ;;  %v390_v39 = vadd.f32 %v4836_v14, %v380_v33  ;;  %v6092_v35 = vmov 0.0   ;;  %v270_v36 = vld [vmem:[%s6166_s30 + $0x30] sm:$0xff] }
 0x1b3   :  { %5420 = vmatpush3.msra.mxu1 %v261_v24  ;;  %v315_v40 = vadd.f32 %v4834_v32, %v307_v37  ;;  %5431 = vmatprep.subr.mxu0 %v6092_v35  ;;  %v269_v37 = vld [vmem:[%s6166_s30 + $0x28] sm:$0xff] }
 0x1b4   :  { %v308_v42 = vmul.f32 %v4833_v29, %v300_v25  ;;  %5415 = vmatmul.mubr.msk.f32.gmra.mxu1 %vm317_vm0, %v390_v39  ;;  %5421 = vmatprep.subr.mxu1 %v260_v38  ;;  %v267_v25 = vld [vmem:[%s6166_s30 + $0x18] sm:$0xff] }
 0x1b5   :  { %5400 = vmatprep.mubr.msk.f32.mxu0 %vm273_vm1, %v315_v40  ;;  %5422 = vmatpush3.msra.mxu1 %v260_v38  ;;  %v268_v38 = vld [vmem:[%s6166_s30 + $0x20] sm:$0xff]  ;;  %v265_v40 = vld [vmem:[%s6166_s30 + $0x8] sm:$0xff] }
 0x1b6   :  { %v316_v34 = vadd.f32 %v4834_v32, %v308_v42  ;;  %5425 = vmatprep.mubr.msk.f32.mxu1 %vm317_vm0, %v387_v20  ;;  %5423 = vmatprep.subr.mxu1 %v259_v41 }
 0x1b7   :  { %5424 = vmatpush3.msra.mxu1 %v259_v41  ;;  %v264_v41 = vld [vmem:[%s6166_s30] sm:$0xff] }
 0x1b8   :  { %5401 = vmatmul.mubr.msk.f32.vlgmr.msra.gmra.mxu0 %vm273_vm1, %v316_v34  ;;  %5426 = vmatmul.mubr.msk.f32.vlgmr.msra.gmra.mxu1 %vm317_vm0, %v388_v28  ;;  %v271_v28 = vld [vmem:[%s6166_s30 + $0x38] sm:$0xff] }
 0x1b9   :  { %5428 = vmatprep.mubr.msk.f32.mxu1 %vm317_vm0, %v389_v31  ;;  %5438 = vmatprep.subr.mxu1 %v6092_v35 }
 0x1ba   :  { %5435 = vmatprep.mubr.msk.f32.mxu0 %vm6093_vm2, %v6092_v35 }
 0x1bc   :  { %5429 = vmatmul.mubr.msk.f32.gmra.mxu1 %vm317_vm0, %v390_v39  ;;  %v266_v39 = vld [vmem:[%s6166_s30 + $0x10] sm:$0xff]  ;;  %s7192_s30 = sld [smem:[#allocation17_spill]] }
 0x1bd   :  { %5442 = vmatprep.mubr.msk.f32.mxu1 %vm6093_vm2, %v6092_v35 }
 0x270   :  { %v5413_v44 = vpop.f32.mrf.mxu1 }
 0x271   :  { %v568_v45 = vadd.f32 %v5413_v44, %v4840_v43 }
 0x272   :  { %v562_v46 = vpop.f32.mrf.mxu1 }
 0x273   :  { %5432 = vmatpush3.xpose.msk.msra.mxu0 %vm273_vm1, %v568_v45  ;;  %v563_v48 = vadd.f32 %v4840_v43, %v562_v46  ;;  %v4858_v45 = vld [vmem:[%s6171_s6] ss:$0 sm:$0xff]  ;;  %s7193_s6 = sld [smem:[#allocation23_spill]] }
 0x274   :  { %v5416_v47 = vpop.f32.mrf.mxu1  ;;  %5433 = vmatprep.subr.mxu0 %v6092_v35 }
 0x275   :  { %v578_v49 = vadd.f32 %v5416_v47, %v4840_v43 }
 0x276   :  { %v572_v50 = vpop.f32.mrf.mxu1 }
 0x277   :  { %5434 = vmatpush3.xpose.msk.msra.mxu0 %vm273_vm1, %v563_v48  ;;  %5439 = vmatpush3.xpose.msk.msra.mxu1 %vm273_vm1, %v578_v49  ;;  %v573_v53 = vadd.f32 %v4840_v43, %v572_v50 }
 0x278   :  { %v5402_v51 = vpop.f32.mrf.mxu0  ;;  %v5427_v52 = vpop.f32.mrf.mxu1  ;;  %5440 = vmatprep.subr.mxu1 %v6092_v35  ;;  %5445 = vmatprep.subr.mxu0 %v6092_v35 }
 0x279   :  { %v475_v59 = vadd.f32 %v5402_v51, %v4837_v54  ;;  %v659_v60 = vadd.f32 %v5427_v52, %v4845_v55 }
 0x27a   :  { %v469_v56 = vpop.f32.mrf.mxu0  ;;  %v653_v57 = vpop.f32.mrf.mxu1 }
 0x27b   :  { %v470_v58 = vadd.f32 %v4837_v54, %v469_v56  ;;  %5441 = vmatpush3.xpose.msk.msra.mxu1 %vm273_vm1, %v573_v53  ;;  %v654_v63 = vadd.f32 %v4845_v55, %v653_v57 }
 0x27c   :  { %v5430_v61 = vpop.f32.mrf.mxu1  ;;  %5452 = vmatprep.subr.mxu1 %v6092_v35 }
 0x27d   :  { %v669_v62 = vadd.f32 %v5430_v61, %v4845_v55  ;;  %5436 = vmatmul.mubr.msk.f32.vlgmr.msra.gmra.mxu0 %vm273_vm1, %v470_v58 }
 0x27e   :  { %5446 = vmatpush3.msra.mxu0 %v659_v60  ;;  %v663_v0 = vpop.f32.mrf.mxu1  ;;  %5443 = vmatmul.mubr.msk.f32.vlgmr.msra.gmra.mxu1 %vm273_vm1, %v475_v59 }
 0x27f   :  { %v664_v1 = vadd.f32 %v4845_v55, %v663_v0  ;;  %5447 = vmatprep.subr.mxu0 %v6092_v35  ;;  %5453 = vmatpush3.msra.mxu1 %v669_v62  ;;  %v1107_v62 = vld [vmem:[%s7180_s0 + $0x78] sm:$0xff]  ;;  %v1105_v0 = vld [vmem:[%s7180_s0 + $0x68] sm:$0xff] }
 0x280   :  { %5448 = vmatpush3.msra.mxu0 %v654_v63  ;;  %5454 = vmatprep.subr.mxu1 %v6092_v35  ;;  %v1106_v63 = vld [vmem:[%s7180_s0 + $0x70] sm:$0xff] }
 0x281   :  { %5455 = vmatpush3.msra.mxu1 %v664_v1  ;;  %5449 = vmatprep.mubr.msk.f32.mxu0 %vm6093_vm2, %v6092_v35  ;;  %v1104_v1 = vld [vmem:[%s7180_s0 + $0x60] sm:$0xff] }
 0x282   :  { %5456 = vmatprep.mubr.msk.f32.mxu1 %vm6093_vm2, %v6092_v35  ;;  %5459 = vmatprep.subr.mxu0 %v271_v28 }
 0x283   :  { %1217 = vmatprep.subr.mxu1 %v1107_v62  ;;  %v1112_v62 = vld [vmem:[%s7183_s17 + $0x18] sm:$0xff] }
 0x33d   :  { %v747_v2 = vpop.f32.mrf.mxu0 }
 0x33e   :  { %v830_v3 = vmul.f32 0.125, %v747_v2  ;;  %v826_v4 = vpop.f32.mrf.mxu1  ;;  %v1103_v2 = vld [vmem:[%s7180_s0 + $0x58] sm:$0xff] }
 0x33f   :  { %v831_v5 = vmul.f32 0.125, %v826_v4  ;;  %v5437_v6 = vpop.f32.mrf.mxu0  ;;  %v1101_v4 = vld [vmem:[%s7180_s0 + $0x48] sm:$0xff] }
 0x340   :  { %v5444_v7 = vpop.f32.mrf.mxu1  ;;  %v833_v10 = vsel %vm832_vm3, %v830_v3, -inf  ;;  %v1099_v6 = vld [vmem:[%s7180_s0 + $0x38] sm:$0xff] }
 0x341   :  { %834 = vmax.xlane.f32.xlu0 %v833_v10  ;;  %v836_v11 = vsel %vm832_vm3, %v831_v5, -inf  ;;  %v1098_v7 = vld [vmem:[%s7180_s0 + $0x30] sm:$0xff]  ;;  %v1097_v10 = vld [vmem:[%s7180_s0 + $0x28] sm:$0xff] }
 0x342   :  { %837 = vmax.xlane.f32.xlu1 %v836_v11  ;;  %v1096_v11 = vld [vmem:[%s7180_s0 + $0x20] sm:$0xff] }
 0x3ca   :  { %v835_v12 = vpop.xlane.xlu0 %834 }
 0x3cb   :  { %v839_v14 = vsub.f32 %v830_v3, %v835_v12  ;;  %v838_v15 = vpop.xlane.xlu1 %837  ;;  %v1102_v3 = vld [vmem:[%s7180_s0 + $0x50] sm:$0xff]  ;;  %v1095_v12 = vld [vmem:[%s7180_s0 + $0x18] sm:$0xff] }
 0x3cc   :  { %v840_v18 = vsub.f32 %v831_v5, %v838_v15  ;;  %v1100_v5 = vld [vmem:[%s7180_s0 + $0x40] sm:$0xff]  ;;  %v1093_v15 = vld [vmem:[%s7180_s0 + $0x8] sm:$0xff] }
 0x3cd   :  { %v841_v19 = vmul.f32 1.442695, %v839_v14  ;;  %v1094_v14 = vld [vmem:[%s7180_s0 + $0x10] sm:$0xff] }
 0x3ce   :  { %v843_v20 = vmul.f32 1.442695, %v840_v18  ;;  %v1092_v18 = vld [vmem:[%s7180_s0] sm:$0xff]  ;;  %s7206_s0 = sld [smem:[#allocation33_spill]] }
 0x3cf   :  { %5883 = vpow2.f32 %v841_v19 }
 0x3d0   :  { %5885 = vpow2.f32 %v843_v20 }
 0x3dc   :  { %v5884_v23 = vpop.eup %5883 }
 0x3dd   :  { %v5886_v16 = vpop.eup %5885  ;;  %v845_v26 = vsel %vm832_vm3, %v5884_v23, 0.0 }
 0x3de   :  { %846 = vadd.xlane.f32.xlu0 %v845_v26  ;;  %v848_v27 = vsel %vm832_vm3, %v5886_v16, 0.0 }
 0x3df   :  { %849 = vadd.xlane.f32.xlu1 %v848_v27 }
 0x467   :  { %v847_v29 = vpop.xlane.xlu0 %846 }
 0x468   :  { %5887 = vrcp.f32 %v847_v29  ;;  %v850_v31 = vpop.xlane.xlu1 %849 }
 0x469   :  { %5889 = vrcp.f32 %v850_v31 }
 0x475   :  { %v5888_v24 = vpop.eup %5887 }
 0x476   :  { %v5890_v17 = vpop.eup %5889  ;;  %v853_v32 = vmul.f32 %v5888_v24, %v5884_v23 }
 0x477   :  { %v854_v33 = vmul.f32 %v5890_v17, %v5886_v16  ;;  %v4861_v17 = vld [vmem:[%s7181_s9] ss:$0 sm:$0xff]  ;;  %s7207_s9 = sld [smem:[#allocation37_spill]] }
 0x478   :  { %5450 = vmatmul.mubr.msk.f32.vlgmr.msra.gmra.mxu0 %vm832_vm3, %v853_v32 }
 0x479   :  { %5457 = vmatmul.mubr.msk.f32.vlgmr.msra.gmra.mxu1 %vm832_vm3, %v854_v33  ;;  %5460 = vmatpush3.msra.mxu0 %v271_v28  ;;  %v4862_v33 = vld [vmem:[%s7182_s13] ss:$0 sm:$0xff]  ;;  %s7208_s13 = sld [smem:[#allocation38_spill]] }
 0x47a   :  { %5461 = vmatprep.subr.mxu0 %v270_v36  ;;  %1265 = vmatprep.mubr.f32.mxu1 %v6092_v35 }
 0x47b   :  { %5462 = vmatpush3.msra.mxu0 %v270_v36  ;;  %1218 = vmatpush1.msra.mxu1 %v1106_v63  ;;  %v1127_v63 = vld [vmem:[%s7183_s17 + $0x90] sm:$0xff] }
 0x47c   :  { %5463 = vmatprep.subr.mxu0 %v269_v37  ;;  %1219 = vmatprep.subr.mxu1 %v1105_v0  ;;  %v1111_v0 = vld [vmem:[%s7183_s17 + $0x10] sm:$0xff] }
 0x47d   :  { %5464 = vmatpush3.msra.mxu0 %v269_v37  ;;  %1220 = vmatpush1.msra.mxu1 %v1104_v1  ;;  %v1126_v1 = vld [vmem:[%s7183_s17 + $0x88] sm:$0xff] }
 0x47e   :  { %5465 = vmatprep.subr.mxu0 %v268_v38  ;;  %1221 = vmatprep.subr.mxu1 %v1103_v2  ;;  %v1110_v2 = vld [vmem:[%s7183_s17 + $0x8] sm:$0xff] }
 0x47f   :  { %5466 = vmatpush3.msra.mxu0 %v268_v38  ;;  %1222 = vmatpush1.msra.mxu1 %v1102_v3  ;;  %v1125_v3 = vld [vmem:[%s7183_s17 + $0x80] sm:$0xff] }
 0x480   :  { %5467 = vmatprep.subr.mxu0 %v267_v25  ;;  %1223 = vmatprep.subr.mxu1 %v1101_v4  ;;  %v1109_v4 = vld [vmem:[%s7183_s17] sm:$0xff] }
 0x481   :  { %5468 = vmatpush3.msra.mxu0 %v267_v25  ;;  %1224 = vmatpush1.msra.mxu1 %v1100_v5  ;;  %v1140_v25 = vld [vmem:[%s7183_s17 + $0xf8] sm:$0xff]  ;;  %v1185_v5 = vlaneseq }
 0x482   :  { %5469 = vmatprep.subr.mxu0 %v266_v39  ;;  %1225 = vmatprep.subr.mxu1 %v1099_v6 }
 0x483   :  { %5470 = vmatpush3.msra.mxu0 %v266_v39  ;;  %1226 = vmatpush1.msra.mxu1 %v1098_v7  ;;  %v1124_v39 = vld [vmem:[%s7183_s17 + $0x78] sm:$0xff]  ;;  %v1186_v6 = vshrl.u32 %v1185_v5, 7 }
 0x484   :  { %5471 = vmatprep.subr.mxu0 %v265_v40  ;;  %1227 = vmatprep.subr.mxu1 %v1097_v10  ;;  %v1108_v10 = vld [vmem:[%s7184_s21] sm:$0x3]  ;;  %s7210_s21 = sld [smem:[#allocation34_spill]] }
 0x485   :  { %5472 = vmatpush3.msra.mxu0 %v265_v40  ;;  %1228 = vmatpush1.msra.mxu1 %v1096_v11  ;;  %v1139_v40 = vld [vmem:[%s7183_s17 + $0xf0] sm:$0xff]  ;;  %v6601_v7 = vsub.s32 0, %v1186_v6  ;;  %v6604_v11 = vsub.s32 1, %v1186_v6 }
 0x486   :  { %5473 = vmatprep.subr.mxu0 %v264_v41  ;;  %1229 = vmatprep.subr.mxu1 %v1095_v12 }
 0x487   :  { %5474 = vmatpush3.msra.mxu0 %v264_v41  ;;  %1230 = vmatpush1.msra.mxu1 %v1094_v14  ;;  %v1123_v41 = vld [vmem:[%s7183_s17 + $0x70] sm:$0xff]  ;;  %v1188_v12 = vrot.slane %v1108_v10, %v6601_v7  ;;  %v1192_v14 = vrot.slane %v1108_v10, %v6604_v11 }
 0x488   :  { %1231 = vmatprep.subr.mxu1 %v1093_v15  ;;  %5098 = vmatprep.subr.mxu0 %v1140_v25 }
 0x489   :  { %1232 = vmatpush1.msra.mxu1 %v1092_v18 }
 0x538   :  { %v924_v42 = vpop.f32.mrf.mxu0 }
 0x539   :  { %v997_v34 = vpop.f32.mrf.mxu1  ;;  %5475 = vmatprep.mubr.msk.f32.mxu0 %vm273_vm1, %v924_v42  ;;  %v1138_v42 = vld [vmem:[%s7183_s17 + $0xe8] sm:$0xff] }
 0x53a   :  { %v5451_v43 = vpop.f32.mrf.mxu0  ;;  %5476 = vmatmul.mubr.msk.f32.vlgmr.msra.gmra.mxu0 %vm273_vm1, %v997_v34  ;;  %v1122_v34 = vld [vmem:[%s7183_s17 + $0x68] sm:$0xff] }
 0x53b   :  { %v5458_v44 = vpop.f32.mrf.mxu1  ;;  %5099 = vmatpush3.msra.mxu0 %v1124_v39  ;;  %v1137_v43 = vld [vmem:[%s7183_s17 + $0xe0] sm:$0xff] }
 0x53c   :  { %5100 = vmatprep.subr.mxu0 %v1139_v40  ;;  %v1121_v44 = vld [vmem:[%s7183_s17 + $0x60] sm:$0xff] }
 0x53d   :  { %5101 = vmatpush3.msra.mxu0 %v1123_v41 }
 0x53e   :  { %5102 = vmatprep.subr.mxu0 %v1138_v42 }
 0x53f   :  { %5103 = vmatpush3.msra.mxu0 %v1122_v34 }
 0x540   :  { %5104 = vmatprep.subr.mxu0 %v1137_v43 }
 0x541   :  { %5105 = vmatpush3.msra.mxu0 %v1121_v44 }
 0x5fa   :  { %v5477_v46 = vpop.f32.mrf.mxu0 }
 0x5fb   :  { %v1085_v47 = vadd.f32 %v5477_v46, %v4858_v45  ;;  %v1120_v46 = vld [vmem:[%s7183_s17 + $0x58] sm:$0xff] }
 0x5fc   :  { %v1079_v48 = vpop.f32.mrf.mxu0 }
 0x5fd   :  { %v6535_v49 = vadd.f32 %v1085_v47, %v6405_v9  ;;  %v1080_v50 = vadd.f32 %v4858_v45, %v1079_v48  ;;  %v1136_v45 = vld [vmem:[%s7183_s17 + $0xd8] sm:$0xff]  ;;  %v1135_v47 = vld [vmem:[%s7183_s17 + $0xd0] sm:$0xff] }
 0x5fe   :  { %5106 = vmatprep.subr.mxu0 %v1136_v45  ;;  %v1119_v48 = vld [vmem:[%s7183_s17 + $0x50] sm:$0xff] }
 0x5ff   :  { %v6538_v51 = vadd.f32 %v1080_v50, %v6402_v8  ;;  %v1145_v52 = vsel %vm273_vm1, %v6535_v49, 0.0  ;;  %5107 = vmatpush3.msra.mxu0 %v1120_v46  ;;  %v1134_v50 = vld [vmem:[%s7183_s17 + $0xc8] sm:$0xff] }
 0x600   :  { %1146 = vadd.xlane.f32.xlu1 %v1145_v52  ;;  %5108 = vmatprep.subr.mxu0 %v1135_v47  ;;  %v1118_v52 = vld [vmem:[%s7183_s17 + $0x48] sm:$0xff] }
 0x601   :  { %v1142_v53 = vsel %vm273_vm1, %v6538_v51, 0.0  ;;  %5109 = vmatpush3.msra.mxu0 %v1119_v48 }
 0x602   :  { %1143 = vadd.xlane.f32.xlu0 %v1142_v53  ;;  %5110 = vmatprep.subr.mxu0 %v1134_v50  ;;  %v1133_v53 = vld [vmem:[%s7183_s17 + $0xc0] sm:$0xff] }
 0x603   :  { %5111 = vmatpush3.msra.mxu0 %v1118_v52 }
 0x604   :  { %5112 = vmatprep.subr.mxu0 %v1133_v53 }
 0x689   :  { %v1147_v54 = vpop.xlane.xlu1 %1146 }
 0x68a   :  { %v1149_v55 = vmul.f32 0.015625, %v1147_v54  ;;  %v1117_v54 = vld [vmem:[%s7183_s17 + $0x40] sm:$0xff] }
 0x68b   :  { %v1144_v56 = vpop.xlane.xlu0 %1143  ;;  %5113 = vmatpush3.msra.mxu0 %v1117_v54 }
 0x68c   :  { %v1151_v9 = vsub.f32 %v6535_v49, %v1149_v55  ;;  %v1148_v57 = vmul.f32 0.015625, %v1144_v56  ;;  %v1132_v55 = vld [vmem:[%s7183_s17 + $0xb8] sm:$0xff] }
 0x68d   :  { %v1116_v56 = vld [vmem:[%s7183_s17 + $0x38] sm:$0xff]  ;;  %5114 = vmatprep.subr.mxu0 %v1132_v55 }
 0x68e   :  { %v1150_v8 = vsub.f32 %v6538_v51, %v1148_v57  ;;  %v1153_v58 = vmul.f32 %v1151_v9, %v1151_v9  ;;  %v1115_v57 = vld [vmem:[%s7183_s17 + $0x30] sm:$0xff]  ;;  %5115 = vmatpush3.msra.mxu0 %v1116_v56 }
 0x690   :  { %v1157_v59 = vsel %vm273_vm1, %v1153_v58, 0.0  ;;  %v1152_v60 = vmul.f32 %v1150_v8, %v1150_v8  ;;  %v1114_v58 = vld [vmem:[%s7183_s17 + $0x28] sm:$0xff] }
 0x691   :  { %1158 = vadd.xlane.f32.xlu1 %v1157_v59  ;;  %v1129_v59 = vld [vmem:[%s7183_s17 + $0xa0] sm:$0xff] }
 0x692   :  { %v1154_v61 = vsel %vm273_vm1, %v1152_v60, 0.0  ;;  %v1113_v60 = vld [vmem:[%s7183_s17 + $0x20] sm:$0xff] }
 0x693   :  { %1155 = vadd.xlane.f32.xlu0 %v1154_v61  ;;  %v1128_v61 = vld [vmem:[%s7183_s17 + $0x98] sm:$0xff] }
 0x71a   :  { %v1159_v19 = vpop.xlane.xlu1 %1158 }
 0x71b   :  { %v1161_v20 = vmul.f32 0.015625, %v1159_v19 }
 0x71c   :  { %v1156_v23 = vpop.xlane.xlu0 %1155 }
 0x71d   :  { %v1163_v16 = vadd.f32 1e-05, %v1161_v20  ;;  %v1160_v26 = vmul.f32 0.015625, %v1156_v23 }
 0x71f   :  { %5891 = vrsqrt.f32 %v1163_v16  ;;  %v1162_v27 = vadd.f32 1e-05, %v1160_v26 }
 0x721   :  { %5893 = vrsqrt.f32 %v1162_v27 }
 0x72c   :  { %v5892_v28 = vpop.eup %5891 }
 0x72d   :  { %v1167_v24 = vmul.f32 %v5892_v28, %v1151_v9  ;;  %v1131_v9 = vld [vmem:[%s7183_s17 + $0xb0] sm:$0xff] }
 0x72e   :  { %v5894_v29 = vpop.eup %5893  ;;  %5116 = vmatprep.subr.mxu0 %v1131_v9 }
 0x72f   :  { %v1166_v31 = vmul.f32 %v5894_v29, %v1150_v8  ;;  %v1175_v37 = vmul.f32 %v4861_v17, %v1167_v24  ;;  %v1130_v8 = vld [vmem:[%s7183_s17 + $0xa8] sm:$0xff]  ;;  %5117 = vmatpush3.msra.mxu0 %v1115_v57  ;;  %s7209_s17 = sld [smem:[#allocation40_spill]] }
 0x730   :  { %5118 = vmatprep.subr.mxu0 %v1130_v8 }
 0x731   :  { %v1174_v32 = vmul.f32 %v4861_v17, %v1166_v31  ;;  %v1183_v38 = vadd.f32 %v4862_v33, %v1175_v37  ;;  %5119 = vmatpush3.msra.mxu0 %v1114_v58 }
 0x732   :  { %5120 = vmatprep.subr.mxu0 %v1129_v59 }
 0x733   :  { %v1182_v36 = vadd.f32 %v4862_v33, %v1174_v32  ;;  %5121 = vmatpush3.msra.mxu0 %v1113_v60 }
 0x734   :  { %5122 = vmatprep.subr.mxu0 %v1128_v61 }
 0x735   :  { %4863 = vmatmul.mubr.msk.f32.vlgmr.msra.gmra.mxu1 %vm273_vm1, %v1182_v36  ;;  %5123 = vmatpush3.msra.mxu0 %v1112_v62 }
 0x736   :  { %1271 = vmatprep.mubr.f32.mxu1 %v6092_v35  ;;  %5124 = vmatprep.subr.mxu0 %v1127_v63 }
 0x737   :  { %5125 = vmatpush3.msra.mxu0 %v1111_v0  ;;  %v4865_v0 = vld [vmem:[%s7185_s25] ss:$0 sm:$0xff]  ;;  %s7211_s25 = sld [smem:[#allocation35_spill]] }
 0x738   :  { %5126 = vmatprep.subr.mxu0 %v1126_v1 }
 0x739   :  { %4864 = vmatmul.mubr.msk.f32.gmra.mxu1 %vm273_vm1, %v1183_v38  ;;  %5127 = vmatpush3.msra.mxu0 %v1110_v2 }
 0x73a   :  { %5128 = vmatprep.subr.mxu0 %v1125_v3 }
 0x73b   :  { %5129 = vmatpush3.msra.mxu0 %v1109_v4 }
 0x7f5   :  { %v1267_v15 = vpop.f32.mrf.mxu1 }
 0x7f6   :  { %v1268_v18 = vadd.f32 %v1267_v15, %v1188_v12 }
 0x7f7   :  { %v1269_v19 = vpop.f32.mrf.mxu1 }
 0x7f8   :  { %v1278_v20 = vmul.f32 %v1268_v18, %v1268_v18  ;;  %v1270_v23 = vadd.f32 %v1269_v19, %v1192_v14 }
 0x7f9   :  { %v1273_v16 = vpop.f32.mrf.mxu1 }
 0x7fa   :  { %v1282_v26 = vmul.f32 %v1278_v20, %v1268_v18  ;;  %v1279_v27 = vmul.f32 %v1270_v23, %v1270_v23  ;;  %v1274_v28 = vadd.f32 %v1273_v16, %v1188_v12 }
 0x7fb   :  { %v1275_v29 = vpop.f32.mrf.mxu1 }
 0x7fc   :  { %v1286_v31 = vmul.f32 0.044715, %v1282_v26  ;;  %v1283_v24 = vmul.f32 %v1279_v27, %v1270_v23  ;;  %v1280_v17 = vmul.f32 %v1274_v28, %v1274_v28  ;;  %v1276_v32 = vadd.f32 %v1275_v29, %v1192_v14 }
 0x7fe   :  { %v1290_v33 = vadd.f32 %v1286_v31, %v1268_v18  ;;  %v1287_v36 = vmul.f32 0.044715, %v1283_v24  ;;  %v1284_v37 = vmul.f32 %v1280_v17, %v1274_v28  ;;  %v1281_v38 = vmul.f32 %v1276_v32, %v1276_v32  ;;  %v1408_v31 = vld [vmem:[%s7186_s29 + $0x38] sm:$0xff]  ;;  %v1407_v17 = vld [vmem:[%s7186_s29 + $0x30] sm:$0xff] }
 0x7ff   :  { %v1426_v24 = vld [vmem:[%s7187_s3 + $0x38] sm:$0xff]  ;;  %5478 = vmatprep.subr.mxu1 %v1408_v31 }
 0x800   :  { %v1294_v25 = vmul.f32 0.7978846, %v1290_v33  ;;  %v1291_v39 = vadd.f32 %v1287_v36, %v1270_v23  ;;  %v1288_v40 = vmul.f32 0.044715, %v1284_v37  ;;  %v1285_v41 = vmul.f32 %v1281_v38, %v1276_v32  ;;  %5516 = vmatprep.subr.mxu0 %v1426_v24  ;;  %5479 = vmatpush3.msra.mxu1 %v1408_v31  ;;  %v1406_v33 = vld [vmem:[%s7186_s29 + $0x28] sm:$0xff]  ;;  %v1405_v37 = vld [vmem:[%s7186_s29 + $0x20] sm:$0xff] }
 0x801   :  { %v1424_v36 = vld [vmem:[%s7187_s3 + $0x28] sm:$0xff]  ;;  %5480 = vmatprep.subr.mxu1 %v1407_v17  ;;  %v1423_v38 = vld [vmem:[%s7187_s3 + $0x20] sm:$0xff] }
 0x802   :  { %5895 = vtanh.f32 %v1294_v25  ;;  %v1295_v42 = vmul.f32 0.7978846, %v1291_v39  ;;  %v1292_v34 = vadd.f32 %v1288_v40, %v1274_v28  ;;  %v1289_v43 = vmul.f32 0.044715, %v1285_v41  ;;  %5481 = vmatpush3.msra.mxu1 %v1407_v17  ;;  %v1404_v25 = vld [vmem:[%s7186_s29 + $0x18] sm:$0xff]  ;;  %v1403_v40 = vld [vmem:[%s7186_s29 + $0x10] sm:$0xff] }
 0x803   :  { %5482 = vmatprep.subr.mxu1 %v1406_v33  ;;  %v1422_v39 = vld [vmem:[%s7187_s3 + $0x18] sm:$0xff]  ;;  %v1421_v41 = vld [vmem:[%s7187_s3 + $0x10] sm:$0xff]  ;;  %v4870_v31 = vld [vmem:[%s7195_s10] ss:$0 sm:$0xff] }
 0x804   :  { %5897 = vtanh.f32 %v1295_v42  ;;  %v1296_v44 = vmul.f32 0.7978846, %v1292_v34  ;;  %v1293_v45 = vadd.f32 %v1289_v43, %v1276_v32  ;;  %5483 = vmatpush3.msra.mxu1 %v1406_v33  ;;  %v1402_v42 = vld [vmem:[%s7186_s29 + $0x8] sm:$0xff]  ;;  %v1401_v43 = vld [vmem:[%s7186_s29] sm:$0xff] }
 0x805   :  { %5484 = vmatprep.subr.mxu1 %v1405_v37  ;;  %v1420_v34 = vld [vmem:[%s7187_s3 + $0x8] sm:$0xff] }
 0x806   :  { %5899 = vtanh.f32 %v1296_v44  ;;  %v1297_v46 = vmul.f32 0.7978846, %v1293_v45  ;;  %5485 = vmatpush3.msra.mxu1 %v1405_v37  ;;  %v1419_v44 = vld [vmem:[%s7187_s3] sm:$0xff]  ;;  %v1417_v45 = vld [vmem:[%s7188_s8 + $0x38] sm:$0xff] }
 0x807   :  { %5486 = vmatprep.subr.mxu1 %v1404_v25 }
 0x808   :  { %5901 = vtanh.f32 %v1297_v46  ;;  %5487 = vmatpush3.msra.mxu1 %v1404_v25 }
 0x809   :  { %5488 = vmatprep.subr.mxu1 %v1403_v40 }
 0x80a   :  { %5489 = vmatpush3.msra.mxu1 %v1403_v40 }
 0x80b   :  { %5490 = vmatprep.subr.mxu1 %v1402_v42 }
 0x80c   :  { %5491 = vmatpush3.msra.mxu1 %v1402_v42 }
 0x80d   :  { %5492 = vmatprep.subr.mxu1 %v1401_v43 }
 0x80e   :  { %5493 = vmatpush3.msra.mxu1 %v1401_v43 }
 0x80f   :  { %v5896_v47 = vpop.eup %5895  ;;  %5497 = vmatprep.subr.mxu1 %v1417_v45 }
 0x810   :  { %v1302_v48 = vadd.f32 1.0, %v5896_v47 }
 0x811   :  { %v5898_v50 = vpop.eup %5897 }
 0x812   :  { %v1303_v52 = vadd.f32 1.0, %v5898_v50  ;;  %v1306_v54 = vmul.f32 0.5, %v1302_v48 }
 0x813   :  { %v5900_v53 = vpop.eup %5899 }
 0x814   :  { %v1307_v55 = vmul.f32 0.5, %v1303_v52  ;;  %v1304_v56 = vadd.f32 1.0, %v5900_v53  ;;  %v1310_v58 = vmul.f32 %v1306_v54, %v1268_v18 }
 0x815   :  { %v5902_v9 = vpop.eup %5901 }
 0x816   :  { %v1311_v57 = vmul.f32 %v1307_v55, %v1270_v23  ;;  %v1305_v8 = vadd.f32 1.0, %v5902_v9  ;;  %v1308_v59 = vmul.f32 0.5, %v1304_v56  ;;  %v4866_v55 = vld [vmem:[%s7189_s14] ss:$0 sm:$0xff] }
 0x817   :  { %v4868_v56 = vld [vmem:[%s7190_s19] ss:$0 sm:$0xff] }
 0x818   :  { %1384 = vmatprep.mubr.f32.mxu0 %v1311_v57  ;;  %v1309_v60 = vmul.f32 0.5, %v1305_v8  ;;  %v1312_v62 = vmul.f32 %v1308_v59, %v1274_v28  ;;  %v4867_v57 = vld [vmem:[%s7191_s24] ss:$0 sm:$0xff] }
 0x819   :  { %1385 = vmatmul.mubr.f32.vlgmr.msra.gmra.mxu0 %v1310_v58  ;;  %v4869_v8 = vld [vmem:[%s7192_s30] ss:$0 sm:$0xff] }
 0x81a   :  { %v1313_v61 = vmul.f32 %v1309_v60, %v1276_v32  ;;  %v1425_v32 = vld [vmem:[%s7187_s3 + $0x30] sm:$0xff]  ;;  %5517 = vmatpush3.msra.mxu0 %v1426_v24 }
 0x81b   :  { %5518 = vmatprep.subr.mxu0 %v1425_v32 }
 0x81c   :  { %1389 = vmatprep.mubr.f32.mxu0 %v1313_v61  ;;  %5519 = vmatpush3.msra.mxu0 %v1425_v32 }
 0x81d   :  { %1390 = vmatmul.mubr.f32.gmra.mxu0 %v1312_v62  ;;  %5520 = vmatprep.subr.mxu0 %v1424_v36 }
 0x81e   :  { %5521 = vmatpush3.msra.mxu0 %v1424_v36 }
 0x81f   :  { %5522 = vmatprep.subr.mxu0 %v1423_v38 }
 0x820   :  { %5523 = vmatpush3.msra.mxu0 %v1423_v38 }
 0x821   :  { %5524 = vmatprep.subr.mxu0 %v1422_v39 }
 0x822   :  { %5525 = vmatpush3.msra.mxu0 %v1422_v39 }
 0x823   :  { %5526 = vmatprep.subr.mxu0 %v1421_v41 }
 0x824   :  { %5527 = vmatpush3.msra.mxu0 %v1421_v41 }
 0x825   :  { %5528 = vmatprep.subr.mxu0 %v1420_v34 }
 0x826   :  { %5529 = vmatpush3.msra.mxu0 %v1420_v34 }
 0x827   :  { %5530 = vmatprep.subr.mxu0 %v1419_v44 }
 0x828   :  { %5531 = vmatpush3.msra.mxu0 %v1419_v44 }
 0x8d9   :  { %v5130_v63 = vpop.f32.mrf.mxu0 }
 0x8db   :  { %v5131_v1 = vpop.f32.mrf.mxu0 }
 0x8dc   :  { %v5132_v2 = vadd.f32 %v5131_v1, %v5130_v63 }
 0x8dd   :  { %v5133_v3 = vpop.f32.mrf.mxu0 }
 0x8de   :  { %v1387_v4 = vadd.f32 %v5132_v2, %v4865_v0 }
 0x8df   :  { %v5134_v5 = vpop.f32.mrf.mxu0 }
 0x8e0   :  { %v6610_v6 = vadd.f32 %v1387_v4, %v6538_v51  ;;  %v5135_v10 = vadd.f32 %v5134_v5, %v5133_v3  ;;  %v1416_v4 = vld [vmem:[%s7188_s8 + $0x30] sm:$0xff]  ;;  %v1415_v5 = vld [vmem:[%s7188_s8 + $0x28] sm:$0xff] }
 0x8e2   :  { %v1392_v12 = vadd.f32 %v5135_v10, %v4865_v0  ;;  %v1437_v14 = vsel %vm273_vm1, %v6610_v6, 0.0  ;;  %v1414_v10 = vld [vmem:[%s7188_s8 + $0x20] sm:$0xff] }
 0x8e3   :  { %1438 = vadd.xlane.f32.xlu0 %v1437_v14  ;;  %v1412_v14 = vld [vmem:[%s7188_s8 + $0x10] sm:$0xff] }
 0x8e4   :  { %v6615_v15 = vadd.f32 %v1392_v12, %v6535_v49  ;;  %v1413_v12 = vld [vmem:[%s7188_s8 + $0x18] sm:$0xff] }
 0x8e6   :  { %v1440_v18 = vsel %vm273_vm1, %v6615_v15, 0.0 }
 0x8e7   :  { %1441 = vadd.xlane.f32.xlu1 %v1440_v18  ;;  %v1411_v18 = vld [vmem:[%s7188_s8 + $0x8] sm:$0xff] }
 0x96c   :  { %v1439_v19 = vpop.xlane.xlu0 %1438 }
 0x96d   :  { %v1443_v20 = vmul.f32 0.015625, %v1439_v19  ;;  %v1410_v19 = vld [vmem:[%s7188_s8] sm:$0xff] }
 0x96f   :  { %v6620_v51 = vsub.f32 %v6610_v6, %v1443_v20  ;;  %v4876_v20 = vld [vmem:[%s7193_s6] ss:$0 sm:$0xff] }
 0x970   :  { %v1442_v23 = vpop.xlane.xlu1 %1441 }
 0x971   :  { %v1444_v16 = vmul.f32 0.015625, %v1442_v23  ;;  %v1447_v26 = vmul.f32 %v6620_v51, %v6620_v51 }
 0x973   :  { %v6625_v49 = vsub.f32 %v6615_v15, %v1444_v16  ;;  %v1449_v27 = vsel %vm273_vm1, %v1447_v26, 0.0 }
 0x974   :  { %1450 = vadd.xlane.f32.xlu0 %v1449_v27  ;;  %v4873_v27 = vld [vmem:[%s7194_s7] ss:$0 sm:$0xff] }
 0x975   :  { %v1448_v28 = vmul.f32 %v6625_v49, %v6625_v49 }
 0x977   :  { %v1452_v29 = vsel %vm273_vm1, %v1448_v28, 0.0 }
 0x978   :  { %1453 = vadd.xlane.f32.xlu1 %v1452_v29 }
 0x9fd   :  { %v1451_v46 = vpop.xlane.xlu0 %1450 }
 0x9fe   :  { %v1455_v47 = vmul.f32 0.015625, %v1451_v46 }
 0xa00   :  { %v1457_v48 = vadd.f32 1e-05, %v1455_v47 }
 0xa01   :  { %v1454_v50 = vpop.xlane.xlu1 %1453 }
 0xa02   :  { %5903 = vrsqrt.f32 %v1457_v48  ;;  %v1456_v52 = vmul.f32 0.015625, %v1454_v50 }
 0xa04   :  { %v1458_v53 = vadd.f32 1e-05, %v1456_v52 }
 0xa06   :  { %5905 = vrsqrt.f32 %v1458_v53 }
 0xa0f   :  { %v5904_v54 = vpop.eup %5903 }
 0xa10   :  { %v1461_v9 = vmul.f32 %v5904_v54, %v6620_v51 }
 0xa12   :  { %v1469_v58 = vmul.f32 %v4866_v55, %v1461_v9  ;;  %v1485_v59 = vmul.f32 %v4868_v56, %v1461_v9  ;;  %v1433_v9 = vld [vmem:[%s7196_s11 + $0x28] sm:$0xff] }
 0xa13   :  { %v5906_v60 = vpop.eup %5905 }
 0xa14   :  { %v1462_v61 = vmul.f32 %v5906_v60, %v6625_v49  ;;  %v1477_v62 = vadd.f32 %v4867_v57, %v1469_v58  ;;  %v1493_v63 = vadd.f32 %v4869_v8, %v1485_v59  ;;  %v1430_v58 = vld [vmem:[%s7196_s11 + $0x10] sm:$0xff] }
 0xa16   :  { %v1470_v0 = vmul.f32 %v4866_v55, %v1462_v61  ;;  %5494 = vmatprep.mubr.msk.f32.mxu1 %vm273_vm1, %v1477_v62  ;;  %v1486_v1 = vmul.f32 %v4868_v56, %v1462_v61  ;;  %5532 = vmatprep.mubr.msk.f32.mxu0 %vm273_vm1, %v1493_v63  ;;  %v1435_v55 = vld [vmem:[%s7196_s11 + $0x38] sm:$0xff]  ;;  %v1434_v56 = vld [vmem:[%s7196_s11 + $0x30] sm:$0xff] }
 0xa17   :  { %5555 = vmatprep.subr.mxu0 %v1435_v55 }
 0xa18   :  { %v1478_v2 = vadd.f32 %v4867_v57, %v1470_v0  ;;  %v1494_v3 = vadd.f32 %v4869_v8, %v1486_v1  ;;  %v1432_v57 = vld [vmem:[%s7196_s11 + $0x20] sm:$0xff]  ;;  %v1431_v8 = vld [vmem:[%s7196_s11 + $0x18] sm:$0xff]  ;;  %v1429_v1 = vld [vmem:[%s7196_s11 + $0x8] sm:$0xff] }
 0xa1a   :  { %5495 = vmatmul.mubr.msk.f32.vlgmr.msra.gmra.mxu1 %vm273_vm1, %v1478_v2  ;;  %5533 = vmatmul.mubr.msk.f32.vlgmr.msra.gmra.mxu0 %vm273_vm1, %v1494_v3  ;;  %v1428_v2 = vld [vmem:[%s7196_s11] sm:$0xff] }
 0xa1b   :  { %5498 = vmatpush3.msra.mxu1 %v1417_v45  ;;  %5513 = vmatprep.mubr.msk.f32.mxu1 %vm273_vm1, %v1493_v63 }
 0xa1c   :  { %5499 = vmatprep.subr.mxu1 %v1416_v4  ;;  %5556 = vmatpush3.msra.mxu0 %v1435_v55 }
 0xa1d   :  { %5500 = vmatpush3.msra.mxu1 %v1416_v4  ;;  %5557 = vmatprep.subr.mxu0 %v1434_v56 }
 0xa1e   :  { %5501 = vmatprep.subr.mxu1 %v1415_v5  ;;  %5558 = vmatpush3.msra.mxu0 %v1434_v56 }
 0xa1f   :  { %5502 = vmatpush3.msra.mxu1 %v1415_v5  ;;  %5559 = vmatprep.subr.mxu0 %v1433_v9 }
 0xa20   :  { %5503 = vmatprep.subr.mxu1 %v1414_v10  ;;  %5560 = vmatpush3.msra.mxu0 %v1433_v9 }
 0xa21   :  { %5504 = vmatpush3.msra.mxu1 %v1414_v10  ;;  %5561 = vmatprep.subr.mxu0 %v1432_v57 }
 0xa22   :  { %5505 = vmatprep.subr.mxu1 %v1413_v12  ;;  %5562 = vmatpush3.msra.mxu0 %v1432_v57 }
 0xa23   :  { %5506 = vmatpush3.msra.mxu1 %v1413_v12  ;;  %5563 = vmatprep.subr.mxu0 %v1431_v8  ;;  %v4885_v12 = vld [vmem:[%s7197_s15] ss:$0 sm:$0xff] }
 0xa24   :  { %5507 = vmatprep.subr.mxu1 %v1412_v14  ;;  %5564 = vmatpush3.msra.mxu0 %v1431_v8 }
 0xa25   :  { %5508 = vmatpush3.msra.mxu1 %v1412_v14  ;;  %5565 = vmatprep.subr.mxu0 %v1430_v58 }
 0xa26   :  { %5509 = vmatprep.subr.mxu1 %v1411_v18  ;;  %5566 = vmatpush3.msra.mxu0 %v1430_v58 }
 0xa27   :  { %5510 = vmatpush3.msra.mxu1 %v1411_v18  ;;  %5567 = vmatprep.subr.mxu0 %v1429_v1 }
 0xa28   :  { %5511 = vmatprep.subr.mxu1 %v1410_v19  ;;  %5568 = vmatpush3.msra.mxu0 %v1429_v1  ;;  %v2212_v1 = vld [vmem:[%s7201_s23 + $0xf8] sm:$0xff] }
 0xa29   :  { %5512 = vmatpush3.msra.mxu1 %v1410_v19  ;;  %5569 = vmatprep.subr.mxu0 %v1428_v2 }
 0xa2a   :  { %5514 = vmatmul.mubr.msk.f32.vlgmr.msra.gmra.mxu1 %vm273_vm1, %v1494_v3  ;;  %5535 = vmatprep.subr.mxu1 %v6092_v35 }
 0xa2b   :  { %5537 = vmatprep.mubr.msk.f32.mxu1 %vm6093_vm2, %v6092_v35  ;;  %5570 = vmatpush3.msra.mxu0 %v1428_v2  ;;  %v2196_v2 = vld [vmem:[%s7201_s23 + $0x78] sm:$0xff] }
 0xa2c   :  { %5184 = vmatprep.subr.mxu0 %v2212_v1 }
 0xada   :  { %v5534_v51 = vpop.f32.mrf.mxu0  ;;  %v5496_v16 = vpop.f32.mrf.mxu1 }
 0xadb   :  { %v6671_v23 = vadd.f32 %v5534_v51, %v4876_v20  ;;  %v1579_v33 = vadd.f32 %v5496_v16, %v4870_v31 }
 0xadc   :  { %v1573_v26 = vpop.f32.mrf.mxu1  ;;  %v1741_v32 = vpop.f32.mrf.mxu0 }
 0xadd   :  { %v1574_v24 = vadd.f32 %v4870_v31, %v1573_v26  ;;  %v1742_v36 = vadd.f32 %v4876_v20, %v1741_v32 }
 0xaea   :  { %v5515_v49 = vpop.f32.mrf.mxu1 }
 0xaeb   :  { %v1666_v17 = vadd.f32 %v5515_v49, %v4873_v27 }
 0xaec   :  { %v1660_v28 = vpop.f32.mrf.mxu1 }
 0xaed   :  { %v1661_v29 = vadd.f32 %v4873_v27, %v1660_v28 }
 0xaef   :  { %5536 = vmatpush3.xpose.msk.msra.mxu1 %vm273_vm1, %v1661_v29 }
 0xaf0   :  { %5540 = vmatprep.subr.mxu1 %v6092_v35 }
 0xaf2   :  { %5538 = vmatmul.mubr.msk.f32.vlgmr.msra.gmra.mxu1 %vm273_vm1, %v1574_v24 }
 0xaf3   :  { %5541 = vmatpush3.xpose.msk.msra.mxu1 %vm273_vm1, %v1666_v17  ;;  %5542 = vmatprep.mubr.msk.f32.mxu1 %vm6093_vm2, %v6092_v35 }
 0xaf4   :  { %5545 = vmatprep.subr.mxu1 %v6092_v35 }
 0xaf6   :  { %5543 = vmatmul.mubr.msk.f32.vlgmr.msra.gmra.mxu1 %vm273_vm1, %v1579_v33  ;;  %v2179_v33 = vld [vmem:[%s7198_s16 + $0x78] sm:$0xff] }
 0xaf7   :  { %5546 = vmatpush3.msra.mxu1 %v1742_v36  ;;  %5547 = vmatprep.mubr.msk.f32.mxu1 %vm6093_vm2, %v6092_v35  ;;  %v2178_v36 = vld [vmem:[%s7198_s16 + $0x70] sm:$0xff] }
 0xaf8   :  { %5550 = vmatprep.subr.mxu1 %v6092_v35 }
 0xbb2   :  { %v1822_v37 = vpop.f32.mrf.mxu1 }
 0xbb3   :  { %v1902_v38 = vmul.f32 0.125, %v1822_v37  ;;  %v2177_v37 = vld [vmem:[%s7198_s16 + $0x68] sm:$0xff] }
 0xbb4   :  { %v5539_v25 = vpop.f32.mrf.mxu1 }
 0xbb5   :  { %v1905_v39 = vsel %vm1904_vm4, %v1902_v38, -inf  ;;  %v2175_v25 = vld [vmem:[%s7198_s16 + $0x58] sm:$0xff] }
 0xbb6   :  { %1906 = vmax.xlane.f32.xlu0 %v1905_v39  ;;  %v1898_v40 = vpop.f32.mrf.mxu1  ;;  %v2174_v39 = vld [vmem:[%s7198_s16 + $0x50] sm:$0xff] }
 0xbb7   :  { %v1903_v41 = vmul.f32 0.125, %v1898_v40  ;;  %v2173_v40 = vld [vmem:[%s7198_s16 + $0x48] sm:$0xff] }
 0xbb8   :  { %v5544_v42 = vpop.f32.mrf.mxu1 }
 0xbb9   :  { %v1908_v34 = vsel %vm1904_vm4, %v1903_v41, -inf  ;;  %v2171_v42 = vld [vmem:[%s7198_s16 + $0x38] sm:$0xff] }
 0xbba   :  { %1909 = vmax.xlane.f32.xlu1 %v1908_v34  ;;  %v2170_v34 = vld [vmem:[%s7198_s16 + $0x30] sm:$0xff] }
 0xc3f   :  { %v1907_v43 = vpop.xlane.xlu0 %1906 }
 0xc40   :  { %v1911_v44 = vsub.f32 %v1902_v38, %v1907_v43  ;;  %v2176_v38 = vld [vmem:[%s7198_s16 + $0x60] sm:$0xff]  ;;  %v2169_v43 = vld [vmem:[%s7198_s16 + $0x28] sm:$0xff] }
 0xc42   :  { %v1913_v45 = vmul.f32 1.442695, %v1911_v44  ;;  %v2168_v44 = vld [vmem:[%s7198_s16 + $0x20] sm:$0xff] }
 0xc43   :  { %v1910_v46 = vpop.xlane.xlu1 %1909 }
 0xc44   :  { %5907 = vpow2.f32 %v1913_v45  ;;  %v1912_v47 = vsub.f32 %v1903_v41, %v1910_v46  ;;  %v2172_v41 = vld [vmem:[%s7198_s16 + $0x40] sm:$0xff]  ;;  %v2167_v45 = vld [vmem:[%s7198_s16 + $0x18] sm:$0xff]  ;;  %v2166_v46 = vld [vmem:[%s7198_s16 + $0x10] sm:$0xff] }
 0xc46   :  { %v1915_v48 = vmul.f32 1.442695, %v1912_v47  ;;  %v2165_v47 = vld [vmem:[%s7198_s16 + $0x8] sm:$0xff] }
 0xc48   :  { %5909 = vpow2.f32 %v1915_v48  ;;  %v2164_v48 = vld [vmem:[%s7198_s16] sm:$0xff] }
 0xc51   :  { %v5908_v50 = vpop.eup %5907 }
 0xc52   :  { %v1917_v52 = vsel %vm1904_vm4, %v5908_v50, 0.0 }
 0xc53   :  { %1918 = vadd.xlane.f32.xlu0 %v1917_v52 }
 0xc55   :  { %v5910_v53 = vpop.eup %5909 }
 0xc56   :  { %v1920_v54 = vsel %vm1904_vm4, %v5910_v53, 0.0 }
 0xc57   :  { %1921 = vadd.xlane.f32.xlu1 %v1920_v54 }
 0xcdc   :  { %v1919_v59 = vpop.xlane.xlu0 %1918 }
 0xcdd   :  { %5911 = vrcp.f32 %v1919_v59  ;;  %v4888_v59 = vld [vmem:[%s7199_s18] ss:$0 sm:$0xff] }
 0xce0   :  { %v1922_v60 = vpop.xlane.xlu1 %1921 }
 0xce1   :  { %5913 = vrcp.f32 %v1922_v60 }
 0xcea   :  { %v5912_v61 = vpop.eup %5911 }
 0xceb   :  { %v1925_v62 = vmul.f32 %v5912_v61, %v5908_v50  ;;  %v4889_v61 = vld [vmem:[%s7200_s22] ss:$0 sm:$0xff] }
 0xced   :  { %5548 = vmatmul.mubr.msk.f32.vlgmr.msra.gmra.mxu1 %vm1904_vm4, %v1925_v62 }
 0xcee   :  { %v5914_v63 = vpop.eup %5913  ;;  %5551 = vmatpush3.msra.mxu1 %v6671_v23  ;;  %5552 = vmatprep.mubr.msk.f32.mxu1 %vm6093_vm2, %v6092_v35 }
 0xcef   :  { %v1926_v0 = vmul.f32 %v5914_v63, %v5910_v53  ;;  %2289 = vmatprep.subr.mxu1 %v2179_v33  ;;  %v2185_v33 = vld [vmem:[%s7201_s23 + $0x20] sm:$0xff] }
 0xcf1   :  { %5553 = vmatmul.mubr.msk.f32.vlgmr.msra.gmra.mxu1 %vm1904_vm4, %v1926_v0 }
 0xcf2   :  { %2337 = vmatprep.mubr.f32.mxu1 %v6092_v35  ;;  %2290 = vmatpush1.msra.mxu1 %v2178_v36  ;;  %v2200_v36 = vld [vmem:[%s7201_s23 + $0x98] sm:$0xff] }
 0xcf3   :  { %2291 = vmatprep.subr.mxu1 %v2177_v37  ;;  %v2184_v37 = vld [vmem:[%s7201_s23 + $0x18] sm:$0xff] }
 0xcf4   :  { %2292 = vmatpush1.msra.mxu1 %v2176_v38  ;;  %v2199_v38 = vld [vmem:[%s7201_s23 + $0x90] sm:$0xff] }
 0xcf5   :  { %2293 = vmatprep.subr.mxu1 %v2175_v25  ;;  %v2183_v25 = vld [vmem:[%s7201_s23 + $0x10] sm:$0xff] }
 0xcf6   :  { %2294 = vmatpush1.msra.mxu1 %v2174_v39  ;;  %v2198_v39 = vld [vmem:[%s7201_s23 + $0x88] sm:$0xff] }
 0xcf7   :  { %2295 = vmatprep.subr.mxu1 %v2173_v40  ;;  %v2182_v40 = vld [vmem:[%s7201_s23 + $0x8] sm:$0xff] }
 0xcf8   :  { %2296 = vmatpush1.msra.mxu1 %v2172_v41  ;;  %v2197_v41 = vld [vmem:[%s7201_s23 + $0x80] sm:$0xff] }
 0xcf9   :  { %2297 = vmatprep.subr.mxu1 %v2171_v42  ;;  %v2181_v42 = vld [vmem:[%s7201_s23] sm:$0xff] }
 0xcfa   :  { %2298 = vmatpush1.msra.mxu1 %v2170_v34  ;;  %v2180_v34 = vld [vmem:[%s7202_s26] sm:$0x3] }
 0xcfb   :  { %2299 = vmatprep.subr.mxu1 %v2169_v43  ;;  %v2260_v43 = vrot.slane %v2180_v34, %v6601_v7 }
 0xcfc   :  { %2300 = vmatpush1.msra.mxu1 %v2168_v44  ;;  %v2264_v44 = vrot.slane %v2180_v34, %v6604_v11 }
 0xcfd   :  { %2301 = vmatprep.subr.mxu1 %v2167_v45 }
 0xcfe   :  { %2302 = vmatpush1.msra.mxu1 %v2166_v46 }
 0xcff   :  { %2303 = vmatprep.subr.mxu1 %v2165_v47 }
 0xd00   :  { %2304 = vmatpush1.msra.mxu1 %v2164_v48 }
 0xdad   :  { %v1996_v3 = vpop.f32.mrf.mxu1 }
 0xdae   :  { %5571 = vmatprep.mubr.msk.f32.mxu0 %vm273_vm1, %v1996_v3  ;;  %v2211_v3 = vld [vmem:[%s7201_s23 + $0xf0] sm:$0xff] }
 0xdaf   :  { %v5549_v4 = vpop.f32.mrf.mxu1 }
 0xdb0   :  { %v2195_v4 = vld [vmem:[%s7201_s23 + $0x70] sm:$0xff] }
 0xdb1   :  { %v2069_v5 = vpop.f32.mrf.mxu1 }
 0xdb2   :  { %5572 = vmatmul.mubr.msk.f32.vlgmr.msra.gmra.mxu0 %vm273_vm1, %v2069_v5  ;;  %v2210_v5 = vld [vmem:[%s7201_s23 + $0xe8] sm:$0xff] }
 0xdb3   :  { %v5554_v10 = vpop.f32.mrf.mxu1  ;;  %5185 = vmatpush3.msra.mxu0 %v2196_v2 }
 0xdb4   :  { %5186 = vmatprep.subr.mxu0 %v2211_v3  ;;  %v2194_v10 = vld [vmem:[%s7201_s23 + $0x68] sm:$0xff] }
 0xdb5   :  { %5187 = vmatpush3.msra.mxu0 %v2195_v4 }
 0xdb6   :  { %5188 = vmatprep.subr.mxu0 %v2210_v5 }
 0xdb7   :  { %5189 = vmatpush3.msra.mxu0 %v2194_v10 }
 0xe72   :  { %v5573_v14 = vpop.f32.mrf.mxu0 }
 0xe73   :  { %v2157_v18 = vadd.f32 %v5573_v14, %v4885_v12  ;;  %v2193_v14 = vld [vmem:[%s7201_s23 + $0x60] sm:$0xff] }
 0xe74   :  { %v2151_v19 = vpop.f32.mrf.mxu0 }
 0xe75   :  { %v6708_v20 = vadd.f32 %v2157_v18, %v6615_v15  ;;  %v2152_v51 = vadd.f32 %v4885_v12, %v2151_v19  ;;  %v2209_v12 = vld [vmem:[%s7201_s23 + $0xe0] sm:$0xff]  ;;  %v2208_v18 = vld [vmem:[%s7201_s23 + $0xd8] sm:$0xff] }
 0xe76   :  { %5190 = vmatprep.subr.mxu0 %v2209_v12  ;;  %v2192_v19 = vld [vmem:[%s7201_s23 + $0x58] sm:$0xff] }
 0xe77   :  { %v6711_v23 = vadd.f32 %v2152_v51, %v6610_v6  ;;  %v2217_v16 = vsel %vm273_vm1, %v6708_v20, 0.0  ;;  %5191 = vmatpush3.msra.mxu0 %v2193_v14  ;;  %v2207_v51 = vld [vmem:[%s7201_s23 + $0xd0] sm:$0xff] }
 0xe78   :  { %2218 = vadd.xlane.f32.xlu1 %v2217_v16  ;;  %5192 = vmatprep.subr.mxu0 %v2208_v18  ;;  %v2191_v16 = vld [vmem:[%s7201_s23 + $0x50] sm:$0xff] }
 0xe79   :  { %v2214_v26 = vsel %vm273_vm1, %v6711_v23, 0.0  ;;  %5193 = vmatpush3.msra.mxu0 %v2192_v19 }
 0xe7a   :  { %2215 = vadd.xlane.f32.xlu0 %v2214_v26  ;;  %5194 = vmatprep.subr.mxu0 %v2207_v51  ;;  %v2206_v26 = vld [vmem:[%s7201_s23 + $0xc8] sm:$0xff] }
 0xe7b   :  { %5195 = vmatpush3.msra.mxu0 %v2191_v16 }
 0xe7c   :  { %5196 = vmatprep.subr.mxu0 %v2206_v26 }
 0xf01   :  { %v2219_v49 = vpop.xlane.xlu1 %2218 }
 0xf02   :  { %v2221_v27 = vmul.f32 0.015625, %v2219_v49  ;;  %v2190_v49 = vld [vmem:[%s7201_s23 + $0x48] sm:$0xff] }
 0xf03   :  { %v2216_v28 = vpop.xlane.xlu0 %2215  ;;  %5197 = vmatpush3.msra.mxu0 %v2190_v49 }
 0xf04   :  { %v2223_v15 = vsub.f32 %v6708_v20, %v2221_v27  ;;  %v2220_v29 = vmul.f32 0.015625, %v2216_v28  ;;  %v2205_v27 = vld [vmem:[%s7201_s23 + $0xc0] sm:$0xff] }
 0xf05   :  { %5198 = vmatprep.subr.mxu0 %v2205_v27  ;;  %v2189_v28 = vld [vmem:[%s7201_s23 + $0x40] sm:$0xff] }
 0xf06   :  { %v2222_v6 = vsub.f32 %v6711_v23, %v2220_v29  ;;  %v2225_v31 = vmul.f32 %v2223_v15, %v2223_v15  ;;  %v2188_v29 = vld [vmem:[%s7201_s23 + $0x38] sm:$0xff]  ;;  %5199 = vmatpush3.msra.mxu0 %v2189_v28 }
 0xf08   :  { %v2229_v24 = vsel %vm273_vm1, %v2225_v31, 0.0  ;;  %v2224_v17 = vmul.f32 %v2222_v6, %v2222_v6  ;;  %v2187_v31 = vld [vmem:[%s7201_s23 + $0x30] sm:$0xff] }
 0xf09   :  { %2230 = vadd.xlane.f32.xlu1 %v2229_v24  ;;  %v2202_v24 = vld [vmem:[%s7201_s23 + $0xa8] sm:$0xff] }
 0xf0a   :  { %v2226_v32 = vsel %vm273_vm1, %v2224_v17, 0.0  ;;  %v2186_v17 = vld [vmem:[%s7201_s23 + $0x28] sm:$0xff] }
 0xf0b   :  { %2227 = vadd.xlane.f32.xlu0 %v2226_v32  ;;  %v2201_v32 = vld [vmem:[%s7201_s23 + $0xa0] sm:$0xff] }
 0xf92   :  { %v2231_v50 = vpop.xlane.xlu1 %2230 }
 0xf93   :  { %v2233_v52 = vmul.f32 0.015625, %v2231_v50 }
 0xf94   :  { %v2228_v53 = vpop.xlane.xlu0 %2227 }
 0xf95   :  { %v2235_v54 = vadd.f32 1e-05, %v2233_v52  ;;  %v2232_v55 = vmul.f32 0.015625, %v2228_v53 }
 0xf97   :  { %5915 = vrsqrt.f32 %v2235_v54  ;;  %v2234_v56 = vadd.f32 1e-05, %v2232_v55 }
 0xf99   :  { %5917 = vrsqrt.f32 %v2234_v56 }
 0xfa4   :  { %v5916_v9 = vpop.eup %5915 }
 0xfa5   :  { %v2239_v58 = vmul.f32 %v5916_v9, %v2223_v15  ;;  %v2204_v15 = vld [vmem:[%s7201_s23 + $0xb8] sm:$0xff] }
 0xfa6   :  { %v5918_v57 = vpop.eup %5917  ;;  %5200 = vmatprep.subr.mxu0 %v2204_v15 }
 0xfa7   :  { %v2238_v8 = vmul.f32 %v5918_v57, %v2222_v6  ;;  %v2247_v63 = vmul.f32 %v4888_v59, %v2239_v58  ;;  %v2203_v6 = vld [vmem:[%s7201_s23 + $0xb0] sm:$0xff]  ;;  %5201 = vmatpush3.msra.mxu0 %v2188_v29 }
 0xfa8   :  { %5202 = vmatprep.subr.mxu0 %v2203_v6 }
 0xfa9   :  { %v2246_v60 = vmul.f32 %v4888_v59, %v2238_v8  ;;  %v2255_v0 = vadd.f32 %v4889_v61, %v2247_v63  ;;  %5203 = vmatpush3.msra.mxu0 %v2187_v31 }
 0xfaa   :  { %5204 = vmatprep.subr.mxu0 %v2202_v24 }
 0xfab   :  { %v2254_v62 = vadd.f32 %v4889_v61, %v2246_v60  ;;  %5205 = vmatpush3.msra.mxu0 %v2186_v17 }
 0xfac   :  { %5206 = vmatprep.subr.mxu0 %v2201_v32 }
 0xfad   :  { %4890 = vmatmul.mubr.msk.f32.vlgmr.msra.gmra.mxu1 %vm273_vm1, %v2254_v62  ;;  %5207 = vmatpush3.msra.mxu0 %v2185_v33 }
 0xfae   :  { %2343 = vmatprep.mubr.f32.mxu1 %v6092_v35  ;;  %5208 = vmatprep.subr.mxu0 %v2200_v36 }
 0xfaf   :  { %5209 = vmatpush3.msra.mxu0 %v2184_v37  ;;  %v4892_v37 = vld [vmem:[%s7203_s28] ss:$0 sm:$0xff] }
 0xfb0   :  { %5210 = vmatprep.subr.mxu0 %v2199_v38 }
 0xfb1   :  { %4891 = vmatmul.mubr.msk.f32.gmra.mxu1 %vm273_vm1, %v2255_v0  ;;  %5211 = vmatpush3.msra.mxu0 %v2183_v25 }
 0xfb2   :  { %5212 = vmatprep.subr.mxu0 %v2198_v39 }
 0xfb3   :  { %5213 = vmatpush3.msra.mxu0 %v2182_v40 }
 0xfb4   :  { %5214 = vmatprep.subr.mxu0 %v2197_v41 }
 0xfb5   :  { %5215 = vmatpush3.msra.mxu0 %v2181_v42 }
0x106d   :  { %v2339_v45 = vpop.f32.mrf.mxu1 }
0x106e   :  { %v2340_v46 = vadd.f32 %v2339_v45, %v2260_v43 }
0x106f   :  { %v2341_v47 = vpop.f32.mrf.mxu1 }
0x1070   :  { %v2350_v48 = vmul.f32 %v2340_v46, %v2340_v46  ;;  %v2342_v50 = vadd.f32 %v2341_v47, %v2264_v44 }
0x1071   :  { %v2345_v52 = vpop.f32.mrf.mxu1 }
0x1072   :  { %v2354_v53 = vmul.f32 %v2350_v48, %v2340_v46  ;;  %v2351_v54 = vmul.f32 %v2342_v50, %v2342_v50  ;;  %v2346_v55 = vadd.f32 %v2345_v52, %v2260_v43 }
0x1073   :  { %v2347_v56 = vpop.f32.mrf.mxu1 }
0x1074   :  { %v2358_v9 = vmul.f32 0.044715, %v2354_v53  ;;  %v2355_v57 = vmul.f32 %v2351_v54, %v2342_v50  ;;  %v2352_v8 = vmul.f32 %v2346_v55, %v2346_v55  ;;  %v2348_v58 = vadd.f32 %v2347_v56, %v2264_v44 }
0x1076   :  { %v2362_v59 = vadd.f32 %v2358_v9, %v2340_v46  ;;  %v2359_v60 = vmul.f32 0.044715, %v2355_v57  ;;  %v2356_v61 = vmul.f32 %v2352_v8, %v2346_v55  ;;  %v2353_v62 = vmul.f32 %v2348_v58, %v2348_v58  ;;  %v4904_v9 = vld [vmem:[%s7186_s29 + $0x78] sm:$0xff]  ;;  %v4903_v8 = vld [vmem:[%s7186_s29 + $0x70] sm:$0xff] }
0x1077   :  { %v4922_v57 = vld [vmem:[%s7187_s3 + $0x78] sm:$0xff]  ;;  %5574 = vmatprep.subr.mxu1 %v4904_v9 }
0x1078   :  { %v2366_v63 = vmul.f32 0.7978846, %v2362_v59  ;;  %v2363_v0 = vadd.f32 %v2359_v60, %v2342_v50  ;;  %v2360_v1 = vmul.f32 0.044715, %v2356_v61  ;;  %v2357_v2 = vmul.f32 %v2353_v62, %v2348_v58  ;;  %5612 = vmatprep.subr.mxu0 %v4922_v57  ;;  %5575 = vmatpush3.msra.mxu1 %v4904_v9  ;;  %v4902_v59 = vld [vmem:[%s7186_s29 + $0x68] sm:$0xff]  ;;  %v4901_v61 = vld [vmem:[%s7186_s29 + $0x60] sm:$0xff] }
0x1079   :  { %v4920_v60 = vld [vmem:[%s7187_s3 + $0x68] sm:$0xff]  ;;  %5576 = vmatprep.subr.mxu1 %v4903_v8  ;;  %v4919_v62 = vld [vmem:[%s7187_s3 + $0x60] sm:$0xff] }
0x107a   :  { %5919 = vtanh.f32 %v2366_v63  ;;  %v2367_v3 = vmul.f32 0.7978846, %v2363_v0  ;;  %v2364_v4 = vadd.f32 %v2360_v1, %v2346_v55  ;;  %v2361_v5 = vmul.f32 0.044715, %v2357_v2  ;;  %5577 = vmatpush3.msra.mxu1 %v4903_v8  ;;  %v4900_v63 = vld [vmem:[%s7186_s29 + $0x58] sm:$0xff]  ;;  %v4899_v1 = vld [vmem:[%s7186_s29 + $0x50] sm:$0xff] }
0x107b   :  { %5578 = vmatprep.subr.mxu1 %v4902_v59  ;;  %v4918_v0 = vld [vmem:[%s7187_s3 + $0x58] sm:$0xff]  ;;  %v4917_v2 = vld [vmem:[%s7187_s3 + $0x50] sm:$0xff]  ;;  %v4937_v9 = vld [vmem:[%s7195_s10 + $0x1] ss:$0 sm:$0xff] }
0x107c   :  { %5921 = vtanh.f32 %v2367_v3  ;;  %v2368_v10 = vmul.f32 0.7978846, %v2364_v4  ;;  %v2365_v12 = vadd.f32 %v2361_v5, %v2348_v58  ;;  %5579 = vmatpush3.msra.mxu1 %v4902_v59  ;;  %v4898_v3 = vld [vmem:[%s7186_s29 + $0x48] sm:$0xff]  ;;  %v4897_v5 = vld [vmem:[%s7186_s29 + $0x40] sm:$0xff]  ;;  %s7212_s29 = sld [smem:[#allocation39_spill]] }
0x107d   :  { %5580 = vmatprep.subr.mxu1 %v4901_v61  ;;  %v4916_v4 = vld [vmem:[%s7187_s3 + $0x48] sm:$0xff] }
0x107e   :  { %5923 = vtanh.f32 %v2368_v10  ;;  %v2369_v14 = vmul.f32 0.7978846, %v2365_v12  ;;  %5581 = vmatpush3.msra.mxu1 %v4901_v61  ;;  %v4915_v10 = vld [vmem:[%s7187_s3 + $0x40] sm:$0xff]  ;;  %v4913_v12 = vld [vmem:[%s7188_s8 + $0x78] sm:$0xff] }
0x107f   :  { %5582 = vmatprep.subr.mxu1 %v4900_v63 }
0x1080   :  { %5925 = vtanh.f32 %v2369_v14  ;;  %5583 = vmatpush3.msra.mxu1 %v4900_v63 }
0x1081   :  { %5584 = vmatprep.subr.mxu1 %v4899_v1 }
0x1082   :  { %5585 = vmatpush3.msra.mxu1 %v4899_v1 }
0x1083   :  { %5586 = vmatprep.subr.mxu1 %v4898_v3 }
0x1084   :  { %5587 = vmatpush3.msra.mxu1 %v4898_v3 }
0x1085   :  { %5588 = vmatprep.subr.mxu1 %v4897_v5 }
0x1086   :  { %5589 = vmatpush3.msra.mxu1 %v4897_v5 }
0x1087   :  { %v5920_v18 = vpop.eup %5919  ;;  %5593 = vmatprep.subr.mxu1 %v4913_v12 }
0x1088   :  { %v2374_v19 = vadd.f32 1.0, %v5920_v18 }
0x1089   :  { %v5922_v51 = vpop.eup %5921 }
0x108a   :  { %v2375_v16 = vadd.f32 1.0, %v5922_v51  ;;  %v2378_v49 = vmul.f32 0.5, %v2374_v19 }
0x108b   :  { %v5924_v26 = vpop.eup %5923 }
0x108c   :  { %v2379_v27 = vmul.f32 0.5, %v2375_v16  ;;  %v2376_v28 = vadd.f32 1.0, %v5924_v26  ;;  %v2382_v31 = vmul.f32 %v2378_v49, %v2340_v46 }
0x108d   :  { %v5926_v15 = vpop.eup %5925 }
0x108e   :  { %v2383_v29 = vmul.f32 %v2379_v27, %v2342_v50  ;;  %v2377_v6 = vadd.f32 1.0, %v5926_v15  ;;  %v2380_v24 = vmul.f32 0.5, %v2376_v28  ;;  %v4933_v27 = vld [vmem:[%s7189_s14 + $0x1] ss:$0 sm:$0xff]  ;;  %s7215_s14 = sld [smem:[#allocation43_spill]] }
0x108f   :  { %v4935_v28 = vld [vmem:[%s7190_s19 + $0x1] ss:$0 sm:$0xff]  ;;  %s7217_s19 = sld [smem:[#allocation44_spill]] }
0x1090   :  { %2456 = vmatprep.mubr.f32.mxu0 %v2383_v29  ;;  %v2381_v17 = vmul.f32 0.5, %v2377_v6  ;;  %v2384_v33 = vmul.f32 %v2380_v24, %v2346_v55  ;;  %v4934_v29 = vld [vmem:[%s7191_s24 + $0x1] ss:$0 sm:$0xff]  ;;  %s7218_s24 = sld [smem:[#allocation45_spill]] }
0x1091   :  { %2457 = vmatmul.mubr.f32.vlgmr.msra.gmra.mxu0 %v2382_v31  ;;  %v4936_v6 = vld [vmem:[%s7192_s30 + $0x1] ss:$0 sm:$0xff]  ;;  %s7219_s30 = sld [smem:[#allocation47_spill]] }
0x1092   :  { %v2385_v32 = vmul.f32 %v2381_v17, %v2348_v58  ;;  %v4921_v58 = vld [vmem:[%s7187_s3 + $0x70] sm:$0xff]  ;;  %5613 = vmatpush3.msra.mxu0 %v4922_v57  ;;  %s7213_s3 = sld [smem:[#allocation41_spill]] }
0x1093   :  { %5614 = vmatprep.subr.mxu0 %v4921_v58 }
0x1094   :  { %2461 = vmatprep.mubr.f32.mxu0 %v2385_v32  ;;  %5615 = vmatpush3.msra.mxu0 %v4921_v58 }
0x1095   :  { %2462 = vmatmul.mubr.f32.gmra.mxu0 %v2384_v33  ;;  %5616 = vmatprep.subr.mxu0 %v4920_v60 }
0x1096   :  { %5617 = vmatpush3.msra.mxu0 %v4920_v60 }
0x1097   :  { %5618 = vmatprep.subr.mxu0 %v4919_v62 }
0x1098   :  { %5619 = vmatpush3.msra.mxu0 %v4919_v62 }
0x1099   :  { %5620 = vmatprep.subr.mxu0 %v4918_v0 }
0x109a   :  { %5621 = vmatpush3.msra.mxu0 %v4918_v0 }
0x109b   :  { %5622 = vmatprep.subr.mxu0 %v4917_v2 }
0x109c   :  { %5623 = vmatpush3.msra.mxu0 %v4917_v2 }
0x109d   :  { %5624 = vmatprep.subr.mxu0 %v4916_v4 }
0x109e   :  { %5625 = vmatpush3.msra.mxu0 %v4916_v4 }
0x109f   :  { %5626 = vmatprep.subr.mxu0 %v4915_v10 }
0x10a0   :  { %5627 = vmatpush3.msra.mxu0 %v4915_v10 }
0x1151   :  { %v5216_v36 = vpop.f32.mrf.mxu0 }
0x1153   :  { %v5217_v38 = vpop.f32.mrf.mxu0 }
0x1154   :  { %v5218_v25 = vadd.f32 %v5217_v38, %v5216_v36 }
0x1155   :  { %v5219_v39 = vpop.f32.mrf.mxu0 }
0x1156   :  { %v2459_v40 = vadd.f32 %v5218_v25, %v4892_v37 }
0x1157   :  { %v5220_v41 = vpop.f32.mrf.mxu0 }
0x1158   :  { %v6779_v42 = vadd.f32 %v2459_v40, %v6711_v23  ;;  %v5221_v34 = vadd.f32 %v5220_v41, %v5219_v39  ;;  %v4912_v40 = vld [vmem:[%s7188_s8 + $0x70] sm:$0xff]  ;;  %v4911_v41 = vld [vmem:[%s7188_s8 + $0x68] sm:$0xff] }
0x115a   :  { %v2464_v43 = vadd.f32 %v5221_v34, %v4892_v37  ;;  %v2521_v44 = vsel %vm273_vm1, %v6779_v42, 0.0  ;;  %v4910_v34 = vld [vmem:[%s7188_s8 + $0x60] sm:$0xff] }
0x115b   :  { %2522 = vadd.xlane.f32.xlu0 %v2521_v44  ;;  %v4908_v44 = vld [vmem:[%s7188_s8 + $0x50] sm:$0xff] }
0x115c   :  { %v6784_v45 = vadd.f32 %v2464_v43, %v6708_v20  ;;  %v4909_v43 = vld [vmem:[%s7188_s8 + $0x58] sm:$0xff] }
0x115e   :  { %v2524_v46 = vsel %vm273_vm1, %v6784_v45, 0.0 }
0x115f   :  { %2525 = vadd.xlane.f32.xlu1 %v2524_v46  ;;  %v4907_v46 = vld [vmem:[%s7188_s8 + $0x48] sm:$0xff] }
0x11e4   :  { %v2523_v47 = vpop.xlane.xlu0 %2522 }
0x11e5   :  { %v2527_v48 = vmul.f32 0.015625, %v2523_v47  ;;  %v4906_v47 = vld [vmem:[%s7188_s8 + $0x40] sm:$0xff]  ;;  %s7214_s8 = sld [smem:[#allocation42_spill]] }
0x11e7   :  { %v6789_v23 = vsub.f32 %v6779_v42, %v2527_v48  ;;  %v4943_v48 = vld [vmem:[%s7193_s6 + $0x1] ss:$0 sm:$0xff] }
0x11e8   :  { %v2526_v50 = vpop.xlane.xlu1 %2525 }
0x11e9   :  { %v2528_v52 = vmul.f32 0.015625, %v2526_v50  ;;  %v2531_v53 = vmul.f32 %v6789_v23, %v6789_v23 }
0x11eb   :  { %v6794_v20 = vsub.f32 %v6784_v45, %v2528_v52  ;;  %v2533_v54 = vsel %vm273_vm1, %v2531_v53, 0.0 }
0x11ec   :  { %2534 = vadd.xlane.f32.xlu0 %v2533_v54  ;;  %v4940_v54 = vld [vmem:[%s7194_s7 + $0x1] ss:$0 sm:$0xff] }
0x11ed   :  { %v2532_v55 = vmul.f32 %v6794_v20, %v6794_v20 }
0x11ef   :  { %v2536_v56 = vsel %vm273_vm1, %v2532_v55, 0.0 }
0x11f0   :  { %2537 = vadd.xlane.f32.xlu1 %v2536_v56 }
0x1275   :  { %v2535_v14 = vpop.xlane.xlu0 %2534 }
0x1276   :  { %v2539_v18 = vmul.f32 0.015625, %v2535_v14 }
0x1278   :  { %v2541_v19 = vadd.f32 1e-05, %v2539_v18 }
0x1279   :  { %v2538_v51 = vpop.xlane.xlu1 %2537 }
0x127a   :  { %5927 = vrsqrt.f32 %v2541_v19  ;;  %v2540_v16 = vmul.f32 0.015625, %v2538_v51 }
0x127c   :  { %v2542_v26 = vadd.f32 1e-05, %v2540_v16 }
0x127e   :  { %5929 = vrsqrt.f32 %v2542_v26 }
0x1287   :  { %v5928_v49 = vpop.eup %5927 }
0x1288   :  { %v2545_v15 = vmul.f32 %v5928_v49, %v6789_v23 }
0x128a   :  { %v2553_v31 = vmul.f32 %v4933_v27, %v2545_v15  ;;  %v2569_v24 = vmul.f32 %v4935_v28, %v2545_v15  ;;  %v4929_v15 = vld [vmem:[%s7196_s11 + $0x68] sm:$0xff] }
0x128b   :  { %v5930_v17 = vpop.eup %5929 }
0x128c   :  { %v2546_v32 = vmul.f32 %v5930_v17, %v6794_v20  ;;  %v2561_v33 = vadd.f32 %v4934_v29, %v2553_v31  ;;  %v2577_v36 = vadd.f32 %v4936_v6, %v2569_v24  ;;  %v4926_v31 = vld [vmem:[%s7196_s11 + $0x50] sm:$0xff] }
0x128e   :  { %v2554_v37 = vmul.f32 %v4933_v27, %v2546_v32  ;;  %5590 = vmatprep.mubr.msk.f32.mxu1 %vm273_vm1, %v2561_v33  ;;  %v2570_v38 = vmul.f32 %v4935_v28, %v2546_v32  ;;  %5628 = vmatprep.mubr.msk.f32.mxu0 %vm273_vm1, %v2577_v36  ;;  %v4931_v27 = vld [vmem:[%s7196_s11 + $0x78] sm:$0xff]  ;;  %v4930_v28 = vld [vmem:[%s7196_s11 + $0x70] sm:$0xff] }
0x128f   :  { %5651 = vmatprep.subr.mxu0 %v4931_v27 }
0x1290   :  { %v2562_v25 = vadd.f32 %v4934_v29, %v2554_v37  ;;  %v2578_v39 = vadd.f32 %v4936_v6, %v2570_v38  ;;  %v4928_v29 = vld [vmem:[%s7196_s11 + $0x60] sm:$0xff]  ;;  %v4927_v6 = vld [vmem:[%s7196_s11 + $0x58] sm:$0xff]  ;;  %v4925_v38 = vld [vmem:[%s7196_s11 + $0x48] sm:$0xff] }
0x1292   :  { %5591 = vmatmul.mubr.msk.f32.vlgmr.msra.gmra.mxu1 %vm273_vm1, %v2562_v25  ;;  %5629 = vmatmul.mubr.msk.f32.vlgmr.msra.gmra.mxu0 %vm273_vm1, %v2578_v39  ;;  %v4924_v25 = vld [vmem:[%s7196_s11 + $0x40] sm:$0xff] }
0x1293   :  { %5594 = vmatpush3.msra.mxu1 %v4913_v12  ;;  %5609 = vmatprep.mubr.msk.f32.mxu1 %vm273_vm1, %v2577_v36 }
0x1294   :  { %5595 = vmatprep.subr.mxu1 %v4912_v40  ;;  %5652 = vmatpush3.msra.mxu0 %v4931_v27 }
0x1295   :  { %5596 = vmatpush3.msra.mxu1 %v4912_v40  ;;  %5653 = vmatprep.subr.mxu0 %v4930_v28 }
0x1296   :  { %5597 = vmatprep.subr.mxu1 %v4911_v41  ;;  %5654 = vmatpush3.msra.mxu0 %v4930_v28 }
0x1297   :  { %5598 = vmatpush3.msra.mxu1 %v4911_v41  ;;  %5655 = vmatprep.subr.mxu0 %v4929_v15 }
0x1298   :  { %5599 = vmatprep.subr.mxu1 %v4910_v34  ;;  %5656 = vmatpush3.msra.mxu0 %v4929_v15 }
0x1299   :  { %5600 = vmatpush3.msra.mxu1 %v4910_v34  ;;  %5657 = vmatprep.subr.mxu0 %v4928_v29 }
0x129a   :  { %5601 = vmatprep.subr.mxu1 %v4909_v43  ;;  %5658 = vmatpush3.msra.mxu0 %v4928_v29 }
0x129b   :  { %5602 = vmatpush3.msra.mxu1 %v4909_v43  ;;  %5659 = vmatprep.subr.mxu0 %v4927_v6  ;;  %v4952_v43 = vld [vmem:[%s7197_s15 + $0x1] ss:$0 sm:$0xff] }
0x129c   :  { %5603 = vmatprep.subr.mxu1 %v4908_v44  ;;  %5660 = vmatpush3.msra.mxu0 %v4927_v6 }
0x129d   :  { %5604 = vmatpush3.msra.mxu1 %v4908_v44  ;;  %5661 = vmatprep.subr.mxu0 %v4926_v31 }
0x129e   :  { %5605 = vmatprep.subr.mxu1 %v4907_v46  ;;  %5662 = vmatpush3.msra.mxu0 %v4926_v31 }
0x129f   :  { %5606 = vmatpush3.msra.mxu1 %v4907_v46  ;;  %5663 = vmatprep.subr.mxu0 %v4925_v38 }
0x12a0   :  { %5607 = vmatprep.subr.mxu1 %v4906_v47  ;;  %5664 = vmatpush3.msra.mxu0 %v4925_v38 }
0x12a1   :  { %5608 = vmatpush3.msra.mxu1 %v4906_v47  ;;  %5665 = vmatprep.subr.mxu0 %v4924_v25 }
0x12a2   :  { %5610 = vmatmul.mubr.msk.f32.vlgmr.msra.gmra.mxu1 %vm273_vm1, %v2578_v39  ;;  %5631 = vmatprep.subr.mxu1 %v6092_v35 }
0x12a3   :  { %5633 = vmatprep.mubr.msk.f32.mxu1 %vm6093_vm2, %v6092_v35  ;;  %5666 = vmatpush3.msra.mxu0 %v4924_v25 }
0x1352   :  { %v5630_v23 = vpop.f32.mrf.mxu0  ;;  %v5592_v52 = vpop.f32.mrf.mxu1 }
0x1353   :  { %v6840_v50 = vadd.f32 %v5630_v23, %v4943_v48  ;;  %v2663_v59 = vadd.f32 %v5592_v52, %v4937_v9 }
0x1354   :  { %v2657_v53 = vpop.f32.mrf.mxu1  ;;  %v2825_v58 = vpop.f32.mrf.mxu0 }
0x1355   :  { %v2658_v57 = vadd.f32 %v4937_v9, %v2657_v53  ;;  %v2826_v60 = vadd.f32 %v4943_v48, %v2825_v58 }
0x1362   :  { %v5611_v20 = vpop.f32.mrf.mxu1 }
0x1363   :  { %v2750_v8 = vadd.f32 %v5611_v20, %v4940_v54 }
0x1364   :  { %v2744_v55 = vpop.f32.mrf.mxu1 }
0x1365   :  { %v2745_v56 = vadd.f32 %v4940_v54, %v2744_v55 }
0x1367   :  { %5632 = vmatpush3.xpose.msk.msra.mxu1 %vm273_vm1, %v2745_v56 }
0x1368   :  { %5636 = vmatprep.subr.mxu1 %v6092_v35 }
0x136a   :  { %5634 = vmatmul.mubr.msk.f32.vlgmr.msra.gmra.mxu1 %vm273_vm1, %v2658_v57 }
0x136b   :  { %5637 = vmatpush3.xpose.msk.msra.mxu1 %vm273_vm1, %v2750_v8  ;;  %5638 = vmatprep.mubr.msk.f32.mxu1 %vm6093_vm2, %v6092_v35 }
0x136c   :  { %5641 = vmatprep.subr.mxu1 %v6092_v35 }
0x136e   :  { %5639 = vmatmul.mubr.msk.f32.vlgmr.msra.gmra.mxu1 %vm273_vm1, %v2663_v59  ;;  %v4972_v59 = vld [vmem:[%s7198_s16 + $0xf8] sm:$0xff] }
0x136f   :  { %5642 = vmatpush3.msra.mxu1 %v2826_v60  ;;  %5643 = vmatprep.mubr.msk.f32.mxu1 %vm6093_vm2, %v6092_v35  ;;  %v4971_v60 = vld [vmem:[%s7198_s16 + $0xf0] sm:$0xff] }
0x1370   :  { %5646 = vmatprep.subr.mxu1 %v6092_v35 }
0x142a   :  { %v2906_v61 = vpop.f32.mrf.mxu1 }
0x142b   :  { %v2986_v62 = vmul.f32 0.125, %v2906_v61  ;;  %v4970_v61 = vld [vmem:[%s7198_s16 + $0xe8] sm:$0xff] }
0x142c   :  { %v5635_v63 = vpop.f32.mrf.mxu1 }
0x142d   :  { %v2988_v0 = vsel %vm1904_vm4, %v2986_v62, -inf  ;;  %v4968_v63 = vld [vmem:[%s7198_s16 + $0xd8] sm:$0xff] }
0x142e   :  { %2989 = vmax.xlane.f32.xlu0 %v2988_v0  ;;  %v2982_v1 = vpop.f32.mrf.mxu1  ;;  %v4967_v0 = vld [vmem:[%s7198_s16 + $0xd0] sm:$0xff] }
0x142f   :  { %v2987_v2 = vmul.f32 0.125, %v2982_v1  ;;  %v4966_v1 = vld [vmem:[%s7198_s16 + $0xc8] sm:$0xff] }
0x1430   :  { %v5640_v3 = vpop.f32.mrf.mxu1 }
0x1431   :  { %v2991_v4 = vsel %vm1904_vm4, %v2987_v2, -inf  ;;  %v4964_v3 = vld [vmem:[%s7198_s16 + $0xb8] sm:$0xff] }
0x1432   :  { %2992 = vmax.xlane.f32.xlu1 %v2991_v4  ;;  %v4963_v4 = vld [vmem:[%s7198_s16 + $0xb0] sm:$0xff] }
0x14b7   :  { %v2990_v5 = vpop.xlane.xlu0 %2989 }
0x14b8   :  { %v2994_v10 = vsub.f32 %v2986_v62, %v2990_v5  ;;  %v4969_v62 = vld [vmem:[%s7198_s16 + $0xe0] sm:$0xff]  ;;  %v4962_v5 = vld [vmem:[%s7198_s16 + $0xa8] sm:$0xff] }
0x14ba   :  { %v2996_v12 = vmul.f32 1.442695, %v2994_v10  ;;  %v4961_v10 = vld [vmem:[%s7198_s16 + $0xa0] sm:$0xff] }
0x14bb   :  { %v2993_v14 = vpop.xlane.xlu1 %2992 }
0x14bc   :  { %5931 = vpow2.f32 %v2996_v12  ;;  %v2995_v18 = vsub.f32 %v2987_v2, %v2993_v14  ;;  %v4965_v2 = vld [vmem:[%s7198_s16 + $0xc0] sm:$0xff]  ;;  %v4960_v12 = vld [vmem:[%s7198_s16 + $0x98] sm:$0xff]  ;;  %v4959_v14 = vld [vmem:[%s7198_s16 + $0x90] sm:$0xff] }
0x14be   :  { %v2998_v19 = vmul.f32 1.442695, %v2995_v18  ;;  %v4958_v18 = vld [vmem:[%s7198_s16 + $0x88] sm:$0xff] }
0x14c0   :  { %5933 = vpow2.f32 %v2998_v19  ;;  %v4957_v19 = vld [vmem:[%s7198_s16 + $0x80] sm:$0xff] }
0x14c9   :  { %v5932_v51 = vpop.eup %5931 }
0x14ca   :  { %v3000_v16 = vsel %vm1904_vm4, %v5932_v51, 0.0 }
0x14cb   :  { %3001 = vadd.xlane.f32.xlu0 %v3000_v16 }
0x14cd   :  { %v5934_v26 = vpop.eup %5933 }
0x14ce   :  { %v3003_v49 = vsel %vm1904_vm4, %v5934_v26, 0.0 }
0x14cf   :  { %3004 = vadd.xlane.f32.xlu1 %v3003_v49 }
0x1554   :  { %v3002_v24 = vpop.xlane.xlu0 %3001 }
0x1555   :  { %5935 = vrcp.f32 %v3002_v24 }
0x1558   :  { %v3005_v17 = vpop.xlane.xlu1 %3004 }
0x1559   :  { %5937 = vrcp.f32 %v3005_v17  ;;  %v5007_v17 = vld [vmem:[%s7199_s18 + $0x1] ss:$0 sm:$0xff] }
0x1562   :  { %v5936_v32 = vpop.eup %5935 }
0x1563   :  { %v3008_v33 = vmul.f32 %v5936_v32, %v5932_v51  ;;  %v3565_v51 = vld [vmem:[%s7204_s1 + $0x18] sm:$0xff]  ;;  %v5012_v32 = vld [vmem:[%s7205_s2] ss:$0 sm:$0xff] }
0x1564   :  { %v3596_v25 = vmul.f32 %v5012_v32, %v6458_v13 }
0x1565   :  { %5644 = vmatmul.mubr.msk.f32.vlgmr.msra.gmra.mxu1 %vm1904_vm4, %v3008_v33 }
0x1566   :  { %v5938_v36 = vpop.eup %5937  ;;  %5647 = vmatpush3.msra.mxu1 %v6840_v50  ;;  %5648 = vmatprep.mubr.msk.f32.mxu1 %vm6093_vm2, %v6092_v35 }
0x1567   :  { %v3009_v37 = vmul.f32 %v5938_v36, %v5934_v26  ;;  %3378 = vmatprep.subr.mxu1 %v4972_v59  ;;  %v5008_v36 = vld [vmem:[%s7200_s22 + $0x1] ss:$0 sm:$0xff] }
0x1568   :  { %v4998_v59 = vld [vmem:[%s7201_s23 + $0x1c0] sm:$0xff] }
0x1569   :  { %5649 = vmatmul.mubr.msk.f32.vlgmr.msra.gmra.mxu1 %vm1904_vm4, %v3009_v37 }
0x156a   :  { %3426 = vmatprep.mubr.f32.mxu1 %v6092_v35  ;;  %3379 = vmatpush1.msra.mxu1 %v4971_v60  ;;  %v4982_v60 = vld [vmem:[%s7201_s23 + $0x140] sm:$0xff] }
0x156b   :  { %3380 = vmatprep.subr.mxu1 %v4970_v61  ;;  %v4997_v61 = vld [vmem:[%s7201_s23 + $0x1b8] sm:$0xff] }
0x156c   :  { %3381 = vmatpush1.msra.mxu1 %v4969_v62  ;;  %v4981_v62 = vld [vmem:[%s7201_s23 + $0x138] sm:$0xff] }
0x156d   :  { %3382 = vmatprep.subr.mxu1 %v4968_v63  ;;  %v4996_v63 = vld [vmem:[%s7201_s23 + $0x1b0] sm:$0xff] }
0x156e   :  { %3383 = vmatpush1.msra.mxu1 %v4967_v0  ;;  %v4980_v0 = vld [vmem:[%s7201_s23 + $0x130] sm:$0xff] }
0x156f   :  { %3384 = vmatprep.subr.mxu1 %v4966_v1  ;;  %v4995_v1 = vld [vmem:[%s7201_s23 + $0x1a8] sm:$0xff] }
0x1570   :  { %3385 = vmatpush1.msra.mxu1 %v4965_v2  ;;  %v4979_v2 = vld [vmem:[%s7201_s23 + $0x128] sm:$0xff] }
0x1571   :  { %3386 = vmatprep.subr.mxu1 %v4964_v3  ;;  %v4994_v3 = vld [vmem:[%s7201_s23 + $0x1a0] sm:$0xff] }
0x1572   :  { %3387 = vmatpush1.msra.mxu1 %v4963_v4  ;;  %v4978_v4 = vld [vmem:[%s7201_s23 + $0x120] sm:$0xff] }
0x1573   :  { %3388 = vmatprep.subr.mxu1 %v4962_v5  ;;  %v4993_v5 = vld [vmem:[%s7201_s23 + $0x198] sm:$0xff] }
0x1574   :  { %3389 = vmatpush1.msra.mxu1 %v4961_v10  ;;  %v4977_v10 = vld [vmem:[%s7201_s23 + $0x118] sm:$0xff] }
0x1575   :  { %3390 = vmatprep.subr.mxu1 %v4960_v12  ;;  %v4992_v12 = vld [vmem:[%s7201_s23 + $0x190] sm:$0xff] }
0x1576   :  { %3391 = vmatpush1.msra.mxu1 %v4959_v14  ;;  %v4976_v14 = vld [vmem:[%s7201_s23 + $0x110] sm:$0xff] }
0x1577   :  { %3392 = vmatprep.subr.mxu1 %v4958_v18  ;;  %v4991_v18 = vld [vmem:[%s7201_s23 + $0x188] sm:$0xff] }
0x1578   :  { %3393 = vmatpush1.msra.mxu1 %v4957_v19  ;;  %v4975_v19 = vld [vmem:[%s7201_s23 + $0x108] sm:$0xff] }
0x1579   :  { %5670 = vmatprep.subr.mxu1 %v3565_v51 }
0x1625   :  { %v3079_v39 = vpop.f32.mrf.mxu1 }
0x1626   :  { %5667 = vmatprep.mubr.msk.f32.mxu0 %vm273_vm1, %v3079_v39  ;;  %v3564_v39 = vld [vmem:[%s7204_s1 + $0x10] sm:$0xff] }
0x1627   :  { %v5645_v40 = vpop.f32.mrf.mxu1 }
0x1628   :  { %v5013_v40 = vld [vmem:[%s7206_s0] ss:$0 sm:$0xff] }
0x1629   :  { %v3152_v41 = vpop.f32.mrf.mxu1 }
0x162a   :  { %5668 = vmatmul.mubr.msk.f32.vlgmr.msra.gmra.mxu0 %vm273_vm1, %v3152_v41  ;;  %v3563_v41 = vld [vmem:[%s7204_s1 + $0x8] sm:$0xff] }
0x162b   :  { %v5650_v34 = vpop.f32.mrf.mxu1 }
0x162c   :  { %v3597_v34 = vmul.f32 %v5012_v32, %v6463_v21  ;;  %v3599_v21 = vmul.f32 %v5012_v32, %v6473_v30  ;;  %v4988_v30 = vld [vmem:[%s7201_s23 + $0x170] sm:$0xff] }
0x162e   :  { %v3607_v13 = vadd.f32 %v5013_v40, %v3597_v34 }
0x16ea   :  { %v5669_v44 = vpop.f32.mrf.mxu0 }
0x16eb   :  { %v3240_v46 = vadd.f32 %v5669_v44, %v4952_v43  ;;  %v3606_v44 = vadd.f32 %v5013_v40, %v3596_v25 }
0x16ec   :  { %v3234_v47 = vpop.f32.mrf.mxu0 }
0x16ed   :  { %v6877_v48 = vadd.f32 %v3240_v46, %v6784_v45  ;;  %v3235_v23 = vadd.f32 %v4952_v43, %v3234_v47  ;;  %v3562_v46 = vld [vmem:[%s7204_s1] sm:$0xff]  ;;  %v3598_v47 = vmul.f32 %v5012_v32, %v6466_v22  ;;  %v3609_v22 = vadd.f32 %v5013_v40, %v3599_v21 }
0x16ef   :  { %v6880_v50 = vadd.f32 %v3235_v23, %v6779_v42  ;;  %v3306_v52 = vsel %vm273_vm1, %v6877_v48, 0.0  ;;  %v5005_v23 = vld [vmem:[%s7201_s23 + $0x1f8] sm:$0xff] }
0x16f0   :  { %3307 = vadd.xlane.f32.xlu1 %v3306_v52  ;;  %5270 = vmatprep.subr.mxu0 %v5005_v23  ;;  %v4989_v52 = vld [vmem:[%s7201_s23 + $0x178] sm:$0xff] }
0x16f1   :  { %v3303_v53 = vsel %vm273_vm1, %v6880_v50, 0.0  ;;  %5271 = vmatpush3.msra.mxu0 %v4989_v52 }
0x16f2   :  { %3304 = vadd.xlane.f32.xlu0 %v3303_v53  ;;  %v5004_v53 = vld [vmem:[%s7201_s23 + $0x1f0] sm:$0xff] }
0x16f3   :  { %5272 = vmatprep.subr.mxu0 %v5004_v53 }
0x16f4   :  { %5273 = vmatpush3.msra.mxu0 %v4988_v30 }
0x1779   :  { %v3308_v20 = vpop.xlane.xlu1 %3307 }
0x177a   :  { %v3310_v54 = vmul.f32 0.015625, %v3308_v20  ;;  %v5003_v20 = vld [vmem:[%s7201_s23 + $0x1e8] sm:$0xff] }
0x177b   :  { %v3305_v55 = vpop.xlane.xlu0 %3304  ;;  %5274 = vmatprep.subr.mxu0 %v5003_v20 }
0x177c   :  { %v3312_v45 = vsub.f32 %v6877_v48, %v3310_v54  ;;  %v3309_v56 = vmul.f32 0.015625, %v3305_v55  ;;  %v4987_v54 = vld [vmem:[%s7201_s23 + $0x168] sm:$0xff]  ;;  %v5002_v55 = vld [vmem:[%s7201_s23 + $0x1e0] sm:$0xff] }
0x177d   :  { %5275 = vmatpush3.msra.mxu0 %v4987_v54 }
0x177e   :  { %v3311_v42 = vsub.f32 %v6880_v50, %v3309_v56  ;;  %v3314_v9 = vmul.f32 %v3312_v45, %v3312_v45  ;;  %5276 = vmatprep.subr.mxu0 %v5002_v55  ;;  %v5001_v56 = vld [vmem:[%s7201_s23 + $0x1d8] sm:$0xff] }
0x1780   :  { %v3318_v57 = vsel %vm273_vm1, %v3314_v9, 0.0  ;;  %v3313_v8 = vmul.f32 %v3311_v42, %v3311_v42  ;;  %v5000_v9 = vld [vmem:[%s7201_s23 + $0x1d0] sm:$0xff] }
0x1781   :  { %3319 = vadd.xlane.f32.xlu1 %v3318_v57  ;;  %v4984_v57 = vld [vmem:[%s7201_s23 + $0x150] sm:$0xff] }
0x1782   :  { %v3315_v58 = vsel %vm273_vm1, %v3313_v8, 0.0  ;;  %v4999_v8 = vld [vmem:[%s7201_s23 + $0x1c8] sm:$0xff] }
0x1783   :  { %3316 = vadd.xlane.f32.xlu0 %v3315_v58  ;;  %v4983_v58 = vld [vmem:[%s7201_s23 + $0x148] sm:$0xff] }
0x180a   :  { %v3320_v16 = vpop.xlane.xlu1 %3319 }
0x180b   :  { %v3322_v26 = vmul.f32 0.015625, %v3320_v16  ;;  %v4974_v16 = vld [vmem:[%s7201_s23 + $0x100] sm:$0xff] }
0x180c   :  { %v3317_v49 = vpop.xlane.xlu0 %3316 }
0x180d   :  { %v3324_v27 = vadd.f32 1e-05, %v3322_v26  ;;  %v3321_v28 = vmul.f32 0.015625, %v3317_v49  ;;  %v4973_v26 = vld [vmem:[%s7202_s26 + $0x2] sm:$0x3] }
0x180e   :  { %v3349_v49 = vrot.slane %v4973_v26, %v6601_v7 }
0x180f   :  { %5939 = vrsqrt.f32 %v3324_v27  ;;  %v3323_v15 = vadd.f32 1e-05, %v3321_v28  ;;  %v3353_v27 = vrot.slane %v4973_v26, %v6604_v11 }
0x1811   :  { %5941 = vrsqrt.f32 %v3323_v15 }
0x181c   :  { %v5940_v29 = vpop.eup %5939 }
0x181d   :  { %v3328_v24 = vmul.f32 %v5940_v29, %v3312_v45  ;;  %v4986_v45 = vld [vmem:[%s7201_s23 + $0x160] sm:$0xff] }
0x181e   :  { %v5942_v6 = vpop.eup %5941  ;;  %5277 = vmatpush3.msra.mxu0 %v4986_v45 }
0x181f   :  { %v3327_v31 = vmul.f32 %v5942_v6, %v3311_v42  ;;  %v3336_v38 = vmul.f32 %v5007_v17, %v3328_v24  ;;  %5278 = vmatprep.subr.mxu0 %v5001_v56  ;;  %v4985_v42 = vld [vmem:[%s7201_s23 + $0x158] sm:$0xff] }
0x1820   :  { %5279 = vmatpush3.msra.mxu0 %v4985_v42 }
0x1821   :  { %v3335_v33 = vmul.f32 %v5007_v17, %v3327_v31  ;;  %v3344_v43 = vadd.f32 %v5008_v36, %v3336_v38  ;;  %5280 = vmatprep.subr.mxu0 %v5000_v9 }
0x1822   :  { %5281 = vmatpush3.msra.mxu0 %v4984_v57 }
0x1823   :  { %v3343_v37 = vadd.f32 %v5008_v36, %v3335_v33  ;;  %5282 = vmatprep.subr.mxu0 %v4999_v8 }
0x1824   :  { %5283 = vmatpush3.msra.mxu0 %v4983_v58 }
0x1825   :  { %5009 = vmatmul.mubr.msk.f32.vlgmr.msra.gmra.mxu1 %vm273_vm1, %v3343_v37  ;;  %5284 = vmatprep.subr.mxu0 %v4998_v59 }
0x1826   :  { %5671 = vmatpush3.msra.mxu1 %v3565_v51  ;;  %3432 = vmatprep.mubr.f32.mxu1 %v6092_v35  ;;  %v3608_v35 = vadd.f32 %v5013_v40, %v3598_v47  ;;  %v4990_v51 = vld [vmem:[%s7201_s23 + $0x180] sm:$0xff] }
0x1827   :  { %5672 = vmatprep.subr.mxu1 %v3564_v39  ;;  %5285 = vmatpush3.msra.mxu0 %v4982_v60  ;;  %v6961_v40 = vld [vmem:[%s7207_s9] ss:$0 sm:$0xff] }
0x1828   :  { %5673 = vmatpush3.msra.mxu1 %v3564_v39  ;;  %5286 = vmatprep.subr.mxu0 %v4997_v61 }
0x1829   :  { %5010 = vmatmul.mubr.msk.f32.gmra.mxu1 %vm273_vm1, %v3344_v43  ;;  %5674 = vmatprep.subr.mxu1 %v3563_v41 }
0x182a   :  { %5675 = vmatpush3.msra.mxu1 %v3563_v41  ;;  %5678 = vmatprep.mubr.msk.f32.mxu1 %vm317_vm0, %v3606_v44 }
0x182b   :  { %5676 = vmatprep.subr.mxu1 %v3562_v46  ;;  %5287 = vmatpush3.msra.mxu0 %v4981_v62 }
0x182c   :  { %5677 = vmatpush3.msra.mxu1 %v3562_v46  ;;  %5288 = vmatprep.subr.mxu0 %v4996_v63 }
0x182d   :  { %5679 = vmatmul.mubr.msk.f32.vlgmr.msra.gmra.mxu1 %vm317_vm0, %v3607_v13  ;;  %5289 = vmatpush3.msra.mxu0 %v4980_v0 }
0x182e   :  { %5681 = vmatprep.mubr.msk.f32.mxu1 %vm317_vm0, %v3608_v35  ;;  %5290 = vmatprep.subr.mxu0 %v4995_v1 }
0x182f   :  { %5291 = vmatpush3.msra.mxu0 %v4979_v2  ;;  %v5011_v2 = vld [vmem:[%s7203_s28 + $0x1] ss:$0 sm:$0xff] }
0x1830   :  { %5292 = vmatprep.subr.mxu0 %v4994_v3 }
0x1831   :  { %5682 = vmatmul.mubr.msk.f32.gmra.mxu1 %vm317_vm0, %v3609_v22  ;;  %5293 = vmatpush3.msra.mxu0 %v4978_v4 }
0x1832   :  { %5294 = vmatprep.subr.mxu0 %v4993_v5 }
0x1833   :  { %5295 = vmatpush3.msra.mxu0 %v4977_v10 }
0x1834   :  { %5296 = vmatprep.subr.mxu0 %v4992_v12 }
0x1835   :  { %5297 = vmatpush3.msra.mxu0 %v4976_v14 }
0x1836   :  { %5298 = vmatprep.subr.mxu0 %v4991_v18 }
0x1837   :  { %5299 = vmatpush3.msra.mxu0 %v4975_v19 }
0x1838   :  { %5300 = vmatprep.subr.mxu0 %v4990_v51 }
0x1839   :  { %5301 = vmatpush3.msra.mxu0 %v4974_v16 }
0x18e5   :  { %v3428_v28 = vpop.f32.mrf.mxu1 }
0x18e6   :  { %v3429_v15 = vadd.f32 %v3428_v28, %v3349_v49 }
0x18e7   :  { %v3430_v29 = vpop.f32.mrf.mxu1 }
0x18e8   :  { %v3439_v6 = vmul.f32 %v3429_v15, %v3429_v15  ;;  %v3431_v31 = vadd.f32 %v3430_v29, %v3353_v27 }
0x18e9   :  { %v3434_v24 = vpop.f32.mrf.mxu1 }
0x18ea   :  { %v3443_v17 = vmul.f32 %v3439_v6, %v3429_v15  ;;  %v3440_v32 = vmul.f32 %v3431_v31, %v3431_v31  ;;  %v3435_v33 = vadd.f32 %v3434_v24, %v3349_v49 }
0x18eb   :  { %v3436_v36 = vpop.f32.mrf.mxu1 }
0x18ec   :  { %v3447_v37 = vmul.f32 0.044715, %v3443_v17  ;;  %v3444_v38 = vmul.f32 %v3440_v32, %v3431_v31  ;;  %v3441_v25 = vmul.f32 %v3435_v33, %v3435_v33  ;;  %v3437_v39 = vadd.f32 %v3436_v36, %v3353_v27  ;;  %v3574_v17 = vld [vmem:[%s7208_s13 + $0x38] sm:$0xff]  ;;  %v3582_v36 = vld [vmem:[%s7209_s17 + $0x30] sm:$0xff] }
0x18ed   :  { %v5680_v7 = vpop.f32.mrf.mxu1  ;;  %v3583_v32 = vld [vmem:[%s7209_s17 + $0x38] sm:$0xff]  ;;  %5684 = vmatprep.subr.mxu0 %v3574_v17 }
0x18ee   :  { %v3451_v41 = vadd.f32 %v3447_v37, %v3429_v15  ;;  %v3448_v34 = vmul.f32 0.044715, %v3444_v38  ;;  %v3445_v11 = vmul.f32 %v3441_v25, %v3435_v33  ;;  %v3442_v43 = vmul.f32 %v3437_v39, %v3437_v39  ;;  %5703 = vmatprep.subr.mxu1 %v3583_v32  ;;  %v3572_v37 = vld [vmem:[%s7208_s13 + $0x28] sm:$0xff]  ;;  %v3571_v25 = vld [vmem:[%s7208_s13 + $0x20] sm:$0xff] }
0x18ef   :  { %v6964_v44 = vadd.f32 %v5680_v7, %v6961_v40  ;;  %5704 = vmatpush3.msra.mxu1 %v3583_v32  ;;  %v3581_v38 = vld [vmem:[%s7209_s17 + $0x28] sm:$0xff]  ;;  %v3570_v7 = vld [vmem:[%s7208_s13 + $0x18] sm:$0xff] }
0x18f0   :  { %v3455_v46 = vmul.f32 0.7978846, %v3451_v41  ;;  %v3452_v47 = vadd.f32 %v3448_v34, %v3431_v31  ;;  %v3449_v13 = vmul.f32 0.044715, %v3445_v11  ;;  %v3446_v21 = vmul.f32 %v3442_v43, %v3437_v39  ;;  %5705 = vmatprep.subr.mxu1 %v3582_v36  ;;  %v3579_v41 = vld [vmem:[%s7209_s17 + $0x18] sm:$0xff]  ;;  %v3569_v34 = vld [vmem:[%s7208_s13 + $0x10] sm:$0xff] }
0x18f1   :  { %5706 = vmatpush3.msra.mxu1 %v3582_v36  ;;  %v3578_v11 = vld [vmem:[%s7209_s17 + $0x10] sm:$0xff]  ;;  %v3568_v43 = vld [vmem:[%s7208_s13 + $0x8] sm:$0xff] }
0x18f2   :  { %5943 = vtanh.f32 %v3455_v46  ;;  %v3456_v35 = vmul.f32 0.7978846, %v3452_v47  ;;  %v3453_v22 = vadd.f32 %v3449_v13, %v3435_v33  ;;  %v3450_v23 = vmul.f32 0.044715, %v3446_v21  ;;  %5707 = vmatprep.subr.mxu1 %v3581_v38  ;;  %v3577_v46 = vld [vmem:[%s7209_s17 + $0x8] sm:$0xff]  ;;  %v3567_v47 = vld [vmem:[%s7208_s13] sm:$0xff] }
0x18f3   :  { %5708 = vmatpush3.msra.mxu1 %v3581_v38  ;;  %v3576_v13 = vld [vmem:[%s7209_s17] sm:$0xff] }
0x18f4   :  { %5945 = vtanh.f32 %v3456_v35  ;;  %v3457_v52 = vmul.f32 0.7978846, %v3453_v22  ;;  %v3454_v53 = vadd.f32 %v3450_v23, %v3437_v39 }
0x18f6   :  { %5947 = vtanh.f32 %v3457_v52  ;;  %v3458_v30 = vmul.f32 0.7978846, %v3454_v53 }
0x18f8   :  { %5949 = vtanh.f32 %v3458_v30 }
0x18ff   :  { %v5944_v20 = vpop.eup %5943 }
0x1900   :  { %v3463_v54 = vadd.f32 1.0, %v5944_v20  ;;  %v5014_v20 = vld [vmem:[%s7210_s21] ss:$0 sm:$0xff] }
0x1901   :  { %v5946_v55 = vpop.eup %5945 }
0x1902   :  { %v3464_v45 = vadd.f32 1.0, %v5946_v55  ;;  %v3467_v42 = vmul.f32 0.5, %v3463_v54  ;;  %v5015_v55 = vld [vmem:[%s7211_s25] ss:$0 sm:$0xff] }
0x1903   :  { %v5948_v56 = vpop.eup %5947 }
0x1904   :  { %v3468_v9 = vmul.f32 0.5, %v3464_v45  ;;  %v3465_v57 = vadd.f32 1.0, %v5948_v56  ;;  %v3471_v60 = vmul.f32 %v3467_v42, %v3429_v15 }
0x1905   :  { %v5950_v8 = vpop.eup %5949 }
0x1906   :  { %v3472_v58 = vmul.f32 %v3468_v9, %v3431_v31  ;;  %v3466_v59 = vadd.f32 1.0, %v5950_v8  ;;  %v3469_v61 = vmul.f32 0.5, %v3465_v57  ;;  %v3736_v57 = vpop.f32.mrf.mxu1 }
0x1908   :  { %3545 = vmatprep.mubr.f32.mxu0 %v3472_v58  ;;  %v3470_v62 = vmul.f32 0.5, %v3466_v59  ;;  %v3473_v0 = vmul.f32 %v3469_v61, %v3435_v33  ;;  %v3573_v33 = vld [vmem:[%s7208_s13 + $0x30] sm:$0xff]  ;;  %v3737_v59 = vadd.f32 %v6961_v40, %v3736_v57  ;;  %v3586_v57 = vld [vmem:[%s7214_s8 + $0x8] sm:$0xff] }
0x1909   :  { %3546 = vmatmul.mubr.f32.vlgmr.msra.gmra.mxu0 %v3471_v60  ;;  %v5683_v60 = vpop.f32.mrf.mxu1 }
0x190a   :  { %v3474_v63 = vmul.f32 %v3470_v62, %v3437_v39  ;;  %5685 = vmatpush3.msra.mxu0 %v3574_v17  ;;  %v3580_v39 = vld [vmem:[%s7209_s17 + $0x20] sm:$0xff] }
0x190b   :  { %5686 = vmatprep.subr.mxu0 %v3573_v33  ;;  %5709 = vmatprep.subr.mxu1 %v3580_v39  ;;  %v3746_v61 = vpop.f32.mrf.mxu1 }
0x190c   :  { %3550 = vmatprep.mubr.f32.mxu0 %v3474_v63  ;;  %5687 = vmatpush3.msra.mxu0 %v3573_v33 }
0x190d   :  { %3551 = vmatmul.mubr.f32.gmra.mxu0 %v3473_v0  ;;  %5688 = vmatprep.subr.mxu0 %v3572_v37  ;;  %v5021_v0 = vld [vmem:[%s7212_s29] ss:$0 sm:$0xff] }
0x190e   :  { %5689 = vmatpush3.msra.mxu0 %v3572_v37  ;;  %5710 = vmatpush3.msra.mxu1 %v3580_v39 }
0x190f   :  { %5690 = vmatprep.subr.mxu0 %v3571_v25  ;;  %5711 = vmatprep.subr.mxu1 %v3579_v41 }
0x1910   :  { %5691 = vmatpush3.msra.mxu0 %v3571_v25  ;;  %5712 = vmatpush3.msra.mxu1 %v3579_v41 }
0x1911   :  { %5692 = vmatprep.subr.mxu0 %v3570_v7  ;;  %5713 = vmatprep.subr.mxu1 %v3578_v11 }
0x1912   :  { %5693 = vmatpush3.msra.mxu0 %v3570_v7  ;;  %5714 = vmatpush3.msra.mxu1 %v3578_v11 }
0x1913   :  { %5694 = vmatprep.subr.mxu0 %v3569_v34  ;;  %5715 = vmatprep.subr.mxu1 %v3577_v46 }
0x1914   :  { %5695 = vmatpush3.msra.mxu0 %v3569_v34  ;;  %5716 = vmatpush3.msra.mxu1 %v3577_v46 }
0x1915   :  { %5696 = vmatprep.subr.mxu0 %v3568_v43  ;;  %5717 = vmatprep.subr.mxu1 %v3576_v13 }
0x1916   :  { %5697 = vmatpush3.msra.mxu0 %v3568_v43  ;;  %5718 = vmatpush3.msra.mxu1 %v3576_v13 }
0x1917   :  { %5698 = vmatprep.subr.mxu0 %v3567_v47 }
0x1918   :  { %5699 = vmatpush3.msra.mxu0 %v3567_v47 }
0x19c9   :  { %v5302_v1 = vpop.f32.mrf.mxu0 }
0x19cb   :  { %v5303_v3 = vpop.f32.mrf.mxu0 }
0x19cc   :  { %v5304_v4 = vadd.f32 %v5303_v3, %v5302_v1  ;;  %v5024_v1 = vld [vmem:[%s7213_s3] ss:$0 sm:$0xff] }
0x19cd   :  { %v5305_v5 = vpop.f32.mrf.mxu0 }
0x19ce   :  { %v3548_v10 = vadd.f32 %v5304_v4, %v5011_v2 }
0x19cf   :  { %v5306_v12 = vpop.f32.mrf.mxu0 }
0x19d0   :  { %v3556_v14 = vadd.f32 %v3548_v10, %v6880_v50  ;;  %v5307_v18 = vadd.f32 %v5306_v12, %v5305_v5  ;;  %v3747_v12 = vadd.f32 %v6961_v40, %v3746_v61 }
0x19d2   :  { %4742 = vst.msk [vmem:[#allocation4] sm:$0xff] %vm273_vm1, %v3556_v14  ;;  %v3553_v19 = vadd.f32 %v5307_v18, %v5011_v2  ;;  %v3610_v51 = vsel %vm273_vm1, %v3556_v14, 0.0  ;;  %v3752_v18 = vadd.f32 %v5683_v60, %v6961_v40 }
0x19d3   :  { %3611 = vadd.xlane.f32.xlu0 %v3610_v51 }
0x19d4   :  { %v3557_v16 = vadd.f32 %v3553_v19, %v6877_v48 }
0x19d6   :  { %4743 = vst.msk [vmem:[#allocation4 + $0x8] sm:$0xff] %vm273_vm1, %v3557_v16  ;;  %v3613_v26 = vsel %vm273_vm1, %v3557_v16, 0.0 }
0x19d7   :  { %3614 = vadd.xlane.f32.xlu1 %v3613_v26 }
0x1a5c   :  { %v3612_v49 = vpop.xlane.xlu0 %3611 }
0x1a5d   :  { %v3616_v27 = vmul.f32 0.015625, %v3612_v49 }
0x1a5f   :  { %v6973_v50 = vsub.f32 %v3556_v14, %v3616_v27 }
0x1a60   :  { %v3615_v28 = vpop.xlane.xlu1 %3614 }
0x1a61   :  { %v3617_v15 = vmul.f32 0.015625, %v3615_v28  ;;  %v3620_v29 = vmul.f32 %v6973_v50, %v6973_v50 }
0x1a63   :  { %v6977_v48 = vsub.f32 %v3557_v16, %v3617_v15  ;;  %v3622_v6 = vsel %vm273_vm1, %v3620_v29, 0.0 }
0x1a64   :  { %3623 = vadd.xlane.f32.xlu0 %v3622_v6 }
0x1a65   :  { %v3621_v31 = vmul.f32 %v6977_v48, %v6977_v48 }
0x1a67   :  { %v3625_v24 = vsel %vm273_vm1, %v3621_v31, 0.0 }
0x1a68   :  { %3626 = vadd.xlane.f32.xlu1 %v3625_v24 }
0x1aed   :  { %v3624_v21 = vpop.xlane.xlu0 %3623 }
0x1aee   :  { %v3628_v35 = vmul.f32 0.015625, %v3624_v21  ;;  %v3588_v21 = vld [vmem:[%s7214_s8 + $0x18] sm:$0xff] }
0x1af0   :  { %v3630_v22 = vadd.f32 1e-05, %v3628_v35 }
0x1af1   :  { %v3627_v23 = vpop.xlane.xlu1 %3626 }
0x1af2   :  { %5951 = vrsqrt.f32 %v3630_v22  ;;  %v3629_v52 = vmul.f32 0.015625, %v3627_v23 }
0x1af4   :  { %v3631_v53 = vadd.f32 1e-05, %v3629_v52 }
0x1af6   :  { %5953 = vrsqrt.f32 %v3631_v53 }
0x1aff   :  { %v5952_v30 = vpop.eup %5951 }
0x1b00   :  { %v3634_v54 = vmul.f32 %v5952_v30, %v6973_v50 }
0x1b02   :  { %v3642_v45 = vmul.f32 %v5014_v20, %v3634_v54 }
0x1b03   :  { %v5954_v56 = vpop.eup %5953 }
0x1b04   :  { %v3635_v42 = vmul.f32 %v5954_v56, %v6977_v48  ;;  %v3650_v9 = vadd.f32 %v5015_v55, %v3642_v45  ;;  %v3587_v45 = vld [vmem:[%s7214_s8 + $0x10] sm:$0xff] }
0x1b06   :  { %v3643_v8 = vmul.f32 %v5014_v20, %v3635_v42  ;;  %5700 = vmatprep.mubr.msk.f32.mxu0 %vm273_vm1, %v3650_v9  ;;  %5719 = vmatprep.mubr.msk.f32.mxu1 %vm273_vm1, %v3650_v9 }
0x1b08   :  { %v3651_v58 = vadd.f32 %v5015_v55, %v3643_v8  ;;  %v3585_v8 = vld [vmem:[%s7214_s8] sm:$0xff] }
0x1b0a   :  { %5701 = vmatmul.mubr.msk.f32.vlgmr.msra.gmra.mxu0 %vm273_vm1, %v3651_v58  ;;  %5720 = vmatmul.mubr.msk.f32.vlgmr.msra.gmra.mxu1 %vm273_vm1, %v3651_v58 }
0x1b0b   :  { %5724 = vmatprep.mubr.msk.f32.mxu0 %vm317_vm0, %v3737_v59 }
0x1bca   :  { %v5702_v62 = vpop.f32.mrf.mxu0  ;;  %v5721_v63 = vpop.f32.mrf.mxu1 }
0x1bcb   :  { %v3839_v10 = vadd.f32 %v5702_v62, %v5021_v0  ;;  %v3920_v14 = vadd.f32 %v5721_v63, %v5024_v1  ;;  %v5037_v62 = vld [vmem:[%s7215_s14] ss:$0 sm:$0xff] }
0x1bcc   :  { %v3833_v2 = vpop.f32.mrf.mxu0  ;;  %v3914_v3 = vpop.f32.mrf.mxu1 }
0x1bcd   :  { %v3834_v4 = vadd.f32 %v5021_v0, %v3833_v2  ;;  %v3915_v5 = vadd.f32 %v5024_v1, %v3914_v3  ;;  %v5987_v2 = vld [vmem:[%s6106_s5 + $0x8] sm:$0xff] }
0x1bcf   :  { %5722 = vmatprep.subr.msk.mxu0 %vm317_vm0, %v3834_v4  ;;  %5732 = vmatprep.subr.mxu1 %v3915_v5 }
0x1bd0   :  { %5723 = vmatpush3.xpose.msk.msra.mxu0 %vm317_vm0, %v3834_v4  ;;  %5733 = vmatpush3.msra.mxu1 %v3915_v5 }
0x1bd1   :  { %5727 = vmatprep.subr.msk.mxu0 %vm317_vm0, %v3839_v10  ;;  %5742 = vmatprep.subr.mxu1 %v3588_v21 }
0x1bd3   :  { %5725 = vmatmul.mubr.msk.f32.vlgmr.msra.gmra.mxu0 %vm317_vm0, %v6964_v44 }
0x1bd4   :  { %5728 = vmatpush3.xpose.msk.msra.mxu0 %vm317_vm0, %v3839_v10  ;;  %5729 = vmatprep.mubr.msk.f32.mxu0 %vm317_vm0, %v3747_v12  ;;  %v5988_v10 = vld [vmem:[%s6106_s5] sm:$0xff] }
0x1bd5   :  { %5737 = vmatprep.subr.mxu0 %v3920_v14 }
0x1bd7   :  { %5730 = vmatmul.mubr.msk.f32.vlgmr.msra.gmra.mxu0 %vm317_vm0, %v3752_v18 }
0x1bd8   :  { %5738 = vmatpush3.msra.mxu0 %v3920_v14 }
0x1c93   :  { %v5726_v19 = vpop.f32.mrf.mxu0 }
0x1c94   :  { %v4092_v51 = vmul.f32 0.17677669, %v5726_v19 }
0x1c95   :  { %v3998_v16 = vpop.f32.mrf.mxu0 }
0x1c96   :  { %v4091_v26 = vmul.f32 0.17677669, %v3998_v16  ;;  %v4098_v49 = vsel %vm1904_vm4, %v4092_v51, -inf }
0x1c97   :  { %4099 = vmax.xlane.f32.xlu1 %v4098_v49  ;;  %v5731_v27 = vpop.f32.mrf.mxu0 }
0x1c98   :  { %v4094_v50 = vmul.f32 0.17677669, %v5731_v27  ;;  %v4095_v44 = vsel %vm1904_vm4, %v4091_v26, -inf  ;;  %v5990_v27 = vld [vmem:[%s6106_s5 + $0x10] sm:$0xff] }
0x1c99   :  { %4096 = vmax.xlane.f32.xlu0 %v4095_v44  ;;  %v4082_v28 = vpop.f32.mrf.mxu0 }
0x1c9a   :  { %v4093_v15 = vmul.f32 0.17677669, %v4082_v28  ;;  %v4104_v40 = vsel %vm1904_vm4, %v4094_v50, -inf }
0x1c9b   :  { %4105 = vmax.xlane.f32.xlu1 %v4104_v40 }
0x1c9c   :  { %v4101_v29 = vsel %vm1904_vm4, %v4093_v15, -inf }
0x1c9d   :  { %4102 = vmax.xlane.f32.xlu0 %v4101_v29 }
0x1d20   :  { %v4100_v48 = vpop.xlane.xlu1 %4099 }
0x1d21   :  { %v4108_v6 = vsub.f32 %v4092_v51, %v4100_v48  ;;  %v5989_v51 = vld [vmem:[%s6106_s5 + $0x18] sm:$0xff]  ;;  %s7216_s5 = sld [smem:[#allocation46_spill]] }
0x1d22   :  { %v4097_v31 = vpop.xlane.xlu0 %4096 }
0x1d23   :  { %v4113_v24 = vmul.f32 1.442695, %v4108_v6  ;;  %v4107_v17 = vsub.f32 %v4091_v26, %v4097_v31 }
0x1d24   :  { %v4106_v32 = vpop.xlane.xlu1 %4105 }
0x1d25   :  { %5955 = vpow2.f32 %v4113_v24  ;;  %v4111_v33 = vmul.f32 1.442695, %v4107_v17  ;;  %v4110_v36 = vsub.f32 %v4094_v50, %v4106_v32 }
0x1d26   :  { %v4103_v37 = vpop.xlane.xlu0 %4102 }
0x1d27   :  { %5957 = vpow2.f32 %v4111_v33  ;;  %v4117_v38 = vmul.f32 1.442695, %v4110_v36  ;;  %v4109_v25 = vsub.f32 %v4093_v15, %v4103_v37 }
0x1d29   :  { %5959 = vpow2.f32 %v4117_v38  ;;  %v4115_v39 = vmul.f32 1.442695, %v4109_v25 }
0x1d2b   :  { %5961 = vpow2.f32 %v4115_v39 }
0x1d32   :  { %v5956_v7 = vpop.eup %5955 }
0x1d33   :  { %v4122_v41 = vsel %vm1904_vm4, %v5956_v7, 0.0 }
0x1d34   :  { %v5958_v34 = vpop.eup %5957  ;;  %4123 = vadd.xlane.f32.xlu1 %v4122_v41 }
0x1d35   :  { %v4119_v11 = vsel %vm1904_vm4, %v5958_v34, 0.0 }
0x1d36   :  { %v5960_v43 = vpop.eup %5959  ;;  %4120 = vadd.xlane.f32.xlu0 %v4119_v11 }
0x1d37   :  { %v4128_v46 = vsel %vm1904_vm4, %v5960_v43, 0.0 }
0x1d38   :  { %v5962_v47 = vpop.eup %5961  ;;  %4129 = vadd.xlane.f32.xlu1 %v4128_v46  ;;  %v4413_v46 = vld [vmem:[%s7216_s5 + $0x18] sm:$0xff] }
0x1d39   :  { %v4125_v13 = vsel %vm1904_vm4, %v5962_v47, 0.0  ;;  %5756 = vmatprep.subr.mxu0 %v4413_v46 }
0x1d3a   :  { %4126 = vadd.xlane.f32.xlu0 %v4125_v13  ;;  %v4411_v13 = vld [vmem:[%s7216_s5 + $0x8] sm:$0xff] }
0x1dbd   :  { %v4124_v35 = vpop.xlane.xlu1 %4123 }
0x1dbe   :  { %5963 = vrcp.f32 %v4124_v35 }
0x1dbf   :  { %v4121_v22 = vpop.xlane.xlu0 %4120 }
0x1dc0   :  { %5965 = vrcp.f32 %v4121_v22 }
0x1dc1   :  { %v4130_v23 = vpop.xlane.xlu1 %4129 }
0x1dc2   :  { %5967 = vrcp.f32 %v4130_v23 }
0x1dc3   :  { %v4127_v52 = vpop.xlane.xlu0 %4126 }
0x1dc4   :  { %5969 = vrcp.f32 %v4127_v52 }
0x1dcb   :  { %v5964_v53 = vpop.eup %5963 }
0x1dcc   :  { %v4136_v54 = vmul.f32 %v5964_v53, %v5956_v7 }
0x1dcd   :  { %v5966_v30 = vpop.eup %5965 }
0x1dce   :  { %v4135_v20 = vmul.f32 %v5966_v30, %v5958_v34 }
0x1dcf   :  { %v5968_v55 = vpop.eup %5967 }
0x1dd0   :  { %5734 = vmatprep.mubr.msk.f32.mxu1 %vm1904_vm4, %v4135_v20  ;;  %v4138_v9 = vmul.f32 %v5968_v55, %v5960_v43 }
0x1dd1   :  { %v5970_v56 = vpop.eup %5969  ;;  %5735 = vmatmul.mubr.msk.f32.vlgmr.msra.gmra.mxu1 %vm1904_vm4, %v4136_v54 }
0x1dd2   :  { %v4137_v42 = vmul.f32 %v5970_v56, %v5962_v47  ;;  %5743 = vmatpush3.msra.mxu1 %v3588_v21  ;;  %v4412_v47 = vld [vmem:[%s7216_s5 + $0x10] sm:$0xff]  ;;  %v4410_v21 = vld [vmem:[%s7216_s5] sm:$0xff] }
0x1dd3   :  { %5744 = vmatprep.subr.mxu1 %v3587_v45 }
0x1dd4   :  { %5739 = vmatprep.mubr.msk.f32.mxu0 %vm1904_vm4, %v4137_v42  ;;  %5745 = vmatpush3.msra.mxu1 %v3587_v45 }
0x1dd5   :  { %5740 = vmatmul.mubr.msk.f32.vlgmr.msra.gmra.mxu0 %vm1904_vm4, %v4138_v9  ;;  %5746 = vmatprep.subr.mxu1 %v3586_v57 }
0x1dd6   :  { %5747 = vmatpush3.msra.mxu1 %v3586_v57  ;;  %5757 = vmatpush3.msra.mxu0 %v4413_v46 }
0x1dd7   :  { %5748 = vmatprep.subr.mxu1 %v3585_v8  ;;  %5758 = vmatprep.subr.mxu0 %v4412_v47 }
0x1dd8   :  { %5749 = vmatpush3.msra.mxu1 %v3585_v8  ;;  %5759 = vmatpush3.msra.mxu0 %v4412_v47  ;;  %v5042_v8 = vld [vmem:[%s7217_s19] ss:$0 sm:$0xff] }
0x1dd9   :  { %5760 = vmatprep.subr.mxu0 %v4411_v13 }
0x1dda   :  { %5761 = vmatpush3.msra.mxu0 %v4411_v13 }
0x1ddb   :  { %5762 = vmatprep.subr.mxu0 %v4410_v21 }
0x1ddc   :  { %5763 = vmatpush3.msra.mxu0 %v4410_v21 }
0x1e91   :  { %v5736_v58 = vpop.f32.mrf.mxu1 }
0x1e93   :  { %v4211_v59 = vpop.f32.mrf.mxu1 }
0x1e94   :  { %5750 = vmatprep.mubr.msk.f32.mxu1 %vm317_vm0, %v4211_v59 }
0x1e95   :  { %v5741_v60 = vpop.f32.mrf.mxu0  ;;  %5751 = vmatmul.mubr.msk.f32.vlgmr.msra.gmra.mxu1 %vm317_vm0, %v5736_v58 }
0x1e97   :  { %v4292_v61 = vpop.f32.mrf.mxu0 }
0x1e98   :  { %5753 = vmatprep.mubr.msk.f32.mxu1 %vm317_vm0, %v4292_v61 }
0x1e99   :  { %5754 = vmatmul.mubr.msk.f32.gmra.mxu1 %vm317_vm0, %v5741_v60 }
0x1f55   :  { %v5752_v63 = vpop.f32.mrf.mxu1 }
0x1f56   :  { %v4391_v0 = vadd.f32 %v5752_v63, %v5037_v62 }
0x1f57   :  { %v4385_v1 = vpop.f32.mrf.mxu1 }
0x1f58   :  { %v7043_v3 = vadd.f32 %v5987_v2, %v4391_v0  ;;  %v4386_v4 = vadd.f32 %v5037_v62, %v4385_v1 }
0x1f59   :  { %v5755_v5 = vpop.f32.mrf.mxu1 }
0x1f5a   :  { %v7046_v12 = vadd.f32 %v5988_v10, %v4386_v4  ;;  %v4401_v14 = vadd.f32 %v5755_v5, %v5037_v62  ;;  %v4435_v18 = vsel %vm317_vm0, %v7043_v3, 0.0 }
0x1f5b   :  { %4436 = vadd.xlane.f32.xlu1 %v4435_v18  ;;  %v4395_v19 = vpop.f32.mrf.mxu1 }
0x1f5c   :  { %v7051_v16 = vadd.f32 %v5989_v51, %v4401_v14  ;;  %v4396_v26 = vadd.f32 %v5037_v62, %v4395_v19  ;;  %v4432_v49 = vsel %vm317_vm0, %v7046_v12, 0.0  ;;  %v5043_v62 = vld [vmem:[%s7218_s24] ss:$0 sm:$0xff]  ;;  %v4430_v51 = vld [vmem:[%s6376_s12 + $0x78] sm:$0xff] }
0x1f5d   :  { %4433 = vadd.xlane.f32.xlu0 %v4432_v49  ;;  %5770 = vmatprep.subr.mxu1 %v4430_v51  ;;  %v4428_v49 = vld [vmem:[%s6376_s12 + $0x68] sm:$0xff] }
0x1f5e   :  { %v7056_v50 = vadd.f32 %v5990_v27, %v4396_v26  ;;  %v4441_v44 = vsel %vm317_vm0, %v7051_v16, 0.0  ;;  %5771 = vmatpush3.msra.mxu1 %v4430_v51  ;;  %v4429_v26 = vld [vmem:[%s6376_s12 + $0x70] sm:$0xff]  ;;  %v4427_v27 = vld [vmem:[%s6376_s12 + $0x60] sm:$0xff] }
0x1f5f   :  { %4442 = vadd.xlane.f32.xlu1 %v4441_v44  ;;  %5772 = vmatprep.subr.mxu1 %v4429_v26  ;;  %v4426_v44 = vld [vmem:[%s6376_s12 + $0x58] sm:$0xff] }
0x1f60   :  { %v4438_v28 = vsel %vm317_vm0, %v7056_v50, 0.0  ;;  %5773 = vmatpush3.msra.mxu1 %v4429_v26 }
0x1f61   :  { %4439 = vadd.xlane.f32.xlu0 %v4438_v28  ;;  %5774 = vmatprep.subr.mxu1 %v4428_v49  ;;  %v4425_v28 = vld [vmem:[%s6376_s12 + $0x50] sm:$0xff] }
0x1f62   :  { %5775 = vmatpush3.msra.mxu1 %v4428_v49 }
0x1f63   :  { %5776 = vmatprep.subr.mxu1 %v4427_v27 }
0x1f64   :  { %5777 = vmatpush3.msra.mxu1 %v4427_v27 }
0x1f65   :  { %5778 = vmatprep.subr.mxu1 %v4426_v44 }
0x1f66   :  { %5779 = vmatpush3.msra.mxu1 %v4426_v44 }
0x1f67   :  { %5780 = vmatprep.subr.mxu1 %v4425_v28 }
0x1f68   :  { %5781 = vmatpush3.msra.mxu1 %v4425_v28 }
0x1fe4   :  { %v4437_v15 = vpop.xlane.xlu1 %4436 }
0x1fe5   :  { %v4445_v40 = vmul.f32 0.03125, %v4437_v15  ;;  %v4424_v15 = vld [vmem:[%s6376_s12 + $0x48] sm:$0xff] }
0x1fe6   :  { %v4434_v29 = vpop.xlane.xlu0 %4433  ;;  %5782 = vmatprep.subr.mxu1 %v4424_v15 }
0x1fe7   :  { %v4449_v48 = vsub.f32 %v7043_v3, %v4445_v40  ;;  %v4444_v6 = vmul.f32 0.03125, %v4434_v29  ;;  %5783 = vmatpush3.msra.mxu1 %v4424_v15  ;;  %v4423_v40 = vld [vmem:[%s6376_s12 + $0x40] sm:$0xff]  ;;  %v4422_v29 = vld [vmem:[%s6376_s12 + $0x38] sm:$0xff] }
0x1fe8   :  { %v4443_v31 = vpop.xlane.xlu1 %4442  ;;  %5784 = vmatprep.subr.mxu1 %v4423_v40 }
0x1fe9   :  { %v4448_v24 = vsub.f32 %v7046_v12, %v4444_v6  ;;  %v4447_v17 = vmul.f32 0.03125, %v4443_v31  ;;  %v4453_v32 = vmul.f32 %v4449_v48, %v4449_v48  ;;  %5785 = vmatpush3.msra.mxu1 %v4423_v40  ;;  %v4420_v6 = vld [vmem:[%s6376_s12 + $0x28] sm:$0xff]  ;;  %v4419_v31 = vld [vmem:[%s6376_s12 + $0x20] sm:$0xff] }
0x1fea   :  { %v4440_v33 = vpop.xlane.xlu0 %4439  ;;  %5786 = vmatprep.subr.mxu1 %v4422_v29 }
0x1feb   :  { %v4451_v36 = vsub.f32 %v7051_v16, %v4447_v17  ;;  %v4446_v37 = vmul.f32 0.03125, %v4440_v33  ;;  %v4459_v38 = vsel %vm317_vm0, %v4453_v32, 0.0  ;;  %v4452_v25 = vmul.f32 %v4448_v24, %v4448_v24  ;;  %5787 = vmatpush3.msra.mxu1 %v4422_v29  ;;  %v4417_v17 = vld [vmem:[%s6376_s12 + $0x10] sm:$0xff]  ;;  %v4416_v32 = vld [vmem:[%s6376_s12 + $0x8] sm:$0xff]  ;;  %v4415_v33 = vld [vmem:[%s6376_s12] sm:$0xff] }
0x1fec   :  { %4460 = vadd.xlane.f32.xlu1 %v4459_v38 }
0x1fed   :  { %v4450_v39 = vsub.f32 %v7056_v50, %v4446_v37  ;;  %v4456_v7 = vsel %vm317_vm0, %v4452_v25, 0.0  ;;  %v4455_v41 = vmul.f32 %v4451_v36, %v4451_v36 }
0x1fee   :  { %4457 = vadd.xlane.f32.xlu0 %v4456_v7 }
0x1fef   :  { %v4465_v34 = vsel %vm317_vm0, %v4455_v41, 0.0  ;;  %v4454_v11 = vmul.f32 %v4450_v39, %v4450_v39 }
0x1ff0   :  { %4466 = vadd.xlane.f32.xlu1 %v4465_v34 }
0x1ff1   :  { %v4462_v43 = vsel %vm317_vm0, %v4454_v11, 0.0 }
0x1ff2   :  { %4463 = vadd.xlane.f32.xlu0 %v4462_v43 }
0x2075   :  { %v4461_v35 = vpop.xlane.xlu1 %4460 }
0x2076   :  { %v4469_v22 = vmul.f32 0.03125, %v4461_v35 }
0x2077   :  { %v4458_v23 = vpop.xlane.xlu0 %4457 }
0x2078   :  { %v4473_v52 = vadd.f32 1e-05, %v4469_v22  ;;  %v4468_v53 = vmul.f32 0.03125, %v4458_v23 }
0x2079   :  { %v4467_v30 = vpop.xlane.xlu1 %4466 }
0x207a   :  { %5971 = vrsqrt.f32 %v4473_v52  ;;  %v4472_v20 = vadd.f32 1e-05, %v4468_v53  ;;  %v4471_v54 = vmul.f32 0.03125, %v4467_v30 }
0x207b   :  { %v4464_v55 = vpop.xlane.xlu0 %4463 }
0x207c   :  { %5973 = vrsqrt.f32 %v4472_v20  ;;  %v4475_v45 = vadd.f32 1e-05, %v4471_v54  ;;  %v4470_v56 = vmul.f32 0.03125, %v4464_v55 }
0x207e   :  { %5975 = vrsqrt.f32 %v4475_v45  ;;  %v4474_v42 = vadd.f32 1e-05, %v4470_v56 }
0x2080   :  { %5977 = vrsqrt.f32 %v4474_v42 }
0x2087   :  { %v5972_v9 = vpop.eup %5971 }
0x2088   :  { %v4481_v57 = vmul.f32 %v5972_v9, %v4449_v48  ;;  %v4421_v48 = vld [vmem:[%s6376_s12 + $0x30] sm:$0xff] }
0x2089   :  { %v5974_v58 = vpop.eup %5973  ;;  %5788 = vmatprep.subr.mxu1 %v4421_v48 }
0x208a   :  { %v4480_v59 = vmul.f32 %v5974_v58, %v4448_v24  ;;  %v4491_v61 = vmul.f32 %v5042_v8, %v4481_v57  ;;  %5789 = vmatpush3.msra.mxu1 %v4421_v48  ;;  %v4418_v24 = vld [vmem:[%s6376_s12 + $0x18] sm:$0xff]  ;;  %s6094_s12 = smov [#allocation4]  }
0x208b   :  { %v5976_v60 = vpop.eup %5975  ;;  %5790 = vmatprep.subr.mxu1 %v4420_v6  ;;  %s4761_s6 = sshll.u32 %s6094_s12, 4  ;;  %s4762_s6 = int_to_ptr.vmem [resolvable:$true] %s4761_s6 }
0x208c   :  { %v4490_v63 = vmul.f32 %v5042_v8, %v4480_v59  ;;  %v4483_v0 = vmul.f32 %v5976_v60, %v4451_v36  ;;  %v4501_v5 = vadd.f32 %v5043_v62, %v4491_v61  ;;  %5791 = vmatpush3.msra.mxu1 %v4420_v6  ;;  %v5044_v36 = vld [vmem:[%s7219_s30] ss:$0 sm:$0xff]  ;;  %s5991_s7 = scalar_lea.vmem %s4762_s6, 256  ;;  %p5996_p1 = scmp.lt.s32.totalorder %s4762_s6, %s4762_s6 }
0x208d   :  { %v5978_v1 = vpop.eup %5977  ;;  %5792 = vmatprep.subr.mxu1 %v4419_v31  ;;  %p5992_p0 = scmp.ne.s32.totalorder %s4762_s6, %s5991_s7  ;;  %p5997_p2 = scmp.lt.s32.totalorder %s5991_s7, %s5991_s7 }
0x208e   :  { %v4500_v2 = vadd.f32 %v5043_v62, %v4490_v63  ;;  %v4482_v4 = vmul.f32 %v5978_v1, %v4450_v39  ;;  %v4493_v10 = vmul.f32 %v5042_v8, %v4483_v0  ;;  %5793 = vmatpush3.msra.mxu1 %v4419_v31 }
0x208f   :  { %5794 = vmatprep.subr.mxu1 %v4418_v24  ;;  %p5998_p3 = por %p5997_p2, %p5996_p1 }
0x2090   :  { %5764 = vmatprep.mubr.msk.f32.mxu0 %vm317_vm0, %v4500_v2  ;;  %v4492_v14 = vmul.f32 %v5042_v8, %v4482_v4  ;;  %v4503_v19 = vadd.f32 %v5043_v62, %v4493_v10  ;;  %5795 = vmatpush3.msra.mxu1 %v4418_v24 }
0x2091   :  { %5765 = vmatmul.mubr.msk.f32.vlgmr.msra.gmra.mxu0 %vm317_vm0, %v4501_v5  ;;  %5796 = vmatprep.subr.mxu1 %v4417_v17  ;;  %p5999_p4 = pnand %p5998_p3, %p5992_p0 }
0x2092   :  { %v4502_v18 = vadd.f32 %v5043_v62, %v4492_v14  ;;  %5797 = vmatpush3.msra.mxu1 %v4417_v17 }
0x2093   :  { %5798 = vmatprep.subr.mxu1 %v4416_v32 }
0x2094   :  { %5767 = vmatprep.mubr.msk.f32.mxu0 %vm317_vm0, %v4502_v18  ;;  %5799 = vmatpush3.msra.mxu1 %v4416_v32 }
0x2095   :  { %5768 = vmatmul.mubr.msk.f32.gmra.mxu0 %vm317_vm0, %v4503_v19  ;;  %5800 = vmatprep.subr.mxu1 %v4415_v33 }
0x2096   :  { %5801 = vmatpush3.msra.mxu1 %v4415_v33 }
0x2151   :  { %v5766_v37 = vpop.f32.mrf.mxu0 }
0x2152   :  { %v4594_v38 = vadd.f32 %v5766_v37, %v5044_v36 }
0x2153   :  { %v4588_v25 = vpop.f32.mrf.mxu0 }
0x2154   :  { %v4608_v39 = vmul.f32 %v4594_v38, %v4594_v38  ;;  %v4589_v7 = vadd.f32 %v5044_v36, %v4588_v25 }
0x2155   :  { %v5769_v41 = vpop.f32.mrf.mxu0 }
0x2156   :  { %v4612_v34 = vmul.f32 %v4608_v39, %v4594_v38  ;;  %v4607_v11 = vmul.f32 %v4589_v7, %v4589_v7  ;;  %v4604_v43 = vadd.f32 %v5769_v41, %v5044_v36 }
0x2157   :  { %v4598_v46 = vpop.f32.mrf.mxu0 }
0x2158   :  { %v4616_v47 = vmul.f32 0.044715, %v4612_v34  ;;  %v4611_v13 = vmul.f32 %v4607_v11, %v4589_v7  ;;  %v4610_v21 = vmul.f32 %v4604_v43, %v4604_v43  ;;  %v4599_v35 = vadd.f32 %v5044_v36, %v4598_v46 }
0x215a   :  { %v4620_v22 = vadd.f32 %v4616_v47, %v4594_v38  ;;  %v4615_v23 = vmul.f32 0.044715, %v4611_v13  ;;  %v4614_v52 = vmul.f32 %v4610_v21, %v4604_v43  ;;  %v4609_v53 = vmul.f32 %v4599_v35, %v4599_v35 }
0x215c   :  { %v4624_v30 = vmul.f32 0.7978846, %v4620_v22  ;;  %v4619_v20 = vadd.f32 %v4615_v23, %v4589_v7  ;;  %v4618_v54 = vmul.f32 0.044715, %v4614_v52  ;;  %v4613_v55 = vmul.f32 %v4609_v53, %v4599_v35 }
0x215e   :  { %5979 = vtanh.f32 %v4624_v30  ;;  %v4623_v45 = vmul.f32 0.7978846, %v4619_v20  ;;  %v4622_v56 = vadd.f32 %v4618_v54, %v4604_v43  ;;  %v4617_v42 = vmul.f32 0.044715, %v4613_v55 }
0x2160   :  { %5981 = vtanh.f32 %v4623_v45  ;;  %v4626_v9 = vmul.f32 0.7978846, %v4622_v56  ;;  %v4621_v57 = vadd.f32 %v4617_v42, %v4599_v35 }
0x2162   :  { %5983 = vtanh.f32 %v4626_v9  ;;  %v4625_v8 = vmul.f32 0.7978846, %v4621_v57 }
0x2164   :  { %5985 = vtanh.f32 %v4625_v8 }
0x216b   :  { %v5980_v58 = vpop.eup %5979 }
0x216c   :  { %v4632_v59 = vadd.f32 1.0, %v5980_v58 }
0x216d   :  { %v5982_v60 = vpop.eup %5981 }
0x216e   :  { %v4631_v61 = vadd.f32 1.0, %v5982_v60  ;;  %v4636_v63 = vmul.f32 0.5, %v4632_v59 }
0x216f   :  { %v5984_v62 = vpop.eup %5983 }
0x2170   :  { %v4635_v0 = vmul.f32 0.5, %v4631_v61  ;;  %v4634_v1 = vadd.f32 1.0, %v5984_v62  ;;  %v4640_v10 = vmul.f32 %v4636_v63, %v4594_v38 }
0x2171   :  { %v5986_v2 = vpop.eup %5985 }
0x2172   :  { %v4639_v4 = vmul.f32 %v4635_v0, %v4589_v7  ;;  %v4633_v5 = vadd.f32 1.0, %v5986_v2  ;;  %v4638_v14 = vmul.f32 0.5, %v4634_v1 }
0x2174   :  { %5802 = vmatprep.mubr.f32.mxu1 %v4639_v4  ;;  %v4637_v18 = vmul.f32 0.5, %v4633_v5  ;;  %v4642_v51 = vmul.f32 %v4638_v14, %v4604_v43 }
0x2175   :  { %5803 = vmatmul.mubr.f32.vlgmr.msra.gmra.mxu1 %v4640_v10 }
0x2176   :  { %v4641_v19 = vmul.f32 %v4637_v18, %v4599_v35 }
0x2178   :  { %5805 = vmatprep.mubr.f32.mxu1 %v4641_v19 }
0x2179   :  { %5806 = vmatmul.mubr.f32.gmra.mxu1 %v4642_v51 }
0x217a   :  { %6002 = shalt.err (!%p5999_p4)
}
0x217b   :  { %s6095_s10 = smov 128   ;;  %s6096_s11 = smov 8   ;;  %v5049_v26 = vld [vmem:[%s6381_s20] ss:$0 sm:$0xff] }
0x217c   :  { %4767 = dma.vmem_to_hbm [thread:$0]  %s4762_s6, 256, %s6391_s4, [#allocation5], %s6095_s10, %s6095_s10, %s6096_s11  }
0x217d   :  { %s6097_s15 = smov [#allocation2]  }
0x217e   :  { %s4749_s16 = sshll.u32 %s6097_s15, 4  ;;  %s4750_s16 = int_to_ptr.vmem [resolvable:$true] %s4749_s16 }
0x217f   :  { %s6011_s20 = scalar_lea.vmem %s4750_s16, 512  ;;  %p6016_p6 = scmp.lt.s32.totalorder %s4750_s16, %s4750_s16 }
0x2180   :  { %p6012_p5 = scmp.ne.s32.totalorder %s4750_s16, %s6011_s20  ;;  %p6017_p7 = scmp.lt.s32.totalorder %s6011_s20, %s6011_s20 }
0x2182   :  { %p6018_p8 = por %p6017_p7, %p6016_p6 }
0x2184   :  { %p6019_p9 = pnand %p6018_p8, %p6012_p5 }
0x2235   :  { %v5804_v49 = vpop.f32.mrf.mxu1 }
0x2236   :  { %v4721_v27 = vadd.f32 %v5804_v49, %v5049_v26 }
0x2237   :  { %v4715_v44 = vpop.f32.mrf.mxu1 }
0x2238   :  { %v4735_v28 = vadd.f32 %v4721_v27, %v7043_v3  ;;  %v4716_v15 = vadd.f32 %v5049_v26, %v4715_v44 }
0x2239   :  { %v5807_v40 = vpop.f32.mrf.mxu1 }
0x223a   :  { %4739 = vst.msk [vmem:[#allocation2 + $0x8] sm:$0xff] %vm317_vm0, %v4735_v28  ;;  %v4734_v29 = vadd.f32 %v4716_v15, %v7046_v12  ;;  %v4731_v48 = vadd.f32 %v5807_v40, %v5049_v26 }
0x223b   :  { %v4725_v6 = vpop.f32.mrf.mxu1 }
0x223c   :  { %4738 = vst.msk [vmem:[#allocation2] sm:$0xff] %vm317_vm0, %v4734_v29  ;;  %v4737_v31 = vadd.f32 %v4731_v48, %v7051_v16  ;;  %v4726_v24 = vadd.f32 %v5049_v26, %v4725_v6 }
0x223e   :  { %4741 = vst.msk [vmem:[#allocation2 + $0x18] sm:$0xff] %vm317_vm0, %v4737_v31  ;;  %v4736_v17 = vadd.f32 %v4726_v24, %v7056_v50 }
0x2240   :  { %4740 = vst.msk [vmem:[#allocation2 + $0x10] sm:$0xff] %vm317_vm0, %v4736_v17 }
0x2241   :  { %6022 = shalt.err (!%p6019_p9)
}
0x2242   :  { %4755 = dma.vmem_to_hbm [thread:$0]  %s4750_s16, 512, %s6386_s27, [#allocation3], %s6095_s10, %s6095_s10, %s6096_s11  }
0x2243   :  { %6031 = dma.done.wait [#allocation3], 512  }
0x2244   :  { %6032 = vsyncadd [#allocation3], 4294966784 }
0x2245   :  { %6033 = dma.done.wait [#allocation5], 256  }
0x2246   :  { %6034 = vsyncadd [#allocation5], 4294967040 }
0x2247   :  { %4774 = vsyncpa [#allocation3], 1 }
0x2248   :  { %4775 = vsyncpa [#allocation5], 1 }

</bundles_post_ra>
